<compile_context>
chip_gen: v6e
topology: v6e:2x2x1
jax: 0.10.0
libtpu: 0.0.40
codegen_flags: <defaults>
</compile_context>

<pallas_src>
import functools
import math

import jax
import jax.numpy as jnp
from jax import lax
from jax.experimental import pallas as pl
from jax.experimental.pallas import tpu as pltpu

_NEG_INF = -1e9    # additive causal-mask value (always applied in f32)
_M_INIT = -1e30    # init value of the running max (finite to avoid inf-inf)


def _layer_norm(x, w, b, eps=1e-5):
    mu = jnp.mean(x, axis=-1, keepdims=True)
    xc = x - mu
    var = jnp.mean(xc * xc, axis=-1, keepdims=True)
    return xc * lax.rsqrt(var + eps) * w + b


# --------------------- kernel 1: ln1 + fused QKV projection ---------------------
# Emits q / v head-major and K pre-transposed so kernel 2 never transposes or
# lane-slices inside the hot KV loop.

def _qkv_kernel(x_ref, ln1w_ref, ln1b_ref, wqkv_ref, bqkv_ref,
                x1_ref, q_ref, kT_ref, v_ref, *, num_heads):
    x = x_ref[0]                                        # (TS, E) f32
    E = x.shape[-1]
    hd = E // num_heads
    cdtype = wqkv_ref.dtype
    x1 = _layer_norm(x, ln1w_ref[0], ln1b_ref[0])       # f32 statistics
    x1_ref[0] = x1.astype(x1_ref.dtype)                 # residual (cdtype on HBM)
    qkv = jnp.dot(x1.astype(cdtype), wqkv_ref[...],
                  preferred_element_type=jnp.float32) + bqkv_ref[0]
    kT_all = qkv[:, E:2 * E].astype(cdtype).T           # (E, TS): one transpose here
    for h in range(num_heads):                          # whole-slab head writes
        q_ref[0, h] = qkv[:, h * hd:(h + 1) * hd].astype(cdtype)
        kT_ref[0, h] = kT_all[h * hd:(h + 1) * hd, :]
        v_ref[0, h] = qkv[:, 2 * E + h * hd:2 * E + (h + 1) * hd].astype(cdtype)


# ------ kernel 2: flash attention + out-proj + residual + ln2 + MLP + residual ----

def _attn_mlp_kernel(x1_ref, q_ref, kT_ref, v_ref,
                     wo_ref, bo_ref, ln2w_ref, ln2b_ref,
                     w1_ref, b1_ref, w2_ref, b2_ref,
                     out_ref,
                     m_scr, l_scr, acc_scr,
                     *, num_heads, tile_h):
    f32 = jnp.float32
    qi = pl.program_id(1)
    ki = pl.program_id(2)

    NH = num_heads
    TQ = q_ref.shape[2]
    TK = v_ref.shape[2]
    hd = q_ref.shape[3]
    E = NH * hd
    scale = 1.0 / math.sqrt(hd)
    cdtype = wo_ref.dtype

    last_ki = ((qi + 1) * TQ - 1) // TK     # last causally-valid KV tile for this qi

    @pl.when(ki == 0)
    def _init():
        m_scr[...] = jnp.full(m_scr.shape, _M_INIT, f32)
        l_scr[...] = jnp.zeros(l_scr.shape, f32)
        acc_scr[...] = jnp.zeros(acc_scr.shape, f32)

    # Skip KV tiles entirely in the causal future of this Q tile (their DMA is
    # also suppressed by the clamped index map on the k/v BlockSpecs).
    @pl.when(ki <= last_ki)
    def _compute():
        def tile_update(masked):
            if masked:
                row = qi * TQ + lax.broadcasted_iota(jnp.int32, (TQ, 1), 0)
                col = ki * TK + lax.broadcasted_iota(jnp.int32, (1, TK), 1)
                allowed = col <= row                         # (TQ, TK) via broadcast
            # Static head loop over lane-aligned slabs (no straddling slices).
            for h in range(NH):
                s = jnp.dot(q_ref[0, h], kT_ref[0, h],       # (TQ,hd)@(hd,TK)
                            preferred_element_type=f32) * scale
                if masked:
                    s = jnp.where(allowed, s, _NEG_INF)
                m_prev = m_scr[h]                            # (TQ, 1)
                m_new = jnp.maximum(m_prev, jnp.max(s, axis=-1, keepdims=True))
                alpha = jnp.exp(m_prev - m_new)
                p = jnp.exp(s - m_new)
                l_scr[h] = alpha * l_scr[h] + jnp.sum(p, axis=-1, keepdims=True)
                acc_scr[h] = alpha * acc_scr[h] + jnp.dot(
                    p.astype(cdtype), v_ref[0, h], preferred_element_type=f32)
                m_scr[h] = m_new

        straddles_diag = ki * TK + (TK - 1) > qi * TQ

        @pl.when(straddles_diag)
        def _masked():
            tile_update(True)

        @pl.when(jnp.logical_not(straddles_diag))
        def _unmasked():
            tile_update(False)

    # Finalize on the last VALID KV tile so the heavy epilogue overlaps with the
    # (DMA-free) trailing skipped steps and the next Q tile's prefetch.
    @pl.when(ki == last_ki)
    def _finalize():
        attn = jnp.zeros((TQ, E), f32)
        for h in range(NH):
            inv_l = pl.reciprocal(l_scr[h], approx=True)      # (TQ, 1), EUP slot
            ctx_h = (acc_scr[h] * inv_l).astype(cdtype)       # (TQ, hd)
            attn = attn + jnp.dot(ctx_h, wo_ref[h],           # (TQ,hd)@(hd,E)
                                  preferred_element_type=f32)
        attn = attn + bo_ref[...]
        x2 = x1_ref[0].astype(f32) + attn                     # residual around attn

        x2n = _layer_norm(x2, ln2w_ref[0], ln2b_ref[0]).astype(cdtype)
        H = w1_ref.shape[1]
        b1 = b1_ref[...]
        y = jnp.zeros((TQ, E), f32)
        for c in range(H // tile_h):                          # H-chunked MLP
            hsl = slice(c * tile_h, (c + 1) * tile_h)
            hblk = jnp.dot(x2n, w1_ref[:, hsl],
                           preferred_element_type=f32) + b1[:, hsl]
            hblk = jax.nn.gelu(hblk, approximate=False)       # torch GELU = exact erf
            y = y + jnp.dot(hblk.astype(cdtype), w2_ref[hsl, :],
                            preferred_element_type=f32)
        out_ref[0] = (x2 + y + b2_ref[...]).astype(out_ref.dtype)


# ------------------------------------ wrapper ------------------------------------

def _default_tile(dim, target, granule):
    if dim <= target:
        return dim
    t = (target // granule) * granule
    while t >= granule:
        if dim % t == 0:
            return t
        t -= granule
    return dim


def _physical_vmem_bytes():
    try:
        info = pltpu.get_tpu_info()
        for attr in ("vmem_capacity_bytes", "vmem_size_bytes", "vmem_bytes"):
            v = getattr(info, attr, None)
            if v:
                return int(v)
    except Exception:
        pass
    return 128 << 20        # v5e / v6e fallback


def _vmem_limit(need_bytes):
    # Generation-aware cap: ~40 MiB on v7x (64 MiB/TC physical), 48 MiB on v5e/v6e.
    cap = min(48 << 20, (_physical_vmem_bytes() * 5) // 8)
    return int(min(max(need_bytes + (2 << 20), 8 << 20), cap))


def gpt2_block_forward(x, params, num_heads, *,
                       compute_dtype=jnp.bfloat16,
                       tile_q=None, tile_kv=None, tile_h=None, tile_s=None):
    B, S, E = x.shape
    H = params['fc1_w'].shape[0]
    NH = num_heads
    assert E % NH == 0
    hd = E // NH
    f32 = jnp.float32
    cdtype = jnp.dtype(compute_dtype)
    csz = int(cdtype.itemsize)

    sub = 16 if csz < 4 else 8
    # TQ=128 keeps per-head (TQ,TK) f32 score tiles within the vreg budget;
    # TK a multiple of 128 keeps score tiles and the pre-transposed K lane-dense.
    TQ = tile_q or _default_tile(S, 128, sub)
    TK = tile_kv or _default_tile(S, 256, 128)
    TH = tile_h or _default_tile(H, 512, 128)
    TS = tile_s or _default_tile(S, 512, 128)     # stage-1 tile decoupled from TQ
    assert S % TQ == 0 and S % TK == 0 and S % TS == 0 and H % TH == 0
    assert TK % 128 == 0 or TK == S, "TK must be lane-aligned (mult of 128) or full S"
    assert TS % 128 == 0 or TS == S, "TS must be lane-aligned (mult of 128) or full S"

    # ---- parameter re-layout (pre-transposed so the kernel computes x @ W) ----
    in_w = jnp.asarray(params['in_proj_w'], f32)               # (3E, E)
    in_b = jnp.asarray(params['in_proj_b'], f32)
    wqkv = in_w.T.astype(cdtype)                               # (E, 3E) fused QKV
    bqkv = in_b.reshape(1, 3 * E)
    wo = jnp.asarray(params['out_proj_w'], f32).T.reshape(NH, hd, E).astype(cdtype)
    bo = jnp.asarray(params['out_proj_b'], f32).reshape(1, E)
    ln1w = jnp.asarray(params['ln1_w'], f32).reshape(1, E)
    ln1b = jnp.asarray(params['ln1_b'], f32).reshape(1, E)
    ln2w = jnp.asarray(params['ln2_w'], f32).reshape(1, E)
    ln2b = jnp.asarray(params['ln2_b'], f32).reshape(1, E)
    w1 = jnp.asarray(params['fc1_w'], f32).T.astype(cdtype)    # (E, H)
    b1 = jnp.asarray(params['fc1_b'], f32).reshape(1, H)
    w2 = jnp.asarray(params['fc2_w'], f32).T.astype(cdtype)    # (H, E)
    b2 = jnp.asarray(params['fc2_b'], f32).reshape(1, E)
    x = x.astype(f32)

    def full(shape):
        return pl.BlockSpec(shape, lambda *_, n=len(shape): (0,) * n)

    # ---------------- stage 1: ln1 + fused QKV projection ----------------
    kernel1 = functools.partial(_qkv_kernel, num_heads=NH)
    vmem1 = _vmem_limit(2 * E * 3 * E * csz                    # Wqkv (double-buffered)
                        + 2 * TS * E * (4 + 4 * csz)           # x in + x1/q/kT/v out
                        + TS * 3 * E * 4)                      # qkv intermediate
    cost1 = pl.CostEstimate(
        flops=int(2 * B * S * E * 3 * E),
        transcendentals=0,
        bytes_accessed=int(B * S * E * 4 + E * 3 * E * csz + B * S * E * 4 * csz))
    x1, q, kT, v = pl.pallas_call(
        kernel1,
        out_shape=(jax.ShapeDtypeStruct((B, S, E), cdtype),         # x1 (residual)
                   jax.ShapeDtypeStruct((B, NH, S, hd), cdtype),    # q  head-major
                   jax.ShapeDtypeStruct((B, NH, hd, S), cdtype),    # K^T head-major
                   jax.ShapeDtypeStruct((B, NH, S, hd), cdtype)),   # v  head-major
        grid_spec=pltpu.PrefetchScalarGridSpec(
            num_scalar_prefetch=0,
            grid=(B, S // TS),
            in_specs=[
                pl.BlockSpec((1, TS, E), lambda b, s: (b, s, 0)),   # x
                full((1, E)), full((1, E)),                          # ln1 w, b
                full((E, 3 * E)), full((1, 3 * E)),                  # Wqkv, bqkv
            ],
            out_specs=[
                pl.BlockSpec((1, TS, E), lambda b, s: (b, s, 0)),          # x1
                pl.BlockSpec((1, NH, TS, hd), lambda b, s: (b, 0, s, 0)),  # q
                pl.BlockSpec((1, NH, hd, TS), lambda b, s: (b, 0, 0, s)),  # kT
                pl.BlockSpec((1, NH, TS, hd), lambda b, s: (b, 0, s, 0)),  # v
            ]),
        compiler_params=pltpu.CompilerParams(
            dimension_semantics=("parallel", "parallel"),
            vmem_limit_bytes=vmem1),
        cost_estimate=cost1,
    )(x, ln1w, ln1b, wqkv, bqkv)

    # ------- stage 2: flash attention + out-proj + residual + ln2 + MLP -------
    kernel2 = functools.partial(_attn_mlp_kernel, num_heads=NH, tile_h=TH)

    def kv_block(ki, qi):
        # Clamp causally-skipped KV tiles to the last valid one: same block
        # index => no new DMA (pairs with the in-kernel compute skip).
        return jnp.minimum(ki, ((qi + 1) * TQ - 1) // TK)

    weights2 = 2 * ((E * E + E * H + H * E) * csz + (6 * E + H) * 4)
    tiles2 = 2 * (TQ * E * csz + 2 * NH * TQ * hd * csz + NH * hd * TK * csz
                  + TQ * E * 4)
    scratch2 = NH * TQ * (2 * 128 + max(hd, 128)) * 4
    inter2 = 3 * TQ * TK * 4 + 3 * TQ * max(E, TH) * 4
    vmem2 = _vmem_limit(weights2 + tiles2 + scratch2 + inter2)
    cost2 = pl.CostEstimate(
        flops=int(B * (2 * S * S * E + 2 * S * E * E + 4 * S * E * H)),
        transcendentals=int(B * (NH * S * S // 2 + S * H)),
        bytes_accessed=int(B * S * E * (4 + 4 * csz)
                           + (E * E + E * H + H * E) * csz))
    out = pl.pallas_call(
        kernel2,
        out_shape=jax.ShapeDtypeStruct((B, S, E), f32),
        grid_spec=pltpu.PrefetchScalarGridSpec(
            num_scalar_prefetch=0,
            grid=(B, S // TQ, S // TK),
            in_specs=[
                pl.BlockSpec((1, TQ, E), lambda b, qi, ki: (b, qi, 0)),         # x1
                pl.BlockSpec((1, NH, TQ, hd), lambda b, qi, ki: (b, 0, qi, 0)), # q
                pl.BlockSpec((1, NH, hd, TK),
                             lambda b, qi, ki: (b, 0, 0, kv_block(ki, qi))),    # kT
                pl.BlockSpec((1, NH, TK, hd),
                             lambda b, qi, ki: (b, 0, kv_block(ki, qi), 0)),    # v
                full((NH, hd, E)), full((1, E)),                                # Wo, bo
                full((1, E)), full((1, E)),                                     # ln2 w, b
                full((E, H)), full((1, H)),                                     # W1, b1
                full((H, E)), full((1, E)),                                     # W2, b2
            ],
            out_specs=pl.BlockSpec((1, TQ, E), lambda b, qi, ki: (b, qi, 0)),
            scratch_shapes=[
                pltpu.VMEM((NH, TQ, 1), jnp.float32),    # running max m
                pltpu.VMEM((NH, TQ, 1), jnp.float32),    # running sum l
                pltpu.VMEM((NH, TQ, hd), jnp.float32),   # per-head context acc
            ]),
        compiler_params=pltpu.CompilerParams(
            dimension_semantics=("parallel", "parallel", "arbitrary"),
            vmem_limit_bytes=vmem2),
        cost_estimate=cost2,
    )(x1, q, kT, v, wo, bo, ln2w, ln2b, w1, b1, w2, b2)
    return out


# --------------------------- plain-JAX reference ---------------------------

def reference_forward(x, params, num_heads):
    B, S, E = x.shape
    hd = E // num_heads
    mask_bool = jnp.triu(jnp.ones((S, S), dtype=bool), k=1)
    add_mask = jnp.where(mask_bool, _NEG_INF, 0.0).astype(jnp.float32)

    def ln(v, w, b, eps=1e-5):
        mu = v.mean(-1, keepdims=True)
        var = ((v - mu) ** 2).mean(-1, keepdims=True)
        return (v - mu) / jnp.sqrt(var + eps) * w + b

    in_w, in_b = params['in_proj_w'], params['in_proj_b']
    x1 = ln(x, params['ln1_w'], params['ln1_b'])
    q = x1 @ in_w[:E].T + in_b[:E]
    k = x1 @ in_w[E:2 * E].T + in_b[E:2 * E]
    v = x1 @ in_w[2 * E:].T + in_b[2 * E:]
    qh = q.reshape(B, S, num_heads, hd)
    kh = k.reshape(B, S, num_heads, hd)
    vh = v.reshape(B, S, num_heads, hd)
    scores = jnp.einsum('bqhd,bkhd->bhqk', qh, kh) / math.sqrt(hd) + add_mask
    p = jax.nn.softmax(scores, axis=-1)
    ctx = jnp.einsum('bhqk,bkhd->bqhd', p, vh).reshape(B, S, E)
    attn = ctx @ params['out_proj_w'].T + params['out_proj_b']
    x2 = x1 + attn
    x2n = ln(x2, params['ln2_w'], params['ln2_b'])
    h = jax.nn.gelu(x2n @ params['fc1_w'].T + params['fc1_b'], approximate=False)
    y = h @ params['fc2_w'].T + params['fc2_b']
    return x2 + y


if __name__ == "__main__":
    B, S, E, NH, RATIO = 2, 256, 64, 4, 4
    H = E * RATIO

    key = jax.random.PRNGKey(0)
    ks = jax.random.split(key, 10)
    params = {
        'ln1_w': jnp.ones((E,), jnp.float32),
        'ln1_b': jnp.zeros((E,), jnp.float32),
        'in_proj_w': 0.05 * jax.random.normal(ks[0], (3 * E, E), jnp.float32),
        'in_proj_b': 0.05 * jax.random.normal(ks[1], (3 * E,), jnp.float32),
        'out_proj_w': 0.05 * jax.random.normal(ks[2], (E, E), jnp.float32),
        'out_proj_b': 0.05 * jax.random.normal(ks[3], (E,), jnp.float32),
        'ln2_w': jnp.ones((E,), jnp.float32),
        'ln2_b': jnp.zeros((E,), jnp.float32),
        'fc1_w': 0.05 * jax.random.normal(ks[4], (H, E), jnp.float32),
        'fc1_b': 0.05 * jax.random.normal(ks[5], (H,), jnp.float32),
        'fc2_w': 0.05 * jax.random.normal(ks[6], (E, H), jnp.float32),
        'fc2_b': 0.05 * jax.random.normal(ks[7], (E,), jnp.float32),
    }
    x = jax.random.normal(ks[8], (B, S, E), jnp.float32)

    ref = reference_forward(x, params, NH)

    # Strict check of the tiled flash-softmax / fusion logic (f32 matmuls).
    # 2x2 Q/KV tiles exercise the online-softmax update, the causal-skip +
    # clamped KV index map, and the last-valid-tile finalize.
    out_f32 = gpt2_block_forward(x, params, NH, compute_dtype=jnp.float32,
                                 tile_q=128, tile_kv=128)
    out_f32 = jax.block_until_ready(out_f32)
    assert out_f32.shape == (B, S, E)
    assert bool(jnp.all(jnp.isfinite(out_f32)))
    assert bool(jnp.allclose(out_f32, ref, atol=2e-3, rtol=2e-3)), "f32 mismatch"

    # Performance path: bf16 MXU operands / intermediates, f32 accumulation,
    # default tiling (TQ=128, TK=256).
    out_bf16 = gpt2_block_forward(x, params, NH, compute_dtype=jnp.bfloat16)
    out_bf16 = jax.block_until_ready(out_bf16)
    assert out_bf16.shape == (B, S, E)
    assert bool(jnp.all(jnp.isfinite(out_bf16)))
    assert bool(jnp.allclose(out_bf16, ref, atol=5e-2, rtol=5e-2)), "bf16 mismatch"

    print("KERNEL_OK")
</pallas_src>

<mosaic_0001>
module attributes {stable_mosaic.version = 11 : i64} {
  func.func @_qkv_kernel(%arg0: i32, %arg1: i32, %arg2: memref<1x256x64xf32, #tpu.memory_space<vmem>>, %arg3: memref<1x64xf32, #tpu.memory_space<vmem>>, %arg4: memref<1x64xf32, #tpu.memory_space<vmem>>, %arg5: memref<64x192xf32, #tpu.memory_space<vmem>>, %arg6: memref<1x192xf32, #tpu.memory_space<vmem>>, %arg7: memref<1x256x64xf32, #tpu.memory_space<vmem>>, %arg8: memref<1x4x256x16xf32, #tpu.memory_space<vmem>>, %arg9: memref<1x4x16x256xf32, #tpu.memory_space<vmem>>, %arg10: memref<1x4x256x16xf32, #tpu.memory_space<vmem>>) attributes {dimension_semantics = [#tpu.dimension_semantics<parallel>, #tpu.dimension_semantics<parallel>], iteration_bounds = array<i64: 2, 1>, scalar_prefetch = 0 : i64, scratch_operands = 0 : i64, tpu.core_type = #tpu.core_type<tc>, window_params = [{transform_indices = @transform_0, window_bounds = array<i64: 1, 256, 64>}, {pipeline_mode = #tpu.pipeline_mode<synchronous>, transform_indices = @transform_1, window_bounds = array<i64: 1, 64>}, {pipeline_mode = #tpu.pipeline_mode<synchronous>, transform_indices = @transform_2, window_bounds = array<i64: 1, 64>}, {pipeline_mode = #tpu.pipeline_mode<synchronous>, transform_indices = @transform_3, window_bounds = array<i64: 64, 192>}, {pipeline_mode = #tpu.pipeline_mode<synchronous>, transform_indices = @transform_4, window_bounds = array<i64: 1, 192>}, {transform_indices = @transform_5, window_bounds = array<i64: 1, 256, 64>}, {transform_indices = @transform_6, window_bounds = array<i64: 1, 4, 256, 16>}, {transform_indices = @transform_7, window_bounds = array<i64: 1, 4, 16, 256>}, {transform_indices = @transform_8, window_bounds = array<i64: 1, 4, 256, 16>}]} {
    %c0 = arith.constant 0 : index
    %c0_0 = arith.constant 0 : index
    %c0_1 = arith.constant 0 : index
    %0 = vector.load %arg2[%c0, %c0_0, %c0_1] : memref<1x256x64xf32, #tpu.memory_space<vmem>>, vector<1x256x64xf32>
    %1 = vector.shape_cast %0 : vector<1x256x64xf32> to vector<256x64xf32>
    %c0_2 = arith.constant 0 : index
    %c0_3 = arith.constant 0 : index
    %2 = vector.load %arg3[%c0_2, %c0_3] : memref<1x64xf32, #tpu.memory_space<vmem>>, vector<1x64xf32>
    %3 = vector.shape_cast %2 : vector<1x64xf32> to vector<64xf32>
    %c0_4 = arith.constant 0 : index
    %c0_5 = arith.constant 0 : index
    %4 = vector.load %arg4[%c0_4, %c0_5] : memref<1x64xf32, #tpu.memory_space<vmem>>, vector<1x64xf32>
    %5 = vector.shape_cast %4 : vector<1x64xf32> to vector<64xf32>
    %cst = arith.constant dense<0.000000e+00> : vector<256xf32>
    %6 = vector.multi_reduction <add>, %1, %cst [1] : vector<256x64xf32> to vector<256xf32>
    %7 = vector.shape_cast %6 : vector<256xf32> to vector<256x1xf32>
    %cst_6 = arith.constant 6.400000e+01 : f32
    %8 = vector.broadcast %cst_6 : f32 to vector<256x1xf32>
    %9 = arith.divf %7, %8 : vector<256x1xf32>
    %10 = vector.broadcast %9 : vector<256x1xf32> to vector<256x64xf32>
    %11 = arith.subf %1, %10 : vector<256x64xf32>
    %12 = arith.mulf %11, %11 : vector<256x64xf32>
    %cst_7 = arith.constant dense<0.000000e+00> : vector<256xf32>
    %13 = vector.multi_reduction <add>, %12, %cst_7 [1] : vector<256x64xf32> to vector<256xf32>
    %14 = vector.shape_cast %13 : vector<256xf32> to vector<256x1xf32>
    %cst_8 = arith.constant 6.400000e+01 : f32
    %15 = vector.broadcast %cst_8 : f32 to vector<256x1xf32>
    %16 = arith.divf %14, %15 : vector<256x1xf32>
    %cst_9 = arith.constant 9.99999974E-6 : f32
    %17 = vector.broadcast %cst_9 : f32 to vector<256x1xf32>
    %18 = arith.addf %16, %17 : vector<256x1xf32>
    %19 = math.rsqrt %18 : vector<256x1xf32>
    %20 = vector.broadcast %19 : vector<256x1xf32> to vector<256x64xf32>
    %21 = arith.mulf %11, %20 : vector<256x64xf32>
    %22 = vector.shape_cast %3 : vector<64xf32> to vector<1x64xf32>
    %23 = vector.broadcast %22 : vector<1x64xf32> to vector<256x64xf32>
    %24 = arith.mulf %21, %23 : vector<256x64xf32>
    %25 = vector.shape_cast %5 : vector<64xf32> to vector<1x64xf32>
    %26 = vector.broadcast %25 : vector<1x64xf32> to vector<256x64xf32>
    %27 = arith.addf %24, %26 : vector<256x64xf32>
    %c0_10 = arith.constant 0 : index
    %c0_11 = arith.constant 0 : index
    %c0_12 = arith.constant 0 : index
    %28 = vector.load %arg7[%c0_10, %c0_11, %c0_12] : memref<1x256x64xf32, #tpu.memory_space<vmem>>, vector<1x256x64xf32>
    %29 = vector.shape_cast %28 : vector<1x256x64xf32> to vector<256x64xf32>
    %30 = vector.shape_cast %27 : vector<256x64xf32> to vector<1x256x64xf32>
    tpu.vector_store %arg7[%c0_10, %c0_11, %c0_12], %30 {strides = array<i32>} : memref<1x256x64xf32, #tpu.memory_space<vmem>>, vector<1x256x64xf32>,
    %c0_13 = arith.constant 0 : index
    %c0_14 = arith.constant 0 : index
    %31 = vector.load %arg5[%c0_13, %c0_14] : memref<64x192xf32, #tpu.memory_space<vmem>>, vector<64x192xf32>
    %cst_15 = arith.constant dense<0.000000e+00> : vector<256x192xf32>
    %32 = tpu.matmul %27, %31, %cst_15 {dimension_numbers = #tpu.dot_dimension_numbers<[1], [0], [0], [1], [0, 0, 1, 1], [], []>} : vector<256x64xf32>, vector<64x192xf32>, vector<256x192xf32> -> vector<256x192xf32>
    %c0_16 = arith.constant 0 : index
    %c0_17 = arith.constant 0 : index
    %33 = vector.load %arg6[%c0_16, %c0_17] : memref<1x192xf32, #tpu.memory_space<vmem>>, vector<1x192xf32>
    %34 = vector.shape_cast %33 : vector<1x192xf32> to vector<192xf32>
    %35 = vector.shape_cast %34 : vector<192xf32> to vector<1x192xf32>
    %36 = vector.broadcast %35 : vector<1x192xf32> to vector<256x192xf32>
    %37 = arith.addf %32, %36 : vector<256x192xf32>
    %38 = vector.extract_strided_slice %37 {offsets = [0, 64], sizes = [256, 64], strides = [1, 1]} : vector<256x192xf32> to vector<256x64xf32>
    %39 = tpu.transpose %38, [1, 0] : vector<256x64xf32> -> vector<64x256xf32>
    %40 = vector.extract_strided_slice %37 {offsets = [0, 0], sizes = [256, 16], strides = [1, 1]} : vector<256x192xf32> to vector<256x16xf32>
    %c0_18 = arith.constant 0 : index
    %c0_19 = arith.constant 0 : index
    %c0_20 = arith.constant 0 : index
    %c0_21 = arith.constant 0 : index
    %41 = vector.load %arg8[%c0_18, %c0_19, %c0_20, %c0_21] : memref<1x4x256x16xf32, #tpu.memory_space<vmem>>, vector<1x1x256x16xf32>
    %42 = vector.shape_cast %41 : vector<1x1x256x16xf32> to vector<256x16xf32>
    %43 = vector.shape_cast %40 : vector<256x16xf32> to vector<1x1x256x16xf32>
    tpu.vector_store %arg8[%c0_18, %c0_19, %c0_20, %c0_21], %43 {strides = array<i32>} : memref<1x4x256x16xf32, #tpu.memory_space<vmem>>, vector<1x1x256x16xf32>,
    %44 = vector.extract_strided_slice %39 {offsets = [0, 0], sizes = [16, 256], strides = [1, 1]} : vector<64x256xf32> to vector<16x256xf32>
    %c0_22 = arith.constant 0 : index
    %c0_23 = arith.constant 0 : index
    %c0_24 = arith.constant 0 : index
    %c0_25 = arith.constant 0 : index
    %45 = vector.load %arg9[%c0_22, %c0_23, %c0_24, %c0_25] : memref<1x4x16x256xf32, #tpu.memory_space<vmem>>, vector<1x1x16x256xf32>
    %46 = vector.shape_cast %45 : vector<1x1x16x256xf32> to vector<16x256xf32>
    %47 = vector.shape_cast %44 : vector<16x256xf32> to vector<1x1x16x256xf32>
    tpu.vector_store %arg9[%c0_22, %c0_23, %c0_24, %c0_25], %47 {strides = array<i32>} : memref<1x4x16x256xf32, #tpu.memory_space<vmem>>, vector<1x1x16x256xf32>,
    %48 = vector.extract_strided_slice %37 {offsets = [0, 128], sizes = [256, 16], strides = [1, 1]} : vector<256x192xf32> to vector<256x16xf32>
    %c0_26 = arith.constant 0 : index
    %c0_27 = arith.constant 0 : index
    %c0_28 = arith.constant 0 : index
    %c0_29 = arith.constant 0 : index
    %49 = vector.load %arg10[%c0_26, %c0_27, %c0_28, %c0_29] : memref<1x4x256x16xf32, #tpu.memory_space<vmem>>, vector<1x1x256x16xf32>
    %50 = vector.shape_cast %49 : vector<1x1x256x16xf32> to vector<256x16xf32>
    %51 = vector.shape_cast %48 : vector<256x16xf32> to vector<1x1x256x16xf32>
    tpu.vector_store %arg10[%c0_26, %c0_27, %c0_28, %c0_29], %51 {strides = array<i32>} : memref<1x4x256x16xf32, #tpu.memory_space<vmem>>, vector<1x1x256x16xf32>,
    %52 = vector.extract_strided_slice %37 {offsets = [0, 16], sizes = [256, 16], strides = [1, 1]} : vector<256x192xf32> to vector<256x16xf32>
    %c0_30 = arith.constant 0 : index
    %c1 = arith.constant 1 : index
    %c0_31 = arith.constant 0 : index
    %c0_32 = arith.constant 0 : index
    %53 = vector.load %arg8[%c0_30, %c1, %c0_31, %c0_32] : memref<1x4x256x16xf32, #tpu.memory_space<vmem>>, vector<1x1x256x16xf32>
    %54 = vector.shape_cast %53 : vector<1x1x256x16xf32> to vector<256x16xf32>
    %55 = vector.shape_cast %52 : vector<256x16xf32> to vector<1x1x256x16xf32>
    tpu.vector_store %arg8[%c0_30, %c1, %c0_31, %c0_32], %55 {strides = array<i32>} : memref<1x4x256x16xf32, #tpu.memory_space<vmem>>, vector<1x1x256x16xf32>,
    %56 = vector.extract_strided_slice %39 {offsets = [16, 0], sizes = [16, 256], strides = [1, 1]} : vector<64x256xf32> to vector<16x256xf32>
    %c0_33 = arith.constant 0 : index
    %c1_34 = arith.constant 1 : index
    %c0_35 = arith.constant 0 : index
    %c0_36 = arith.constant 0 : index
    %57 = vector.load %arg9[%c0_33, %c1_34, %c0_35, %c0_36] : memref<1x4x16x256xf32, #tpu.memory_space<vmem>>, vector<1x1x16x256xf32>
    %58 = vector.shape_cast %57 : vector<1x1x16x256xf32> to vector<16x256xf32>
    %59 = vector.shape_cast %56 : vector<16x256xf32> to vector<1x1x16x256xf32>
    tpu.vector_store %arg9[%c0_33, %c1_34, %c0_35, %c0_36], %59 {strides = array<i32>} : memref<1x4x16x256xf32, #tpu.memory_space<vmem>>, vector<1x1x16x256xf32>,
    %60 = vector.extract_strided_slice %37 {offsets = [0, 144], sizes = [256, 16], strides = [1, 1]} : vector<256x192xf32> to vector<256x16xf32>
    %c0_37 = arith.constant 0 : index
    %c1_38 = arith.constant 1 : index
    %c0_39 = arith.constant 0 : index
    %c0_40 = arith.constant 0 : index
    %61 = vector.load %arg10[%c0_37, %c1_38, %c0_39, %c0_40] : memref<1x4x256x16xf32, #tpu.memory_space<vmem>>, vector<1x1x256x16xf32>
    %62 = vector.shape_cast %61 : vector<1x1x256x16xf32> to vector<256x16xf32>
    %63 = vector.shape_cast %60 : vector<256x16xf32> to vector<1x1x256x16xf32>
    tpu.vector_store %arg10[%c0_37, %c1_38, %c0_39, %c0_40], %63 {strides = array<i32>} : memref<1x4x256x16xf32, #tpu.memory_space<vmem>>, vector<1x1x256x16xf32>,
    %64 = vector.extract_strided_slice %37 {offsets = [0, 32], sizes = [256, 16], strides = [1, 1]} : vector<256x192xf32> to vector<256x16xf32>
    %c0_41 = arith.constant 0 : index
    %c2 = arith.constant 2 : index
    %c0_42 = arith.constant 0 : index
    %c0_43 = arith.constant 0 : index
    %65 = vector.load %arg8[%c0_41, %c2, %c0_42, %c0_43] : memref<1x4x256x16xf32, #tpu.memory_space<vmem>>, vector<1x1x256x16xf32>
    %66 = vector.shape_cast %65 : vector<1x1x256x16xf32> to vector<256x16xf32>
    %67 = vector.shape_cast %64 : vector<256x16xf32> to vector<1x1x256x16xf32>
    tpu.vector_store %arg8[%c0_41, %c2, %c0_42, %c0_43], %67 {strides = array<i32>} : memref<1x4x256x16xf32, #tpu.memory_space<vmem>>, vector<1x1x256x16xf32>,
    %68 = vector.extract_strided_slice %39 {offsets = [32, 0], sizes = [16, 256], strides = [1, 1]} : vector<64x256xf32> to vector<16x256xf32>
    %c0_44 = arith.constant 0 : index
    %c2_45 = arith.constant 2 : index
    %c0_46 = arith.constant 0 : index
    %c0_47 = arith.constant 0 : index
    %69 = vector.load %arg9[%c0_44, %c2_45, %c0_46, %c0_47] : memref<1x4x16x256xf32, #tpu.memory_space<vmem>>, vector<1x1x16x256xf32>
    %70 = vector.shape_cast %69 : vector<1x1x16x256xf32> to vector<16x256xf32>
    %71 = vector.shape_cast %68 : vector<16x256xf32> to vector<1x1x16x256xf32>
    tpu.vector_store %arg9[%c0_44, %c2_45, %c0_46, %c0_47], %71 {strides = array<i32>} : memref<1x4x16x256xf32, #tpu.memory_space<vmem>>, vector<1x1x16x256xf32>,
    %72 = vector.extract_strided_slice %37 {offsets = [0, 160], sizes = [256, 16], strides = [1, 1]} : vector<256x192xf32> to vector<256x16xf32>
    %c0_48 = arith.constant 0 : index
    %c2_49 = arith.constant 2 : index
    %c0_50 = arith.constant 0 : index
    %c0_51 = arith.constant 0 : index
    %73 = vector.load %arg10[%c0_48, %c2_49, %c0_50, %c0_51] : memref<1x4x256x16xf32, #tpu.memory_space<vmem>>, vector<1x1x256x16xf32>
    %74 = vector.shape_cast %73 : vector<1x1x256x16xf32> to vector<256x16xf32>
    %75 = vector.shape_cast %72 : vector<256x16xf32> to vector<1x1x256x16xf32>
    tpu.vector_store %arg10[%c0_48, %c2_49, %c0_50, %c0_51], %75 {strides = array<i32>} : memref<1x4x256x16xf32, #tpu.memory_space<vmem>>, vector<1x1x256x16xf32>,
    %76 = vector.extract_strided_slice %37 {offsets = [0, 48], sizes = [256, 16], strides = [1, 1]} : vector<256x192xf32> to vector<256x16xf32>
    %c0_52 = arith.constant 0 : index
    %c3 = arith.constant 3 : index
    %c0_53 = arith.constant 0 : index
    %c0_54 = arith.constant 0 : index
    %77 = vector.load %arg8[%c0_52, %c3, %c0_53, %c0_54] : memref<1x4x256x16xf32, #tpu.memory_space<vmem>>, vector<1x1x256x16xf32>
    %78 = vector.shape_cast %77 : vector<1x1x256x16xf32> to vector<256x16xf32>
    %79 = vector.shape_cast %76 : vector<256x16xf32> to vector<1x1x256x16xf32>
    tpu.vector_store %arg8[%c0_52, %c3, %c0_53, %c0_54], %79 {strides = array<i32>} : memref<1x4x256x16xf32, #tpu.memory_space<vmem>>, vector<1x1x256x16xf32>,
    %80 = vector.extract_strided_slice %39 {offsets = [48, 0], sizes = [16, 256], strides = [1, 1]} : vector<64x256xf32> to vector<16x256xf32>
    %c0_55 = arith.constant 0 : index
    %c3_56 = arith.constant 3 : index
    %c0_57 = arith.constant 0 : index
    %c0_58 = arith.constant 0 : index
    %81 = vector.load %arg9[%c0_55, %c3_56, %c0_57, %c0_58] : memref<1x4x16x256xf32, #tpu.memory_space<vmem>>, vector<1x1x16x256xf32>
    %82 = vector.shape_cast %81 : vector<1x1x16x256xf32> to vector<16x256xf32>
    %83 = vector.shape_cast %80 : vector<16x256xf32> to vector<1x1x16x256xf32>
    tpu.vector_store %arg9[%c0_55, %c3_56, %c0_57, %c0_58], %83 {strides = array<i32>} : memref<1x4x16x256xf32, #tpu.memory_space<vmem>>, vector<1x1x16x256xf32>,
    %84 = vector.extract_strided_slice %37 {offsets = [0, 176], sizes = [256, 16], strides = [1, 1]} : vector<256x192xf32> to vector<256x16xf32>
    %c0_59 = arith.constant 0 : index
    %c3_60 = arith.constant 3 : index
    %c0_61 = arith.constant 0 : index
    %c0_62 = arith.constant 0 : index
    %85 = vector.load %arg10[%c0_59, %c3_60, %c0_61, %c0_62] : memref<1x4x256x16xf32, #tpu.memory_space<vmem>>, vector<1x1x256x16xf32>
    %86 = vector.shape_cast %85 : vector<1x1x256x16xf32> to vector<256x16xf32>
    %87 = vector.shape_cast %84 : vector<256x16xf32> to vector<1x1x256x16xf32>
    tpu.vector_store %arg10[%c0_59, %c3_60, %c0_61, %c0_62], %87 {strides = array<i32>} : memref<1x4x256x16xf32, #tpu.memory_space<vmem>>, vector<1x1x256x16xf32>,
    return
  }
  func.func @transform_0(%arg0: i32, %arg1: i32) -> (i32, i32, i32) {
    %c0_i32 = arith.constant 0 : i32
    %c0_i32_0 = arith.constant 0 : i32
    return %arg0, %arg1, %c0_i32 : i32, i32, i32
  }
  func.func @transform_1(%arg0: i32, %arg1: i32) -> (i32, i32) {
    %c0_i32 = arith.constant 0 : i32
    %c0_i32_0 = arith.constant 0 : i32
    %c0_i32_1 = arith.constant 0 : i32
    return %c0_i32, %c0_i32_0 : i32, i32
  }
  func.func @transform_2(%arg0: i32, %arg1: i32) -> (i32, i32) {
    %c0_i32 = arith.constant 0 : i32
    %c0_i32_0 = arith.constant 0 : i32
    %c0_i32_1 = arith.constant 0 : i32
    return %c0_i32, %c0_i32_0 : i32, i32
  }
  func.func @transform_3(%arg0: i32, %arg1: i32) -> (i32, i32) {
    %c0_i32 = arith.constant 0 : i32
    %c0_i32_0 = arith.constant 0 : i32
    %c0_i32_1 = arith.constant 0 : i32
    return %c0_i32, %c0_i32_0 : i32, i32
  }
  func.func @transform_4(%arg0: i32, %arg1: i32) -> (i32, i32) {
    %c0_i32 = arith.constant 0 : i32
    %c0_i32_0 = arith.constant 0 : i32
    %c0_i32_1 = arith.constant 0 : i32
    return %c0_i32, %c0_i32_0 : i32, i32
  }
  func.func @transform_5(%arg0: i32, %arg1: i32) -> (i32, i32, i32) {
    %c0_i32 = arith.constant 0 : i32
    %c0_i32_0 = arith.constant 0 : i32
    return %arg0, %arg1, %c0_i32 : i32, i32, i32
  }
  func.func @transform_6(%arg0: i32, %arg1: i32) -> (i32, i32, i32, i32) {
    %c0_i32 = arith.constant 0 : i32
    %c0_i32_0 = arith.constant 0 : i32
    %c0_i32_1 = arith.constant 0 : i32
    return %arg0, %c0_i32, %arg1, %c0_i32_0 : i32, i32, i32, i32
  }
  func.func @transform_7(%arg0: i32, %arg1: i32) -> (i32, i32, i32, i32) {
    %c0_i32 = arith.constant 0 : i32
    %c0_i32_0 = arith.constant 0 : i32
    %c0_i32_1 = arith.constant 0 : i32
    return %arg0, %c0_i32, %c0_i32_0, %arg1 : i32, i32, i32, i32
  }
  func.func @transform_8(%arg0: i32, %arg1: i32) -> (i32, i32, i32, i32) {
    %c0_i32 = arith.constant 0 : i32
    %c0_i32_0 = arith.constant 0 : i32
    %c0_i32_1 = arith.constant 0 : i32
    return %arg0, %c0_i32, %arg1, %c0_i32_0 : i32, i32, i32, i32
  }
}

</mosaic_0001>

<bundles_post_ra>
// kernel: tpu_custom_call.1
= control target key start
LH: loop header
LB: loop body
LE: loop exit
PB: predicated region body
PF: predicated region fallthrough
CT: control target
= control target key end

     0   :  { %14 = vsyncpa [#allocation3], 0  ;;  %s5354_s0 = inlined_call_operand.vmem [shape: f32[2,256,64], index: 0, kind: input, shape index: {}]   ;;  %s5355_s1 = inlined_call_operand.vmem [shape: f32[1,64], index: 1, kind: input, shape index: {}]   ;;  %s5356_s2 = inlined_call_operand.vmem [shape: f32[1,64], index: 2, kind: input, shape index: {}]   ;;  %s5357_s3 = inlined_call_operand.vmem [shape: f32[64,192], index: 3, kind: input, shape index: {}]   ;;  %s5358_s4 = inlined_call_operand.vmem [shape: f32[1,192], index: 4, kind: input, shape index: {}]   ;;  %s5359_s5 = inlined_call_operand.vmem [shape: f32[2,256,64], index: 5, kind: output, shape index: {0}]   ;;  %s5360_s6 = inlined_call_operand.vmem [shape: f32[2,4,256,16], index: 6, kind: output, shape index: {1}]   ;;  %s5361_s7 = inlined_call_operand.hbm [shape: f32[2,4,16,256], index: 7, kind: output, shape index: {2}]   ;;  %s5362_s8 = inlined_call_operand.vmem [shape: f32[2,4,256,16], index: 8, kind: output, shape index: {3}]  }
   0x1   :  { %16 = vsyncpa [#allocation3 + $0x1], 0  ;;  %s3208_s27 = smov 0   ;;  %s3210_s28 = smov 0  }
   0x2   :  { %s3212_s29 = smov 0   ;;  %s3214_s30 = smov 0  }
   0x3   :  { %s3216_s9 = smov 0   ;;  %s3218_s10 = smov 0  }
   0x4 LB: > { %s2673_s11 = sadd.s32 4294967295, %s3153_s10   ;;  %s2674_s12 = sadd.s32 4294967294, %s3153_s10   ;;  %s3153_s10 = sphi %s3218_s10, %s22_s10   ;;  %s3149_s9 = sphi %s3216_s9, %s5369_s9   ;;  %s3145_s30 = sphi %s3214_s30, %s5368_s30   ;;  %s3141_s29 = sphi %s3212_s29, %s5367_s29   ;;  %s3137_s28 = sphi %s3210_s28, %s5366_s28   ;;  %s3133_s27 = sphi %s3208_s27, %s5365_s27  }
   0x5   : > { %s34_s13 = sadd.s32 1, %s3149_s9  ;;  %s211_s14 = sadd.s32 1, %s3141_s29 }
   0x6   : > { %p36_p0 = scmp.ge.s32.totalorder %s34_s13, 2  ;;  %p221_p1 = scmp.ne.s32.totalorder %s3141_s29, %s3137_s28 }
   0x7   : > { %p222_p2 = scmp.eq.s32.totalorder %s2673_s11, 1  ;;  %p227_p3 = scmp.ne.s32.totalorder %s3137_s28, %s3133_s27 }
   0x8   : > { %s5371_s13 = smov (%p36_p0, %s34_s13), 0  ;;  %p228_p5 = scmp.eq.s32.totalorder %s2674_s12, 1 }
   0x9   : > { %p3248_p4 = por %p222_p2, %p221_p1  ;;  %s206_s16 = ssub.s32 %s3149_s9, %s5371_s13 }
   0xa   : > { %p2677_p6 = scmp.ge.s32.totalorder %s3153_s10, 1  ;;  %p209_p7 = scmp.eq.s32.totalorder %s206_s16, 0 }
   0xb   : > { %p3255_p8 = por %p228_p5, %p227_p3  ;;  %p299_p9 = scmp.lt.s32.totalorder %s3153_s10, 3 }
   0xc   : > { %s3261_s18 = scalar_select %p209_p7, %s3141_s29, %s211_s14  }
   0xd   : > { %p300_p10 = pnand %p2677_p6, %p299_p9 }
   0xe   : > { %p365_p11 = scmp.lt.s32.totalorder (!%p300_p10), %s3145_s30, 1  ;;  %s3156_s16 = smov (!%p300_p10), 64  }
   0xf   : > { %303 = sbr.rel (%p300_p10) target bundleno = 1252 (0x4e4), region = 40  ;;  %s3157_s21 = smov (!%p300_p10), 112  }
  0x10   : > { %s2934_s26 = sshll.u32 (!%p300_p10), %s3145_s30, 11 }
  0x14   : > { %s3265_s19 = scalar_select %p365_p11, %s3145_s30, 1  ;;  %vm439_vm0 = vcmask 523264   ;;  %vm1538_vm1 = vcmask 130048  }
  0x15   : > { %s3160_s30 = smov [#allocation2]  }
  0x16   : > { %s2930_s20 = sshll.u32 %s3265_s19, 8  ;;  %s2932_s24 = sshll.u32 %s3265_s19, 10 }
  0x17   : > { %s3273_s23 = scalar_lea.vmem %s5354_s0, %s2930_s20  ;;  %s3694_s22 = scalar_lea.vmem %s5359_s5, %s2930_s20 }
  0x18   : > { %v3276_v0 = vld [vmem:[%s3273_s23] sm:$0xff]  ;;  %v3279_v1 = vld [vmem:[%s3273_s23 + $0x10] sm:$0xff]  ;;  %v3282_v2 = vld [vmem:[%s3273_s23 + $0x8] sm:$0xff]  ;;  %s3967_s11 = scalar_lea.vmem %s5360_s6, %s2932_s24  ;;  %s3975_s19 = scalar_lea.vmem %s5362_s8, %s2932_s24 }
  0x19   : > { %v440_v3 = vsel %vm439_vm0, %v3276_v0, 0.0  ;;  %v446_v4 = vsel %vm439_vm0, %v3279_v1, 0.0  ;;  %v3289_v5 = vld [vmem:[%s3273_s23 + $0x18] sm:$0xff]  ;;  %v443_v6 = vsel %vm439_vm0, %v3282_v2, 0.0  ;;  %v3296_v8 = vld [vmem:[%s3273_s23 + $0x20] sm:$0xff]  ;;  %v3299_v9 = vld [vmem:[%s3273_s23 + $0x28] sm:$0xff] }
  0x1a   : > { %441 = vadd.xlane.f32.xlu0 %v440_v3  ;;  %447 = vadd.xlane.f32.xlu1 %v446_v4  ;;  %v449_v7 = vsel %vm439_vm0, %v3289_v5, 0.0  ;;  %v452_v10 = vsel %vm439_vm0, %v3296_v8, 0.0  ;;  %v455_v11 = vsel %vm439_vm0, %v3299_v9, 0.0  ;;  %v3306_v12 = vld [vmem:[%s3273_s23 + $0x30] sm:$0xff]  ;;  %v3309_v13 = vld [vmem:[%s3273_s23 + $0x38] sm:$0xff]  ;;  %v3316_v16 = vld [vmem:[%s3273_s23 + $0x40] sm:$0xff] }
  0x1b   : > { %v458_v14 = vsel %vm439_vm0, %v3306_v12, 0.0  ;;  %v461_v15 = vsel %vm439_vm0, %v3309_v13, 0.0  ;;  %v3319_v17 = vld [vmem:[%s3273_s23 + $0x48] sm:$0xff]  ;;  %v464_v18 = vsel %vm439_vm0, %v3316_v16, 0.0  ;;  %v3326_v20 = vld [vmem:[%s3273_s23 + $0x50] sm:$0xff]  ;;  %v3329_v21 = vld [vmem:[%s3273_s23 + $0x58] sm:$0xff] }
  0x1c   : > { %v467_v19 = vsel %vm439_vm0, %v3319_v17, 0.0  ;;  %v470_v22 = vsel %vm439_vm0, %v3326_v20, 0.0  ;;  %v473_v23 = vsel %vm439_vm0, %v3329_v21, 0.0  ;;  %v3336_v24 = vld [vmem:[%s3273_s23 + $0x60] sm:$0xff]  ;;  %v3339_v25 = vld [vmem:[%s3273_s23 + $0x68] sm:$0xff]  ;;  %v3346_v28 = vld [vmem:[%s3273_s23 + $0x70] sm:$0xff] }
  0x1d   : > { %v476_v26 = vsel %vm439_vm0, %v3336_v24, 0.0  ;;  %v479_v27 = vsel %vm439_vm0, %v3339_v25, 0.0  ;;  %v3349_v29 = vld [vmem:[%s3273_s23 + $0x78] sm:$0xff]  ;;  %v482_v30 = vsel %vm439_vm0, %v3346_v28, 0.0  ;;  %v3356_v32 = vld [vmem:[%s3273_s23 + $0x80] sm:$0xff]  ;;  %v3359_v33 = vld [vmem:[%s3273_s23 + $0x88] sm:$0xff] }
  0x1e   : > { %444 = vadd.xlane.f32.xlu0 %v443_v6  ;;  %450 = vadd.xlane.f32.xlu1 %v449_v7  ;;  %v485_v31 = vsel %vm439_vm0, %v3349_v29, 0.0  ;;  %v488_v34 = vsel %vm439_vm0, %v3356_v32, 0.0  ;;  %v491_v35 = vsel %vm439_vm0, %v3359_v33, 0.0  ;;  %v3366_v36 = vld [vmem:[%s3273_s23 + $0x90] sm:$0xff]  ;;  %v3369_v37 = vld [vmem:[%s3273_s23 + $0x98] sm:$0xff]  ;;  %v3376_v40 = vld [vmem:[%s3273_s23 + $0xa0] sm:$0xff] }
  0x1f   : > { %v494_v38 = vsel %vm439_vm0, %v3366_v36, 0.0  ;;  %v497_v39 = vsel %vm439_vm0, %v3369_v37, 0.0  ;;  %v3379_v41 = vld [vmem:[%s3273_s23 + $0xa8] sm:$0xff]  ;;  %v500_v42 = vsel %vm439_vm0, %v3376_v40, 0.0  ;;  %v3386_v44 = vld [vmem:[%s3273_s23 + $0xb0] sm:$0xff]  ;;  %v3389_v45 = vld [vmem:[%s3273_s23 + $0xb8] sm:$0xff] }
  0x20   : > { %v503_v43 = vsel %vm439_vm0, %v3379_v41, 0.0  ;;  %v506_v46 = vsel %vm439_vm0, %v3386_v44, 0.0  ;;  %v509_v47 = vsel %vm439_vm0, %v3389_v45, 0.0  ;;  %v3396_v48 = vld [vmem:[%s3273_s23 + $0xc0] sm:$0xff]  ;;  %v3399_v49 = vld [vmem:[%s3273_s23 + $0xc8] sm:$0xff]  ;;  %v3406_v52 = vld [vmem:[%s3273_s23 + $0xd0] sm:$0xff] }
  0x21   : > { %v512_v50 = vsel %vm439_vm0, %v3396_v48, 0.0  ;;  %v515_v51 = vsel %vm439_vm0, %v3399_v49, 0.0  ;;  %v3409_v53 = vld [vmem:[%s3273_s23 + $0xd8] sm:$0xff]  ;;  %v518_v54 = vsel %vm439_vm0, %v3406_v52, 0.0  ;;  %v3416_v56 = vld [vmem:[%s3273_s23 + $0xe0] sm:$0xff]  ;;  %v3419_v57 = vld [vmem:[%s3273_s23 + $0xe8] sm:$0xff] }
  0x22   : > { %453 = vadd.xlane.f32.xlu0 %v452_v10  ;;  %456 = vadd.xlane.f32.xlu1 %v455_v11  ;;  %v521_v55 = vsel %vm439_vm0, %v3409_v53, 0.0  ;;  %v524_v58 = vsel %vm439_vm0, %v3416_v56, 0.0  ;;  %v527_v59 = vsel %vm439_vm0, %v3419_v57, 0.0  ;;  %v3426_v60 = vld [vmem:[%s3273_s23 + $0xf0] sm:$0xff]  ;;  %v3429_v61 = vld [vmem:[%s3273_s23 + $0xf8] sm:$0xff]  ;;  %s3159_s20 = smov 80  }
  0x23   : > { %v530_v62 = vsel %vm439_vm0, %v3426_v60, 0.0  ;;  %v533_v63 = vsel %vm439_vm0, %v3429_v61, 0.0  ;;  %s350_s23 = sand.u32 1, %s3137_s28  }
  0x24   : > { %s2678_s24 = sshll.u32 %s350_s23, 7 }
  0x25   : > { %s5244_s25 = scalar_lea.vmem [#allocation2], %s2678_s24 }
  0x26   : > { %459 = vadd.xlane.f32.xlu0 %v458_v14  ;;  %462 = vadd.xlane.f32.xlu1 %v461_v15 }
  0x2a   : > { %465 = vadd.xlane.f32.xlu0 %v464_v18  ;;  %468 = vadd.xlane.f32.xlu1 %v467_v19 }
  0x2e   : > { %471 = vadd.xlane.f32.xlu0 %v470_v22  ;;  %474 = vadd.xlane.f32.xlu1 %v473_v23 }
  0x32   : > { %477 = vadd.xlane.f32.xlu0 %v476_v26  ;;  %480 = vadd.xlane.f32.xlu1 %v479_v27 }
  0x36   : > { %483 = vadd.xlane.f32.xlu0 %v482_v30  ;;  %486 = vadd.xlane.f32.xlu1 %v485_v31 }
  0x3a   : > { %489 = vadd.xlane.f32.xlu0 %v488_v34  ;;  %492 = vadd.xlane.f32.xlu1 %v491_v35 }
  0x3e   : > { %495 = vadd.xlane.f32.xlu0 %v494_v38  ;;  %498 = vadd.xlane.f32.xlu1 %v497_v39 }
  0x42   : > { %501 = vadd.xlane.f32.xlu0 %v500_v42  ;;  %504 = vadd.xlane.f32.xlu1 %v503_v43 }
  0x46   : > { %507 = vadd.xlane.f32.xlu0 %v506_v46  ;;  %510 = vadd.xlane.f32.xlu1 %v509_v47 }
  0x4a   : > { %513 = vadd.xlane.f32.xlu0 %v512_v50  ;;  %516 = vadd.xlane.f32.xlu1 %v515_v51 }
  0x4e   : > { %519 = vadd.xlane.f32.xlu0 %v518_v54  ;;  %522 = vadd.xlane.f32.xlu1 %v521_v55 }
  0x52   : > { %525 = vadd.xlane.f32.xlu0 %v524_v58  ;;  %528 = vadd.xlane.f32.xlu1 %v527_v59 }
  0x56   : > { %531 = vadd.xlane.f32.xlu0 %v530_v62  ;;  %534 = vadd.xlane.f32.xlu1 %v533_v63 }
  0xa3   : > { %v442_v3 = vpop.xlane.xlu0 %441  ;;  %v448_v4 = vpop.xlane.xlu1 %447 }
  0xa4   : > { %v537_v6 = vmul.f32 0.015625, %v442_v3  ;;  %v539_v7 = vmul.f32 0.015625, %v448_v4 }
  0xa6   : > { %v3436_v10 = vsub.f32 %v3276_v0, %v537_v6  ;;  %v3439_v11 = vsub.f32 %v3279_v1, %v539_v7 }
  0xa7   : > { %v445_v14 = vpop.xlane.xlu0 %444  ;;  %v451_v15 = vpop.xlane.xlu1 %450 }
  0xa8   : > { %v538_v18 = vmul.f32 0.015625, %v445_v14  ;;  %v540_v19 = vmul.f32 0.015625, %v451_v15  ;;  %v601_v22 = vmul.f32 %v3436_v10, %v3436_v10  ;;  %v603_v23 = vmul.f32 %v3439_v11, %v3439_v11 }
  0xaa   : > { %v3446_v26 = vsub.f32 %v3282_v2, %v538_v18  ;;  %v3449_v27 = vsub.f32 %v3289_v5, %v540_v19  ;;  %v633_v0 = vsel %vm439_vm0, %v601_v22, 0.0  ;;  %v639_v31 = vsel %vm439_vm0, %v603_v23, 0.0 }
  0xab   : > { %634 = vadd.xlane.f32.xlu0 %v633_v0  ;;  %v454_v1 = vpop.xlane.xlu0 %453  ;;  %v457_v30 = vpop.xlane.xlu1 %456 }
  0xac   : > { %v541_v34 = vmul.f32 0.015625, %v454_v1  ;;  %v542_v35 = vmul.f32 0.015625, %v457_v30  ;;  %v602_v38 = vmul.f32 %v3446_v26, %v3446_v26  ;;  %v604_v39 = vmul.f32 %v3449_v27, %v3449_v27 }
  0xae   : > { %v3458_v2 = vsub.f32 %v3296_v8, %v541_v34  ;;  %v3461_v5 = vsub.f32 %v3299_v9, %v542_v35  ;;  %v636_v42 = vsel %vm439_vm0, %v602_v38, 0.0  ;;  %v642_v47 = vsel %vm439_vm0, %v604_v39, 0.0 }
  0xaf   : > { %640 = vadd.xlane.f32.xlu0 %v639_v31  ;;  %637 = vadd.xlane.f32.xlu1 %v636_v42  ;;  %v460_v43 = vpop.xlane.xlu0 %459  ;;  %v463_v46 = vpop.xlane.xlu1 %462 }
  0xb0   : > { %v543_v50 = vmul.f32 0.015625, %v460_v43  ;;  %v544_v51 = vmul.f32 0.015625, %v463_v46  ;;  %v605_v54 = vmul.f32 %v3458_v2, %v3458_v2  ;;  %v606_v8 = vmul.f32 %v3461_v5, %v3461_v5 }
  0xb2   : > { %v3470_v55 = vsub.f32 %v3306_v12, %v543_v50  ;;  %v3473_v9 = vsub.f32 %v3309_v13, %v544_v51  ;;  %v645_v58 = vsel %vm439_vm0, %v605_v54, 0.0  ;;  %v648_v63 = vsel %vm439_vm0, %v606_v8, 0.0  ;;  %v979_v50 = vld [vmem:[%s5357_s3 + $0x70] sm:$0xff] }
  0xb3   : > { %643 = vadd.xlane.f32.xlu1 %v642_v47  ;;  %646 = vadd.xlane.f32.xlu0 %v645_v58  ;;  %v466_v59 = vpop.xlane.xlu0 %465  ;;  %v469_v62 = vpop.xlane.xlu1 %468 }
  0xb4   : > { %v545_v3 = vmul.f32 0.015625, %v466_v59  ;;  %v546_v4 = vmul.f32 0.015625, %v469_v62  ;;  %v607_v6 = vmul.f32 %v3470_v55, %v3470_v55  ;;  %v608_v12 = vmul.f32 %v3473_v9, %v3473_v9 }
  0xb6   : > { %v3482_v7 = vsub.f32 %v3316_v16, %v545_v3  ;;  %v3485_v13 = vsub.f32 %v3319_v17, %v546_v4  ;;  %v651_v14 = vsel %vm439_vm0, %v607_v6, 0.0  ;;  %v654_v19 = vsel %vm439_vm0, %v608_v12, 0.0  ;;  %v976_v3 = vld [vmem:[%s5357_s3 + $0x58] sm:$0xff] }
  0xb7   : > { %649 = vadd.xlane.f32.xlu1 %v648_v63  ;;  %652 = vadd.xlane.f32.xlu0 %v651_v14  ;;  %v472_v15 = vpop.xlane.xlu0 %471  ;;  %v475_v18 = vpop.xlane.xlu1 %474  ;;  %v977_v63 = vld [vmem:[%s5357_s3 + $0x60] sm:$0xff]  ;;  %v975_v14 = vld [vmem:[%s5357_s3 + $0x50] sm:$0xff] }
  0xb8   : > { %v547_v22 = vmul.f32 0.015625, %v472_v15  ;;  %v548_v23 = vmul.f32 0.015625, %v475_v18  ;;  %v609_v0 = vmul.f32 %v3482_v7, %v3482_v7  ;;  %v610_v16 = vmul.f32 %v3485_v13, %v3485_v13 }
  0xba   : > { %v3494_v1 = vsub.f32 %v3326_v20, %v547_v22  ;;  %v3497_v17 = vsub.f32 %v3329_v21, %v548_v23  ;;  %v657_v30 = vsel %vm439_vm0, %v609_v0, 0.0  ;;  %v660_v35 = vsel %vm439_vm0, %v610_v16, 0.0  ;;  %v980_v21 = vld [vmem:[%s5357_s3 + $0x78] sm:$0xff]  ;;  %v973_v16 = vld [vmem:[%s5357_s3 + $0x40] sm:$0xff] }
  0xbb   : > { %655 = vadd.xlane.f32.xlu1 %v654_v19  ;;  %658 = vadd.xlane.f32.xlu0 %v657_v30  ;;  %v478_v31 = vpop.xlane.xlu0 %477  ;;  %v481_v34 = vpop.xlane.xlu1 %480 }
  0xbc   : > { %v549_v38 = vmul.f32 0.015625, %v478_v31  ;;  %v550_v39 = vmul.f32 0.015625, %v481_v34  ;;  %v611_v42 = vmul.f32 %v3494_v1, %v3494_v1  ;;  %v612_v20 = vmul.f32 %v3497_v17, %v3497_v17  ;;  %1105 = vmatprep.subr.mxu0 %v980_v21  ;;  %2935 = vmatprep.subr.mxu1 %v980_v21 }
  0xbd   : > { %1106 = vmatpush1.msra.mxu0 %v979_v50  ;;  %2943 = vmatpush1.msra.mxu1 %v979_v50  ;;  %v970_v50 = vld [vmem:[%s5357_s3 + $0x28] sm:$0xff] }
  0xbe   : > { %v3509_v43 = vsub.f32 %v3336_v24, %v549_v38  ;;  %v3512_v46 = vsub.f32 %v3339_v25, %v550_v39  ;;  %v663_v47 = vsel %vm439_vm0, %v611_v42, 0.0  ;;  %v666_v8 = vsel %vm439_vm0, %v612_v20, 0.0  ;;  %v978_v24 = vld [vmem:[%s5357_s3 + $0x68] sm:$0xff] }
  0xbf   : > { %661 = vadd.xlane.f32.xlu1 %v660_v35  ;;  %664 = vadd.xlane.f32.xlu0 %v663_v47  ;;  %v484_v51 = vpop.xlane.xlu0 %483  ;;  %v487_v54 = vpop.xlane.xlu1 %486  ;;  %v972_v35 = vld [vmem:[%s5357_s3 + $0x38] sm:$0xff] }
  0xc0   : > { %v551_v25 = vmul.f32 0.015625, %v484_v51  ;;  %v552_v58 = vmul.f32 0.015625, %v487_v54  ;;  %v613_v59 = vmul.f32 %v3509_v43, %v3509_v43  ;;  %v614_v62 = vmul.f32 %v3512_v46, %v3512_v46  ;;  %1107 = vmatprep.subr.mxu0 %v978_v24  ;;  %2936 = vmatprep.subr.mxu1 %v978_v24  ;;  %v969_v24 = vld [vmem:[%s5357_s3 + $0x20] sm:$0xff] }
  0xc1   : > { %1108 = vmatpush1.msra.mxu0 %v977_v63  ;;  %2944 = vmatpush1.msra.mxu1 %v977_v63 }
  0xc2   : > { %v3533_v4 = vsub.f32 %v3346_v28, %v551_v25  ;;  %v3536_v6 = vsub.f32 %v3349_v29, %v552_v58  ;;  %v669_v12 = vsel %vm439_vm0, %v613_v59, 0.0  ;;  %v672_v19 = vsel %vm439_vm0, %v614_v62, 0.0  ;;  %v974_v28 = vld [vmem:[%s5357_s3 + $0x48] sm:$0xff]  ;;  %1109 = vmatprep.subr.mxu0 %v976_v3  ;;  %2937 = vmatprep.subr.mxu1 %v976_v3 }
  0xc3   : > { %667 = vadd.xlane.f32.xlu1 %v666_v8  ;;  %670 = vadd.xlane.f32.xlu0 %v669_v12  ;;  %v490_v15 = vpop.xlane.xlu0 %489  ;;  %v493_v18 = vpop.xlane.xlu1 %492  ;;  %v967_v12 = vld [vmem:[%s5357_s3 + $0x10] sm:$0xff] }
  0xc4   : > { %v553_v29 = vmul.f32 0.015625, %v490_v15  ;;  %v554_v22 = vmul.f32 0.015625, %v493_v18  ;;  %v615_v23 = vmul.f32 %v3533_v4, %v3533_v4  ;;  %v616_v0 = vmul.f32 %v3536_v6, %v3536_v6  ;;  %1110 = vmatpush1.msra.mxu0 %v975_v14  ;;  %2945 = vmatpush1.msra.mxu1 %v975_v14 }
  0xc5   : > { %1111 = vmatprep.subr.mxu0 %v974_v28  ;;  %2938 = vmatprep.subr.mxu1 %v974_v28  ;;  %v3155_v28 = vmov 0.0  }
  0xc6   : > { %v3554_v30 = vsub.f32 %v3356_v32, %v553_v29  ;;  %v3557_v31 = vsub.f32 %v3359_v33, %v554_v22  ;;  %v675_v34 = vsel %vm439_vm0, %v615_v23, 0.0  ;;  %v678_v42 = vsel %vm439_vm0, %v616_v0, 0.0  ;;  %v971_v32 = vld [vmem:[%s5357_s3 + $0x30] sm:$0xff]  ;;  %1112 = vmatpush1.msra.mxu0 %v973_v16  ;;  %2946 = vmatpush1.msra.mxu1 %v973_v16 }
  0xc7   : > { %673 = vadd.xlane.f32.xlu1 %v672_v19  ;;  %676 = vadd.xlane.f32.xlu0 %v675_v34  ;;  %v496_v38 = vpop.xlane.xlu0 %495  ;;  %v499_v39 = vpop.xlane.xlu1 %498  ;;  %v966_v19 = vld [vmem:[%s5357_s3 + $0x8] sm:$0xff] }
  0xc8   : > { %v555_v33 = vmul.f32 0.015625, %v496_v38  ;;  %v556_v20 = vmul.f32 0.015625, %v499_v39  ;;  %v617_v21 = vmul.f32 %v3554_v30, %v3554_v30  ;;  %v618_v47 = vmul.f32 %v3557_v31, %v3557_v31  ;;  %1113 = vmatprep.subr.mxu0 %v972_v35  ;;  %2939 = vmatprep.subr.mxu1 %v972_v35 }
  0xc9   : > { %1114 = vmatpush1.msra.mxu0 %v971_v32  ;;  %2947 = vmatpush1.msra.mxu1 %v971_v32 }
  0xca   : > { %v3575_v51 = vsub.f32 %v3366_v36, %v555_v33  ;;  %v3578_v54 = vsub.f32 %v3369_v37, %v556_v20  ;;  %v681_v8 = vsel %vm439_vm0, %v617_v21, 0.0  ;;  %v684_v59 = vsel %vm439_vm0, %v618_v47, 0.0  ;;  %v968_v36 = vld [vmem:[%s5357_s3 + $0x18] sm:$0xff]  ;;  %1115 = vmatprep.subr.mxu0 %v970_v50  ;;  %2940 = vmatprep.subr.mxu1 %v970_v50 }
  0xcb   : > { %679 = vadd.xlane.f32.xlu1 %v678_v42  ;;  %682 = vadd.xlane.f32.xlu0 %v681_v8  ;;  %v502_v25 = vpop.xlane.xlu0 %501  ;;  %v505_v58 = vpop.xlane.xlu1 %504 }
  0xcc   : > { %v557_v37 = vmul.f32 0.015625, %v502_v25  ;;  %v558_v62 = vmul.f32 0.015625, %v505_v58  ;;  %v619_v63 = vmul.f32 %v3575_v51, %v3575_v51  ;;  %v620_v3 = vmul.f32 %v3578_v54, %v3578_v54  ;;  %1116 = vmatpush1.msra.mxu0 %v969_v24  ;;  %2948 = vmatpush1.msra.mxu1 %v969_v24 }
  0xcd   : > { %1117 = vmatprep.subr.mxu0 %v968_v36  ;;  %1153 = vmatprep.mubr.f32.mxu0 %v3155_v28 }
  0xce   : > { %v3596_v14 = vsub.f32 %v3376_v40, %v557_v37  ;;  %v3599_v15 = vsub.f32 %v3379_v41, %v558_v62  ;;  %v687_v18 = vsel %vm439_vm0, %v619_v63, 0.0  ;;  %v690_v40 = vsel %vm439_vm0, %v620_v3, 0.0  ;;  %v965_v41 = vld [vmem:[%s5357_s3] sm:$0xff]  ;;  %1118 = vmatpush1.msra.mxu0 %v967_v12  ;;  %2941 = vmatprep.subr.mxu1 %v968_v36 }
  0xcf   : > { %685 = vadd.xlane.f32.xlu1 %v684_v59  ;;  %688 = vadd.xlane.f32.xlu0 %v687_v18  ;;  %v508_v29 = vpop.xlane.xlu0 %507  ;;  %v511_v22 = vpop.xlane.xlu1 %510 }
  0xd0   : > { %v559_v23 = vmul.f32 0.015625, %v508_v29  ;;  %v560_v0 = vmul.f32 0.015625, %v511_v22  ;;  %v621_v16 = vmul.f32 %v3596_v14, %v3596_v14  ;;  %v622_v34 = vmul.f32 %v3599_v15, %v3599_v15  ;;  %1119 = vmatprep.subr.mxu0 %v966_v19  ;;  %2949 = vmatpush1.msra.mxu1 %v967_v12 }
  0xd1   : > { %1120 = vmatpush1.msra.mxu0 %v965_v41  ;;  %2942 = vmatprep.subr.mxu1 %v966_v19 }
  0xd2   : > { %v3615_v35 = vsub.f32 %v3386_v44, %v559_v23  ;;  %v3618_v38 = vsub.f32 %v3389_v45, %v560_v0  ;;  %v693_v39 = vsel %vm439_vm0, %v621_v16, 0.0  ;;  %v696_v33 = vsel %vm439_vm0, %v622_v34, 0.0  ;;  %2950 = vmatpush1.msra.mxu1 %v965_v41  ;;  %1249 = vmatprep.mubr.f32.mxu1 %v3155_v28 }
  0xd3   : > { %691 = vadd.xlane.f32.xlu1 %v690_v40  ;;  %694 = vadd.xlane.f32.xlu0 %v693_v39  ;;  %v514_v42 = vpop.xlane.xlu0 %513  ;;  %v517_v32 = vpop.xlane.xlu1 %516 }
  0xd4   : > { %v561_v20 = vmul.f32 0.015625, %v514_v42  ;;  %v562_v21 = vmul.f32 0.015625, %v517_v32  ;;  %v623_v47 = vmul.f32 %v3615_v35, %v3615_v35  ;;  %v624_v44 = vmul.f32 %v3618_v38, %v3618_v38 }
  0xd6   : > { %v3628_v45 = vsub.f32 %v3396_v48, %v561_v20  ;;  %v3631_v50 = vsub.f32 %v3399_v49, %v562_v21  ;;  %v699_v8 = vsel %vm439_vm0, %v623_v47, 0.0  ;;  %v702_v58 = vsel %vm439_vm0, %v624_v44, 0.0 }
  0xd7   : > { %697 = vadd.xlane.f32.xlu1 %v696_v33  ;;  %700 = vadd.xlane.f32.xlu0 %v699_v8  ;;  %v520_v24 = vpop.xlane.xlu0 %519  ;;  %v523_v25 = vpop.xlane.xlu1 %522 }
  0xd8   : > { %v563_v59 = vmul.f32 0.015625, %v520_v24  ;;  %v564_v36 = vmul.f32 0.015625, %v523_v25  ;;  %v625_v37 = vmul.f32 %v3628_v45, %v3628_v45  ;;  %v626_v48 = vmul.f32 %v3631_v50, %v3631_v50 }
  0xda   : > { %v3640_v62 = vsub.f32 %v3406_v52, %v563_v59  ;;  %v3643_v49 = vsub.f32 %v3409_v53, %v564_v36  ;;  %v705_v63 = vsel %vm439_vm0, %v625_v37, 0.0  ;;  %v708_v18 = vsel %vm439_vm0, %v626_v48, 0.0 }
  0xdb   : > { %703 = vadd.xlane.f32.xlu1 %v702_v58  ;;  %706 = vadd.xlane.f32.xlu0 %v705_v63  ;;  %v526_v3 = vpop.xlane.xlu0 %525  ;;  %v529_v12 = vpop.xlane.xlu1 %528 }
  0xdc   : > { %v565_v19 = vmul.f32 0.015625, %v526_v3  ;;  %v566_v29 = vmul.f32 0.015625, %v529_v12  ;;  %v627_v22 = vmul.f32 %v3640_v62, %v3640_v62  ;;  %v628_v52 = vmul.f32 %v3643_v49, %v3643_v49 }
  0xde   : > { %v3652_v40 = vsub.f32 %v3416_v56, %v565_v19  ;;  %v3655_v53 = vsub.f32 %v3419_v57, %v566_v29  ;;  %v711_v41 = vsel %vm439_vm0, %v627_v22, 0.0  ;;  %v714_v16 = vsel %vm439_vm0, %v628_v52, 0.0 }
  0xdf   : > { %709 = vadd.xlane.f32.xlu1 %v708_v18  ;;  %712 = vadd.xlane.f32.xlu0 %v711_v41  ;;  %v532_v23 = vpop.xlane.xlu0 %531  ;;  %v535_v0 = vpop.xlane.xlu1 %534 }
  0xe0   : > { %v567_v34 = vmul.f32 0.015625, %v532_v23  ;;  %v568_v39 = vmul.f32 0.015625, %v535_v0  ;;  %v629_v42 = vmul.f32 %v3652_v40, %v3652_v40  ;;  %v630_v56 = vmul.f32 %v3655_v53, %v3655_v53 }
  0xe2   : > { %v3664_v32 = vsub.f32 %v3426_v60, %v567_v34  ;;  %v3667_v57 = vsub.f32 %v3429_v61, %v568_v39  ;;  %v717_v33 = vsel %vm439_vm0, %v629_v42, 0.0  ;;  %v720_v20 = vsel %vm439_vm0, %v630_v56, 0.0 }
  0xe3   : > { %715 = vadd.xlane.f32.xlu1 %v714_v16  ;;  %718 = vadd.xlane.f32.xlu0 %v717_v33 }
  0xe4   : > { %v631_v21 = vmul.f32 %v3664_v32, %v3664_v32  ;;  %v632_v47 = vmul.f32 %v3667_v57, %v3667_v57 }
  0xe6   : > { %v723_v44 = vsel %vm439_vm0, %v631_v21, 0.0  ;;  %v726_v60 = vsel %vm439_vm0, %v632_v47, 0.0 }
  0xe7   : > { %721 = vadd.xlane.f32.xlu1 %v720_v20  ;;  %724 = vadd.xlane.f32.xlu0 %v723_v44  ;;  %v3680_v20 = vld [vmem:[%s5355_s1] ss:$0 sm:$0xff] }
  0xeb   : > { %727 = vadd.xlane.f32.xlu1 %v726_v60 }
 0x134   : > { %v635_v61 = vpop.xlane.xlu0 %634 }
 0x135   : > { %v729_v8 = vmul.f32 0.015625, %v635_v61 }
 0x137   : > { %v761_v24 = vadd.f32 1e-05, %v729_v8  ;;  %v3686_v8 = vld [vmem:[%s5356_s2] ss:$0 sm:$0xff] }
 0x138   : > { %v638_v25 = vpop.xlane.xlu1 %637  ;;  %v641_v58 = vpop.xlane.xlu0 %640 }
 0x139   : > { %3013 = vrsqrt.f32 %v761_v24  ;;  %v730_v59 = vmul.f32 0.015625, %v638_v25  ;;  %v731_v36 = vmul.f32 0.015625, %v641_v58 }
 0x13b   : > { %v762_v37 = vadd.f32 1e-05, %v730_v59  ;;  %v763_v48 = vadd.f32 1e-05, %v731_v36 }
 0x13c   : > { %v644_v63 = vpop.xlane.xlu1 %643  ;;  %v647_v3 = vpop.xlane.xlu0 %646 }
 0x13d   : > { %3015 = vrsqrt.f32 %v762_v37  ;;  %v732_v12 = vmul.f32 0.015625, %v644_v63  ;;  %v733_v18 = vmul.f32 0.015625, %v647_v3 }
 0x13e   : > { %3017 = vrsqrt.f32 %v763_v48 }
 0x13f   : > { %v764_v19 = vadd.f32 1e-05, %v732_v12  ;;  %v765_v29 = vadd.f32 1e-05, %v733_v18 }
 0x140   : > { %v650_v22 = vpop.xlane.xlu1 %649  ;;  %v653_v52 = vpop.xlane.xlu0 %652 }
 0x141   : > { %3019 = vrsqrt.f32 %v764_v19  ;;  %v734_v41 = vmul.f32 0.015625, %v650_v22  ;;  %v735_v23 = vmul.f32 0.015625, %v653_v52 }
 0x142   : > { %3021 = vrsqrt.f32 %v765_v29 }
 0x143   : > { %v766_v0 = vadd.f32 1e-05, %v734_v41  ;;  %v767_v16 = vadd.f32 1e-05, %v735_v23 }
 0x144   : > { %v656_v34 = vpop.xlane.xlu1 %655  ;;  %v659_v39 = vpop.xlane.xlu0 %658 }
 0x145   : > { %3023 = vrsqrt.f32 %v766_v0  ;;  %v736_v42 = vmul.f32 0.015625, %v656_v34  ;;  %v737_v56 = vmul.f32 0.015625, %v659_v39 }
 0x146   : > { %v3014_v33 = vpop.eup %3013  ;;  %3025 = vrsqrt.f32 %v767_v16 }
 0x147   : > { %v768_v21 = vadd.f32 1e-05, %v736_v42  ;;  %v769_v47 = vadd.f32 1e-05, %v737_v56  ;;  %v825_v44 = vmul.f32 %v3014_v33, %v3436_v10 }
 0x148   : > { %v662_v60 = vpop.xlane.xlu1 %661  ;;  %v665_v61 = vpop.xlane.xlu0 %664 }
 0x149   : > { %3027 = vrsqrt.f32 %v768_v21  ;;  %v738_v24 = vmul.f32 0.015625, %v662_v60  ;;  %v739_v25 = vmul.f32 0.015625, %v665_v61  ;;  %v863_v58 = vmul.f32 %v3680_v20, %v825_v44 }
 0x14a   : > { %v3016_v59 = vpop.eup %3015  ;;  %3029 = vrsqrt.f32 %v769_v47 }
 0x14b   : > { %v3018_v10 = vpop.eup %3017  ;;  %v770_v36 = vadd.f32 1e-05, %v738_v24  ;;  %v771_v37 = vadd.f32 1e-05, %v739_v25  ;;  %v901_v48 = vadd.f32 %v3686_v8, %v863_v58  ;;  %v826_v63 = vmul.f32 %v3016_v59, %v3446_v26 }
 0x14c   : > { %v668_v3 = vpop.xlane.xlu1 %667  ;;  %v671_v12 = vpop.xlane.xlu0 %670  ;;  %v827_v18 = vmul.f32 %v3018_v10, %v3439_v11 }
 0x14d   : > { %3031 = vrsqrt.f32 %v770_v36  ;;  %v740_v19 = vmul.f32 0.015625, %v668_v3  ;;  %v741_v29 = vmul.f32 0.015625, %v671_v12  ;;  %933 = vst.msk [vmem:[%s3694_s22] sm:$0xff] %vm439_vm0, %v901_v48  ;;  %2689 = vmatmul.mubr.msk.f32.vlgmr.msra.gmra.mxu0 %vm439_vm0, %v901_v48  ;;  %v864_v22 = vmul.f32 %v3680_v20, %v826_v63 }
 0x14e   : > { %v3020_v52 = vpop.eup %3019  ;;  %3033 = vrsqrt.f32 %v771_v37  ;;  %1159 = vmatprep.mubr.f32.mxu0 %v3155_v28  ;;  %v865_v26 = vmul.f32 %v3680_v20, %v827_v18 }
 0x14f   : > { %v3022_v41 = vpop.eup %3021  ;;  %v772_v23 = vadd.f32 1e-05, %v740_v19  ;;  %v773_v0 = vadd.f32 1e-05, %v741_v29  ;;  %v902_v11 = vadd.f32 %v3686_v8, %v864_v22  ;;  %v828_v16 = vmul.f32 %v3020_v52, %v3449_v27 }
 0x150   : > { %v674_v34 = vpop.xlane.xlu1 %673  ;;  %v677_v39 = vpop.xlane.xlu0 %676  ;;  %v903_v42 = vadd.f32 %v3686_v8, %v865_v26  ;;  %v829_v56 = vmul.f32 %v3022_v41, %v3458_v2 }
 0x151   : > { %3035 = vrsqrt.f32 %v772_v23  ;;  %v742_v33 = vmul.f32 0.015625, %v674_v34  ;;  %v743_v21 = vmul.f32 0.015625, %v677_v39  ;;  %934 = vst.msk [vmem:[%s3694_s22 + $0x8] sm:$0xff] %vm439_vm0, %v902_v11  ;;  %2690 = vmatmul.mubr.msk.f32.gmra.mxu0 %vm439_vm0, %v902_v11  ;;  %v866_v47 = vmul.f32 %v3680_v20, %v828_v16 }
 0x152   : > { %v3024_v44 = vpop.eup %3023  ;;  %3037 = vrsqrt.f32 %v773_v0  ;;  %1165 = vmatprep.mubr.f32.mxu0 %v3155_v28  ;;  %935 = vst.msk [vmem:[%s3694_s22 + $0x10] sm:$0xff] %vm439_vm0, %v903_v42  ;;  %v867_v27 = vmul.f32 %v3680_v20, %v829_v56 }
 0x153   : > { %v3026_v60 = vpop.eup %3025  ;;  %v774_v2 = vadd.f32 1e-05, %v742_v33  ;;  %v775_v61 = vadd.f32 1e-05, %v743_v21  ;;  %v904_v24 = vadd.f32 %v3686_v8, %v866_v47  ;;  %v830_v25 = vmul.f32 %v3024_v44, %v3461_v5 }
 0x154   : > { %v680_v58 = vpop.xlane.xlu1 %679  ;;  %v683_v59 = vpop.xlane.xlu0 %682  ;;  %v905_v10 = vadd.f32 %v3686_v8, %v867_v27  ;;  %v831_v36 = vmul.f32 %v3026_v60, %v3470_v55 }
 0x155   : > { %3039 = vrsqrt.f32 %v774_v2  ;;  %v744_v37 = vmul.f32 0.015625, %v680_v58  ;;  %v745_v48 = vmul.f32 0.015625, %v683_v59  ;;  %2691 = vmatmul.mubr.msk.f32.gmra.mxu0 %vm439_vm0, %v903_v42  ;;  %936 = vst.msk [vmem:[%s3694_s22 + $0x18] sm:$0xff] %vm439_vm0, %v904_v24  ;;  %v868_v63 = vmul.f32 %v3680_v20, %v830_v25 }
 0x156   : > { %v3028_v3 = vpop.eup %3027  ;;  %3041 = vrsqrt.f32 %v775_v61  ;;  %1171 = vmatprep.mubr.f32.mxu0 %v3155_v28  ;;  %937 = vst.msk [vmem:[%s3694_s22 + $0x20] sm:$0xff] %vm439_vm0, %v905_v10  ;;  %v869_v5 = vmul.f32 %v3680_v20, %v831_v36 }
 0x157   : > { %v3030_v12 = vpop.eup %3029  ;;  %v776_v55 = vadd.f32 1e-05, %v744_v37  ;;  %v777_v18 = vadd.f32 1e-05, %v745_v48  ;;  %v906_v19 = vadd.f32 %v3686_v8, %v868_v63  ;;  %v832_v29 = vmul.f32 %v3028_v3, %v3473_v9 }
 0x158   : > { %v686_v22 = vpop.xlane.xlu1 %685  ;;  %v689_v52 = vpop.xlane.xlu0 %688  ;;  %v3732_v26 = vadd.f32 %v3686_v8, %v869_v5  ;;  %v833_v41 = vmul.f32 %v3030_v12, %v3482_v7 }
 0x159   : > { %3043 = vrsqrt.f32 %v776_v55  ;;  %v746_v23 = vmul.f32 0.015625, %v686_v22  ;;  %v747_v0 = vmul.f32 0.015625, %v689_v52  ;;  %2692 = vmatmul.mubr.msk.f32.gmra.mxu0 %vm439_vm0, %v904_v24  ;;  %938 = vst.msk [vmem:[%s3694_s22 + $0x28] sm:$0xff] %vm439_vm0, %v906_v19  ;;  %v870_v11 = vmul.f32 %v3680_v20, %v832_v29 }
 0x15a   : > { %v3032_v16 = vpop.eup %3031  ;;  %3045 = vrsqrt.f32 %v777_v18  ;;  %1177 = vmatprep.mubr.f32.mxu0 %v3155_v28  ;;  %939 = vst.msk [vmem:[%s3694_s22 + $0x30] sm:$0xff] %vm439_vm0, %v3732_v26  ;;  %v871_v9 = vmul.f32 %v3680_v20, %v833_v41 }
 0x15b   : > { %v3034_v7 = vpop.eup %3033  ;;  %v778_v34 = vadd.f32 1e-05, %v746_v23  ;;  %v779_v39 = vadd.f32 1e-05, %v747_v0  ;;  %v3745_v42 = vadd.f32 %v3686_v8, %v870_v11  ;;  %v834_v56 = vmul.f32 %v3032_v16, %v3485_v13 }
 0x15c   : > { %v692_v33 = vpop.xlane.xlu1 %691  ;;  %v695_v21 = vpop.xlane.xlu0 %694  ;;  %v3749_v47 = vadd.f32 %v3686_v8, %v871_v9  ;;  %v835_v44 = vmul.f32 %v3034_v7, %v3494_v1 }
 0x15d   : > { %3047 = vrsqrt.f32 %v778_v34  ;;  %v748_v27 = vmul.f32 0.015625, %v692_v33  ;;  %v749_v60 = vmul.f32 0.015625, %v695_v21  ;;  %2693 = vmatmul.mubr.msk.f32.gmra.mxu0 %vm439_vm0, %v905_v10  ;;  %940 = vst.msk [vmem:[%s3694_s22 + $0x38] sm:$0xff] %vm439_vm0, %v3745_v42  ;;  %v872_v2 = vmul.f32 %v3680_v20, %v834_v56 }
 0x15e   : > { %v3036_v61 = vpop.eup %3035  ;;  %3049 = vrsqrt.f32 %v779_v39  ;;  %1183 = vmatprep.mubr.f32.mxu0 %v3155_v28  ;;  %941 = vst.msk [vmem:[%s3694_s22 + $0x40] sm:$0xff] %vm439_vm0, %v3749_v47  ;;  %v873_v13 = vmul.f32 %v3680_v20, %v835_v44 }
 0x15f   : > { %v3038_v1 = vpop.eup %3037  ;;  %v780_v24 = vadd.f32 1e-05, %v748_v27  ;;  %v781_v25 = vadd.f32 1e-05, %v749_v60  ;;  %v3763_v58 = vadd.f32 %v3686_v8, %v872_v2  ;;  %v836_v59 = vmul.f32 %v3036_v61, %v3497_v17 }
 0x160   : > { %v698_v10 = vpop.xlane.xlu1 %697  ;;  %v701_v36 = vpop.xlane.xlu0 %700  ;;  %v3767_v37 = vadd.f32 %v3686_v8, %v873_v13  ;;  %v837_v48 = vmul.f32 %v3038_v1, %v3509_v43 }
 0x161   : > { %3051 = vrsqrt.f32 %v780_v24  ;;  %v750_v63 = vmul.f32 0.015625, %v698_v10  ;;  %v751_v3 = vmul.f32 0.015625, %v701_v36  ;;  %2694 = vmatmul.mubr.msk.f32.gmra.mxu0 %vm439_vm0, %v906_v19  ;;  %942 = vst.msk [vmem:[%s3694_s22 + $0x48] sm:$0xff] %vm439_vm0, %v3763_v58  ;;  %v874_v5 = vmul.f32 %v3680_v20, %v836_v59 }
 0x162   : > { %v3040_v12 = vpop.eup %3039  ;;  %3053 = vrsqrt.f32 %v781_v25  ;;  %1189 = vmatprep.mubr.f32.mxu0 %v3155_v28  ;;  %943 = vst.msk [vmem:[%s3694_s22 + $0x50] sm:$0xff] %vm439_vm0, %v3767_v37  ;;  %v875_v17 = vmul.f32 %v3680_v20, %v837_v48 }
 0x163   : > { %v3042_v43 = vpop.eup %3041  ;;  %v782_v55 = vadd.f32 1e-05, %v750_v63  ;;  %v783_v18 = vadd.f32 1e-05, %v751_v3  ;;  %v3781_v19 = vadd.f32 %v3686_v8, %v874_v5  ;;  %v838_v29 = vmul.f32 %v3040_v12, %v3512_v46 }
 0x164   : > { %v704_v22 = vpop.xlane.xlu1 %703  ;;  %v707_v52 = vpop.xlane.xlu0 %706  ;;  %v3785_v41 = vadd.f32 %v3686_v8, %v875_v17  ;;  %v839_v23 = vmul.f32 %v3042_v43, %v3533_v4 }
 0x165   : > { %3055 = vrsqrt.f32 %v782_v55  ;;  %v752_v0 = vmul.f32 0.015625, %v704_v22  ;;  %v753_v11 = vmul.f32 0.015625, %v707_v52  ;;  %2695 = vmatmul.mubr.msk.f32.gmra.mxu0 %vm439_vm0, %v3732_v26  ;;  %944 = vst.msk [vmem:[%s3694_s22 + $0x58] sm:$0xff] %vm439_vm0, %v3781_v19  ;;  %v876_v16 = vmul.f32 %v3680_v20, %v838_v29 }
 0x166   : > { %v3044_v9 = vpop.eup %3043  ;;  %3057 = vrsqrt.f32 %v783_v18  ;;  %1195 = vmatprep.mubr.f32.mxu0 %v3155_v28  ;;  %945 = vst.msk [vmem:[%s3694_s22 + $0x60] sm:$0xff] %vm439_vm0, %v3785_v41  ;;  %v877_v46 = vmul.f32 %v3680_v20, %v839_v23 }
 0x167   : > { %v3046_v4 = vpop.eup %3045  ;;  %v784_v7 = vadd.f32 1e-05, %v752_v0  ;;  %v785_v34 = vadd.f32 1e-05, %v753_v11  ;;  %v3800_v26 = vadd.f32 %v3686_v8, %v876_v16  ;;  %v840_v39 = vmul.f32 %v3044_v9, %v3536_v6 }
 0x168   : > { %v710_v56 = vpop.xlane.xlu1 %709  ;;  %v713_v33 = vpop.xlane.xlu0 %712  ;;  %v841_v21 = vmul.f32 %v3046_v4, %v3554_v30  ;;  %v3805_v44 = vadd.f32 %v3686_v8, %v877_v46 }
 0x169   : > { %3059 = vrsqrt.f32 %v784_v7  ;;  %v754_v27 = vmul.f32 0.015625, %v710_v56  ;;  %v755_v60 = vmul.f32 0.015625, %v713_v33  ;;  %2696 = vmatmul.mubr.msk.f32.gmra.mxu0 %vm439_vm0, %v3745_v42  ;;  %946 = vst.msk [vmem:[%s3694_s22 + $0x68] sm:$0xff] %vm439_vm0, %v3800_v26  ;;  %v878_v2 = vmul.f32 %v3680_v20, %v840_v39 }
 0x16a   : > { %v3048_v61 = vpop.eup %3047  ;;  %3061 = vrsqrt.f32 %v785_v34  ;;  %1201 = vmatprep.mubr.f32.mxu0 %v3155_v28  ;;  %v879_v6 = vmul.f32 %v3680_v20, %v841_v21  ;;  %947 = vst.msk [vmem:[%s3694_s22 + $0x70] sm:$0xff] %vm439_vm0, %v3805_v44 }
 0x16b   : > { %v3050_v30 = vpop.eup %3049  ;;  %v786_v13 = vadd.f32 1e-05, %v754_v27  ;;  %v787_v1 = vadd.f32 1e-05, %v755_v60  ;;  %v842_v42 = vmul.f32 %v3048_v61, %v3557_v31  ;;  %v3820_v24 = vadd.f32 %v3686_v8, %v878_v2 }
 0x16c   : > { %v716_v25 = vpop.xlane.xlu1 %715  ;;  %v719_v59 = vpop.xlane.xlu0 %718  ;;  %v917_v10 = vadd.f32 %v3686_v8, %v879_v6  ;;  %v843_v36 = vmul.f32 %v3050_v30, %v3575_v51 }
 0x16d   : > { %3063 = vrsqrt.f32 %v786_v13  ;;  %v756_v48 = vmul.f32 0.015625, %v716_v25  ;;  %v757_v63 = vmul.f32 0.015625, %v719_v59  ;;  %2697 = vmatmul.mubr.msk.f32.gmra.mxu0 %vm439_vm0, %v3749_v47  ;;  %v880_v3 = vmul.f32 %v3680_v20, %v842_v42  ;;  %948 = vst.msk [vmem:[%s3694_s22 + $0x78] sm:$0xff] %vm439_vm0, %v3820_v24 }
 0x16e   : > { %v3052_v31 = vpop.eup %3051  ;;  %3065 = vrsqrt.f32 %v787_v1  ;;  %949 = vst.msk [vmem:[%s3694_s22 + $0x80] sm:$0xff] %vm439_vm0, %v917_v10  ;;  %2705 = vmatmul.mubr.msk.f32.vlgmr.msra.gmra.mxu1 %vm439_vm0, %v917_v10  ;;  %1207 = vmatprep.mubr.f32.mxu0 %v3155_v28  ;;  %v881_v51 = vmul.f32 %v3680_v20, %v843_v36 }
 0x16f   : > { %v3054_v5 = vpop.eup %3053  ;;  %v788_v12 = vadd.f32 1e-05, %v756_v48  ;;  %v789_v17 = vadd.f32 1e-05, %v757_v63  ;;  %1255 = vmatprep.mubr.f32.mxu1 %v3155_v28  ;;  %v918_v47 = vadd.f32 %v3686_v8, %v880_v3  ;;  %v844_v43 = vmul.f32 %v3052_v31, %v3578_v54 }
 0x170   : > { %v722_v55 = vpop.xlane.xlu1 %721  ;;  %v725_v18 = vpop.xlane.xlu0 %724  ;;  %v919_v29 = vadd.f32 %v3686_v8, %v881_v51  ;;  %v845_v22 = vmul.f32 %v3054_v5, %v3596_v14 }
 0x171   : > { %3067 = vrsqrt.f32 %v788_v12  ;;  %v758_v52 = vmul.f32 0.015625, %v722_v55  ;;  %v759_v23 = vmul.f32 0.015625, %v725_v18  ;;  %2698 = vmatmul.mubr.msk.f32.gmra.mxu0 %vm439_vm0, %v3763_v58  ;;  %950 = vst.msk [vmem:[%s3694_s22 + $0x88] sm:$0xff] %vm439_vm0, %v918_v47  ;;  %v882_v0 = vmul.f32 %v3680_v20, %v844_v43 }
 0x172   : > { %v3056_v11 = vpop.eup %3055  ;;  %3069 = vrsqrt.f32 %v789_v17  ;;  %2706 = vmatmul.mubr.msk.f32.gmra.mxu1 %vm439_vm0, %v918_v47  ;;  %1213 = vmatprep.mubr.f32.mxu0 %v3155_v28  ;;  %951 = vst.msk [vmem:[%s3694_s22 + $0x90] sm:$0xff] %vm439_vm0, %v919_v29  ;;  %v883_v54 = vmul.f32 %v3680_v20, %v845_v22 }
 0x173   : > { %v3058_v14 = vpop.eup %3057  ;;  %v790_v16 = vadd.f32 1e-05, %v758_v52  ;;  %v791_v9 = vadd.f32 1e-05, %v759_v23  ;;  %1261 = vmatprep.mubr.f32.mxu1 %v3155_v28  ;;  %v920_v58 = vadd.f32 %v3686_v8, %v882_v0  ;;  %v846_v46 = vmul.f32 %v3056_v11, %v3599_v15 }
 0x174   : > { %v728_v4 = vpop.xlane.xlu1 %727  ;;  %v921_v7 = vadd.f32 %v3686_v8, %v883_v54  ;;  %v847_v34 = vmul.f32 %v3058_v14, %v3615_v35 }
 0x175   : > { %3071 = vrsqrt.f32 %v790_v16  ;;  %v760_v39 = vmul.f32 0.015625, %v728_v4  ;;  %2699 = vmatmul.mubr.msk.f32.gmra.mxu0 %vm439_vm0, %v3767_v37  ;;  %952 = vst.msk [vmem:[%s3694_s22 + $0x98] sm:$0xff] %vm439_vm0, %v920_v58  ;;  %v884_v56 = vmul.f32 %v3680_v20, %v846_v46 }
 0x176   : > { %v3060_v33 = vpop.eup %3059  ;;  %3073 = vrsqrt.f32 %v791_v9  ;;  %2707 = vmatmul.mubr.msk.f32.gmra.mxu1 %vm439_vm0, %v919_v29  ;;  %1219 = vmatprep.mubr.f32.mxu0 %v3155_v28  ;;  %953 = vst.msk [vmem:[%s3694_s22 + $0xa0] sm:$0xff] %vm439_vm0, %v921_v7  ;;  %v885_v15 = vmul.f32 %v3680_v20, %v847_v34 }
 0x177   : > { %v3062_v35 = vpop.eup %3061  ;;  %v792_v21 = vadd.f32 1e-05, %v760_v39  ;;  %1267 = vmatprep.mubr.f32.mxu1 %v3155_v28  ;;  %v922_v37 = vadd.f32 %v3686_v8, %v884_v56  ;;  %v848_v27 = vmul.f32 %v3060_v33, %v3618_v38 }
 0x178   : > { %v923_v60 = vadd.f32 %v3686_v8, %v885_v15  ;;  %v849_v2 = vmul.f32 %v3062_v35, %v3628_v45 }
 0x179   : > { %3075 = vrsqrt.f32 %v792_v21  ;;  %2700 = vmatmul.mubr.msk.f32.gmra.mxu0 %vm439_vm0, %v3781_v19  ;;  %954 = vst.msk [vmem:[%s3694_s22 + $0xa8] sm:$0xff] %vm439_vm0, %v922_v37  ;;  %v886_v61 = vmul.f32 %v3680_v20, %v848_v27 }
 0x17a   : > { %v3064_v6 = vpop.eup %3063  ;;  %2708 = vmatmul.mubr.msk.f32.gmra.mxu1 %vm439_vm0, %v920_v58  ;;  %1225 = vmatprep.mubr.f32.mxu0 %v3155_v28  ;;  %955 = vst.msk [vmem:[%s3694_s22 + $0xb0] sm:$0xff] %vm439_vm0, %v923_v60  ;;  %v887_v38 = vmul.f32 %v3680_v20, %v849_v2 }
 0x17b   : > { %v3066_v45 = vpop.eup %3065  ;;  %1273 = vmatprep.mubr.f32.mxu1 %v3155_v28  ;;  %v924_v30 = vadd.f32 %v3686_v8, %v886_v61  ;;  %v850_v19 = vmul.f32 %v3064_v6, %v3631_v50 }
 0x17c   : > { %v925_v13 = vadd.f32 %v3686_v8, %v887_v38  ;;  %v851_v1 = vmul.f32 %v3066_v45, %v3640_v62 }
 0x17d   : > { %2701 = vmatmul.mubr.msk.f32.gmra.mxu0 %vm439_vm0, %v3785_v41  ;;  %956 = vst.msk [vmem:[%s3694_s22 + $0xb8] sm:$0xff] %vm439_vm0, %v924_v30  ;;  %v888_v42 = vmul.f32 %v3680_v20, %v850_v19 }
 0x17e   : > { %v3068_v25 = vpop.eup %3067  ;;  %2709 = vmatmul.mubr.msk.f32.gmra.mxu1 %vm439_vm0, %v921_v7  ;;  %1231 = vmatprep.mubr.f32.mxu0 %v3155_v28  ;;  %957 = vst.msk [vmem:[%s3694_s22 + $0xc0] sm:$0xff] %vm439_vm0, %v925_v13  ;;  %v889_v50 = vmul.f32 %v3680_v20, %v851_v1 }
 0x17f   : > { %v3070_v59 = vpop.eup %3069  ;;  %1279 = vmatprep.mubr.f32.mxu1 %v3155_v28  ;;  %v926_v62 = vadd.f32 %v3686_v8, %v888_v42  ;;  %v852_v41 = vmul.f32 %v3068_v25, %v3643_v49 }
 0x180   : > { %v927_v10 = vadd.f32 %v3686_v8, %v889_v50  ;;  %v853_v36 = vmul.f32 %v3070_v59, %v3652_v40 }
 0x181   : > { %2702 = vmatmul.mubr.msk.f32.gmra.mxu0 %vm439_vm0, %v3800_v26  ;;  %958 = vst.msk [vmem:[%s3694_s22 + $0xc8] sm:$0xff] %vm439_vm0, %v926_v62  ;;  %v890_v48 = vmul.f32 %v3680_v20, %v852_v41 }
 0x182   : > { %v3072_v63 = vpop.eup %3071  ;;  %2710 = vmatmul.mubr.msk.f32.gmra.mxu1 %vm439_vm0, %v922_v37  ;;  %1237 = vmatprep.mubr.f32.mxu0 %v3155_v28  ;;  %959 = vst.msk [vmem:[%s3694_s22 + $0xd0] sm:$0xff] %vm439_vm0, %v927_v10  ;;  %v891_v49 = vmul.f32 %v3680_v20, %v853_v36 }
 0x183   : > { %v3074_v3 = vpop.eup %3073  ;;  %1285 = vmatprep.mubr.f32.mxu1 %v3155_v28  ;;  %v928_v40 = vadd.f32 %v3686_v8, %v890_v48  ;;  %v854_v26 = vmul.f32 %v3072_v63, %v3655_v53 }
 0x184   : > { %v929_v31 = vadd.f32 %v3686_v8, %v891_v49  ;;  %v855_v51 = vmul.f32 %v3074_v3, %v3664_v32 }
 0x185   : > { %2703 = vmatmul.mubr.msk.f32.gmra.mxu0 %vm439_vm0, %v3805_v44  ;;  %960 = vst.msk [vmem:[%s3694_s22 + $0xd8] sm:$0xff] %vm439_vm0, %v928_v40  ;;  %v892_v5 = vmul.f32 %v3680_v20, %v854_v26 }
 0x186   : > { %v3076_v12 = vpop.eup %3075  ;;  %2711 = vmatmul.mubr.msk.f32.gmra.mxu1 %vm439_vm0, %v923_v60  ;;  %1243 = vmatprep.mubr.f32.mxu0 %v3155_v28  ;;  %961 = vst.msk [vmem:[%s3694_s22 + $0xe0] sm:$0xff] %vm439_vm0, %v929_v31  ;;  %v893_v53 = vmul.f32 %v3680_v20, %v855_v51 }
 0x187   : > { %1291 = vmatprep.mubr.f32.mxu1 %v3155_v28  ;;  %v930_v32 = vadd.f32 %v3686_v8, %v892_v5  ;;  %v856_v44 = vmul.f32 %v3076_v12, %v3667_v57  ;;  %v983_v57 = vlaneseq }
 0x188   : > { %v931_v17 = vadd.f32 %v3686_v8, %v893_v53 }
 0x189   : > { %2704 = vmatmul.mubr.msk.f32.gmra.mxu0 %vm439_vm0, %v3820_v24  ;;  %962 = vst.msk [vmem:[%s3694_s22 + $0xe8] sm:$0xff] %vm439_vm0, %v930_v32  ;;  %v894_v47 = vmul.f32 %v3680_v20, %v856_v44  ;;  %v984_v20 = vshrl.u32 %v983_v57, 7  ;;  %v981_v24 = vld [vmem:[%s5358_s4] sm:$0x3] }
 0x18a   : > { %2712 = vmatmul.mubr.msk.f32.gmra.mxu1 %vm439_vm0, %v924_v30  ;;  %963 = vst.msk [vmem:[%s3694_s22 + $0xf0] sm:$0xff] %vm439_vm0, %v931_v17 }
 0x18b   : > { %1297 = vmatprep.mubr.f32.mxu1 %v3155_v28  ;;  %v932_v43 = vadd.f32 %v3686_v8, %v894_v47  ;;  %v985_v8 = vsub.s32 0, %v984_v20  ;;  %v989_v55 = vsub.s32 1, %v984_v20 }
 0x18d   : > { %964 = vst.msk [vmem:[%s3694_s22 + $0xf8] sm:$0xff] %vm439_vm0, %v932_v43  ;;  %v3960_v18 = vrot.slane %v981_v24, %v985_v8  ;;  %v3962_v29 = vrot.slane %v981_v24, %v989_v55  ;;  %s3158_s22 = smov 96  }
 0x18e   : > { %2713 = vmatmul.mubr.msk.f32.gmra.mxu1 %vm439_vm0, %v925_v13 }
 0x18f   : > { %1303 = vmatprep.mubr.f32.mxu1 %v3155_v28 }
 0x192   : > { %2714 = vmatmul.mubr.msk.f32.gmra.mxu1 %vm439_vm0, %v926_v62 }
 0x193   : > { %1309 = vmatprep.mubr.f32.mxu1 %v3155_v28 }
 0x196   : > { %2715 = vmatmul.mubr.msk.f32.gmra.mxu1 %vm439_vm0, %v927_v10 }
 0x197   : > { %1315 = vmatprep.mubr.f32.mxu1 %v3155_v28 }
 0x19a   : > { %2716 = vmatmul.mubr.msk.f32.gmra.mxu1 %vm439_vm0, %v928_v40 }
 0x19b   : > { %1321 = vmatprep.mubr.f32.mxu1 %v3155_v28 }
 0x19e   : > { %2717 = vmatmul.mubr.msk.f32.gmra.mxu1 %vm439_vm0, %v929_v31 }
 0x19f   : > { %1327 = vmatprep.mubr.f32.mxu1 %v3155_v28 }
 0x1a2   : > { %2718 = vmatmul.mubr.msk.f32.gmra.mxu1 %vm439_vm0, %v930_v32 }
 0x1a3   : > { %1333 = vmatprep.mubr.f32.mxu1 %v3155_v28 }
 0x1a6   : > { %2719 = vmatmul.mubr.msk.f32.gmra.mxu1 %vm439_vm0, %v931_v17 }
 0x1a7   : > { %1339 = vmatprep.mubr.f32.mxu1 %v3155_v28 }
 0x1aa   : > { %2720 = vmatmul.mubr.msk.f32.gmra.mxu1 %vm439_vm0, %v932_v43 }
 0x20d   : > { %v1155_v28 = vpop.f32.mrf.mxu0 }
 0x20e   : > { %v3970_v22 = vadd.f32 %v1155_v28, %v3960_v18 }
 0x20f   : > { %v1157_v52 = vpop.f32.mrf.mxu0 }
 0x210   : > { %1539 = vst.msk [vmem:[%s3967_s11] sm:$0xff] %vm1538_vm1, %v3970_v22  ;;  %v3981_v23 = vadd.f32 %v1157_v52, %v3962_v29  ;;  %1378 = vrot.lane.b32.xlu0 %v3970_v22, %s3156_s16 }
 0x211   : > { %v1161_v0 = vpop.f32.mrf.mxu0 }
 0x212   : > { %1575 = vst.msk [vmem:[%s3975_s19] sm:$0xff] %vm1538_vm1, %v3981_v23  ;;  %v3989_v11 = vadd.f32 %v1161_v0, %v3960_v18 }
 0x213   : > { %v1163_v54 = vpop.f32.mrf.mxu0 }
 0x214   : > { %1540 = vst.msk [vmem:[%s3967_s11 + $0x8] sm:$0xff] %vm1538_vm1, %v3989_v11  ;;  %v3995_v14 = vadd.f32 %v1163_v54, %v3962_v29  ;;  %1380 = vrot.lane.b32.xlu1 %v3989_v11, %s3156_s16 }
 0x215   : > { %v1167_v16 = vpop.f32.mrf.mxu0 }
 0x216   : > { %1576 = vst.msk [vmem:[%s3975_s19 + $0x8] sm:$0xff] %vm1538_vm1, %v3995_v14  ;;  %v4003_v9 = vadd.f32 %v1167_v16, %v3960_v18 }
 0x217   : > { %v1169_v58 = vpop.f32.mrf.mxu0 }
 0x218   : > { %1541 = vst.msk [vmem:[%s3967_s11 + $0x10] sm:$0xff] %vm1538_vm1, %v4003_v9  ;;  %v4009_v46 = vadd.f32 %v1169_v58, %v3962_v29 }
 0x219   : > { %v1173_v4 = vpop.f32.mrf.mxu0 }
 0x21a   : > { %1577 = vst.msk [vmem:[%s3975_s19 + $0x10] sm:$0xff] %vm1538_vm1, %v4009_v46  ;;  %v4015_v7 = vadd.f32 %v1173_v4, %v3960_v18 }
 0x21b   : > { %v1175_v34 = vpop.f32.mrf.mxu0 }
 0x21c   : > { %1542 = vst.msk [vmem:[%s3967_s11 + $0x18] sm:$0xff] %vm1538_vm1, %v4015_v7  ;;  %v4021_v39 = vadd.f32 %v1175_v34, %v3962_v29 }
 0x21d   : > { %v1179_v56 = vpop.f32.mrf.mxu0 }
 0x21e   : > { %1578 = vst.msk [vmem:[%s3975_s19 + $0x18] sm:$0xff] %vm1538_vm1, %v4021_v39  ;;  %v4027_v33 = vadd.f32 %v1179_v56, %v3960_v18 }
 0x21f   : > { %v1181_v15 = vpop.f32.mrf.mxu0 }
 0x220   : > { %1543 = vst.msk [vmem:[%s3967_s11 + $0x20] sm:$0xff] %vm1538_vm1, %v4027_v33  ;;  %v4033_v35 = vadd.f32 %v1181_v15, %v3962_v29 }
 0x221   : > { %v1185_v21 = vpop.f32.mrf.mxu0 }
 0x222   : > { %1579 = vst.msk [vmem:[%s3975_s19 + $0x20] sm:$0xff] %vm1538_vm1, %v4033_v35  ;;  %v4039_v37 = vadd.f32 %v1185_v21, %v3960_v18 }
 0x223   : > { %v1187_v27 = vpop.f32.mrf.mxu0 }
 0x224   : > { %1544 = vst.msk [vmem:[%s3967_s11 + $0x28] sm:$0xff] %vm1538_vm1, %v4039_v37  ;;  %v4045_v60 = vadd.f32 %v1187_v27, %v3962_v29 }
 0x225   : > { %v1191_v2 = vpop.f32.mrf.mxu0 }
 0x226   : > { %1580 = vst.msk [vmem:[%s3975_s19 + $0x28] sm:$0xff] %vm1538_vm1, %v4045_v60  ;;  %v4051_v61 = vadd.f32 %v1191_v2, %v3960_v18 }
 0x227   : > { %v1193_v6 = vpop.f32.mrf.mxu0 }
 0x228   : > { %1545 = vst.msk [vmem:[%s3967_s11 + $0x30] sm:$0xff] %vm1538_vm1, %v4051_v61  ;;  %v4057_v38 = vadd.f32 %v1193_v6, %v3962_v29 }
 0x229   : > { %v1197_v45 = vpop.f32.mrf.mxu0 }
 0x22a   : > { %1581 = vst.msk [vmem:[%s3975_s19 + $0x30] sm:$0xff] %vm1538_vm1, %v4057_v38  ;;  %v4063_v30 = vadd.f32 %v1197_v45, %v3960_v18 }
 0x22b   : > { %v1199_v19 = vpop.f32.mrf.mxu0 }
 0x22c   : > { %1546 = vst.msk [vmem:[%s3967_s11 + $0x38] sm:$0xff] %vm1538_vm1, %v4063_v30  ;;  %v4069_v13 = vadd.f32 %v1199_v19, %v3962_v29 }
 0x22d   : > { %v1203_v1 = vpop.f32.mrf.mxu0 }
 0x22e   : > { %1582 = vst.msk [vmem:[%s3975_s19 + $0x38] sm:$0xff] %vm1538_vm1, %v4069_v13  ;;  %v4075_v42 = vadd.f32 %v1203_v1, %v3960_v18  ;;  %v1251_v25 = vpop.f32.mrf.mxu1 }
 0x22f   : > { %v4078_v50 = vadd.f32 %v1251_v25, %v3960_v18  ;;  %v1205_v59 = vpop.f32.mrf.mxu0 }
 0x230   : > { %1547 = vst.msk [vmem:[%s3967_s11 + $0x40] sm:$0xff] %vm1538_vm1, %v4075_v42  ;;  %v4084_v62 = vadd.f32 %v1205_v59, %v3962_v29  ;;  %v1253_v41 = vpop.f32.mrf.mxu1 }
 0x231   : > { %1555 = vst.msk [vmem:[%s3967_s11 + $0x80] sm:$0xff] %vm1538_vm1, %v4078_v50  ;;  %v4090_v10 = vadd.f32 %v1253_v41, %v3962_v29  ;;  %1410 = vrot.lane.b32.xlu0 %v4078_v50, %s3156_s16  ;;  %v1209_v36 = vpop.f32.mrf.mxu0 }
 0x232   : > { %1583 = vst.msk [vmem:[%s3975_s19 + $0x40] sm:$0xff] %vm1538_vm1, %v4084_v62  ;;  %v4098_v48 = vadd.f32 %v1209_v36, %v3960_v18  ;;  %v1257_v63 = vpop.f32.mrf.mxu1 }
 0x233   : > { %1591 = vst.msk [vmem:[%s3975_s19 + $0x80] sm:$0xff] %vm1538_vm1, %v4090_v10  ;;  %v4104_v49 = vadd.f32 %v1257_v63, %v3960_v18  ;;  %v1211_v3 = vpop.f32.mrf.mxu0 }
 0x234   : > { %1548 = vst.msk [vmem:[%s3967_s11 + $0x48] sm:$0xff] %vm1538_vm1, %v4098_v48  ;;  %v4110_v40 = vadd.f32 %v1211_v3, %v3962_v29  ;;  %v1259_v26 = vpop.f32.mrf.mxu1 }
 0x235   : > { %1556 = vst.msk [vmem:[%s3967_s11 + $0x88] sm:$0xff] %vm1538_vm1, %v4104_v49  ;;  %v4116_v31 = vadd.f32 %v1259_v26, %v3962_v29  ;;  %1412 = vrot.lane.b32.xlu1 %v4104_v49, %s3156_s16  ;;  %1607 = vrot.lane.b32.xlu0 %v3970_v22, %s3157_s21  ;;  %v1215_v51 = vpop.f32.mrf.mxu0 }
 0x236   : > { %1584 = vst.msk [vmem:[%s3975_s19 + $0x48] sm:$0xff] %vm1538_vm1, %v4110_v40  ;;  %v4126_v5 = vadd.f32 %v1215_v51, %v3960_v18  ;;  %v1263_v12 = vpop.f32.mrf.mxu1 }
 0x237   : > { %1592 = vst.msk [vmem:[%s3975_s19 + $0x88] sm:$0xff] %vm1538_vm1, %v4116_v31  ;;  %v4132_v53 = vadd.f32 %v1263_v12, %v3960_v18  ;;  %v1217_v32 = vpop.f32.mrf.mxu0 }
 0x238   : > { %1549 = vst.msk [vmem:[%s3967_s11 + $0x50] sm:$0xff] %vm1538_vm1, %v4126_v5  ;;  %v4138_v44 = vadd.f32 %v1217_v32, %v3962_v29  ;;  %v1265_v17 = vpop.f32.mrf.mxu1 }
 0x239   : > { %1557 = vst.msk [vmem:[%s3967_s11 + $0x90] sm:$0xff] %vm1538_vm1, %v4132_v53  ;;  %v4144_v47 = vadd.f32 %v1265_v17, %v3962_v29  ;;  %1609 = vrot.lane.b32.xlu1 %v3989_v11, %s3157_s21  ;;  %1639 = vrot.lane.b32.xlu0 %v4078_v50, %s3157_s21  ;;  %v1221_v43 = vpop.f32.mrf.mxu0 }
 0x23a   : > { %1585 = vst.msk [vmem:[%s3975_s19 + $0x50] sm:$0xff] %vm1538_vm1, %v4138_v44  ;;  %v4154_v57 = vadd.f32 %v1221_v43, %v3960_v18  ;;  %v1269_v20 = vpop.f32.mrf.mxu1 }
 0x23b   : > { %1593 = vst.msk [vmem:[%s3975_s19 + $0x90] sm:$0xff] %vm1538_vm1, %v4144_v47  ;;  %v4160_v8 = vadd.f32 %v1269_v20, %v3960_v18  ;;  %v1223_v24 = vpop.f32.mrf.mxu0 }
 0x23c   : > { %1550 = vst.msk [vmem:[%s3967_s11 + $0x58] sm:$0xff] %vm1538_vm1, %v4154_v57  ;;  %v4166_v55 = vadd.f32 %v1223_v24, %v3962_v29  ;;  %v1271_v28 = vpop.f32.mrf.mxu1 }
 0x23d   : > { %1558 = vst.msk [vmem:[%s3967_s11 + $0x98] sm:$0xff] %vm1538_vm1, %v4160_v8  ;;  %v4172_v52 = vadd.f32 %v1271_v28, %v3962_v29  ;;  %1641 = vrot.lane.b32.xlu1 %v4104_v49, %s3157_s21  ;;  %1902 = vrot.lane.b32.xlu0 %v3970_v22, %s3158_s22  ;;  %v1227_v0 = vpop.f32.mrf.mxu0 }
 0x23e   : > { %1586 = vst.msk [vmem:[%s3975_s19 + $0x58] sm:$0xff] %vm1538_vm1, %v4166_v55  ;;  %v4182_v54 = vadd.f32 %v1227_v0, %v3960_v18  ;;  %v1275_v16 = vpop.f32.mrf.mxu1 }
 0x23f   : > { %1594 = vst.msk [vmem:[%s3975_s19 + $0x98] sm:$0xff] %vm1538_vm1, %v4172_v52  ;;  %v4188_v58 = vadd.f32 %v1275_v16, %v3960_v18  ;;  %v1229_v4 = vpop.f32.mrf.mxu0 }
 0x240   : > { %1551 = vst.msk [vmem:[%s3967_s11 + $0x60] sm:$0xff] %vm1538_vm1, %v4182_v54  ;;  %v4194_v34 = vadd.f32 %v1229_v4, %v3962_v29  ;;  %v1277_v56 = vpop.f32.mrf.mxu1 }
 0x241   : > { %1559 = vst.msk [vmem:[%s3967_s11 + $0xa0] sm:$0xff] %vm1538_vm1, %v4188_v58  ;;  %v4200_v15 = vadd.f32 %v1277_v56, %v3962_v29  ;;  %1904 = vrot.lane.b32.xlu1 %v3989_v11, %s3158_s22  ;;  %1934 = vrot.lane.b32.xlu0 %v4078_v50, %s3158_s22  ;;  %v1233_v21 = vpop.f32.mrf.mxu0 }
 0x242   : > { %1587 = vst.msk [vmem:[%s3975_s19 + $0x60] sm:$0xff] %vm1538_vm1, %v4194_v34  ;;  %v4210_v27 = vadd.f32 %v1233_v21, %v3960_v18  ;;  %v1281_v2 = vpop.f32.mrf.mxu1 }
 0x243   : > { %1595 = vst.msk [vmem:[%s3975_s19 + $0xa0] sm:$0xff] %vm1538_vm1, %v4200_v15  ;;  %v4216_v6 = vadd.f32 %v1281_v2, %v3960_v18  ;;  %v1235_v45 = vpop.f32.mrf.mxu0 }
 0x244   : > { %1552 = vst.msk [vmem:[%s3967_s11 + $0x68] sm:$0xff] %vm1538_vm1, %v4210_v27  ;;  %v4222_v19 = vadd.f32 %v1235_v45, %v3962_v29  ;;  %v1283_v1 = vpop.f32.mrf.mxu1 }
 0x245   : > { %1560 = vst.msk [vmem:[%s3967_s11 + $0xa8] sm:$0xff] %vm1538_vm1, %v4216_v6  ;;  %v4228_v25 = vadd.f32 %v1283_v1, %v3962_v29  ;;  %1936 = vrot.lane.b32.xlu1 %v4104_v49, %s3158_s22  ;;  %2165 = vrot.lane.b32.xlu0 %v3970_v22, %s3159_s20  ;;  %v1239_v59 = vpop.f32.mrf.mxu0 }
 0x246   : > { %1588 = vst.msk [vmem:[%s3975_s19 + $0x68] sm:$0xff] %vm1538_vm1, %v4222_v19  ;;  %v4238_v41 = vadd.f32 %v1239_v59, %v3960_v18  ;;  %v1287_v36 = vpop.f32.mrf.mxu1 }
 0x247   : > { %1596 = vst.msk [vmem:[%s3975_s19 + $0xa8] sm:$0xff] %vm1538_vm1, %v4228_v25  ;;  %v4244_v63 = vadd.f32 %v1287_v36, %v3960_v18  ;;  %v1241_v3 = vpop.f32.mrf.mxu0 }
 0x248   : > { %1553 = vst.msk [vmem:[%s3967_s11 + $0x70] sm:$0xff] %vm1538_vm1, %v4238_v41  ;;  %v4250_v22 = vadd.f32 %v1241_v3, %v3962_v29  ;;  %v1289_v26 = vpop.f32.mrf.mxu1 }
 0x249   : > { %1561 = vst.msk [vmem:[%s3967_s11 + $0xb0] sm:$0xff] %vm1538_vm1, %v4244_v63  ;;  %v4256_v51 = vadd.f32 %v1289_v26, %v3962_v29  ;;  %2167 = vrot.lane.b32.xlu1 %v3989_v11, %s3159_s20  ;;  %2197 = vrot.lane.b32.xlu0 %v4078_v50, %s3159_s20  ;;  %v1245_v12 = vpop.f32.mrf.mxu0 }
 0x24a   : > { %1589 = vst.msk [vmem:[%s3975_s19 + $0x70] sm:$0xff] %vm1538_vm1, %v4250_v22  ;;  %v4266_v32 = vadd.f32 %v1245_v12, %v3960_v18  ;;  %v1293_v17 = vpop.f32.mrf.mxu1 }
 0x24b   : > { %1597 = vst.msk [vmem:[%s3975_s19 + $0xb0] sm:$0xff] %vm1538_vm1, %v4256_v51  ;;  %v4272_v43 = vadd.f32 %v1293_v17, %v3960_v18  ;;  %v1247_v11 = vpop.f32.mrf.mxu0 }
 0x24c   : > { %1554 = vst.msk [vmem:[%s3967_s11 + $0x78] sm:$0xff] %vm1538_vm1, %v4266_v32  ;;  %v4278_v50 = vadd.f32 %v1247_v11, %v3962_v29  ;;  %v1295_v20 = vpop.f32.mrf.mxu1 }
 0x24d   : > { %1562 = vst.msk [vmem:[%s3967_s11 + $0xb8] sm:$0xff] %vm1538_vm1, %v4272_v43  ;;  %v4284_v24 = vadd.f32 %v1295_v20, %v3962_v29  ;;  %2199 = vrot.lane.b32.xlu1 %v4104_v49, %s3159_s20  ;;  %1773 = vrot.lane.b32.xlu0 %v3981_v23, %s3157_s21 }
 0x24e   : > { %1590 = vst.msk [vmem:[%s3975_s19 + $0x78] sm:$0xff] %vm1538_vm1, %v4278_v50  ;;  %v1299_v28 = vpop.f32.mrf.mxu1 }
 0x24f   : > { %1598 = vst.msk [vmem:[%s3975_s19 + $0xb8] sm:$0xff] %vm1538_vm1, %v4284_v24  ;;  %v4297_v0 = vadd.f32 %v1299_v28, %v3960_v18 }
 0x250   : > { %v1301_v16 = vpop.f32.mrf.mxu1 }
 0x251   : > { %1563 = vst.msk [vmem:[%s3967_s11 + $0xc0] sm:$0xff] %vm1538_vm1, %v4297_v0  ;;  %v4303_v49 = vadd.f32 %v1301_v16, %v3962_v29  ;;  %1775 = vrot.lane.b32.xlu1 %v3995_v14, %s3157_s21  ;;  %1805 = vrot.lane.b32.xlu0 %v4090_v10, %s3157_s21 }
 0x252   : > { %v1305_v4 = vpop.f32.mrf.mxu1 }
 0x253   : > { %1599 = vst.msk [vmem:[%s3975_s19 + $0xc0] sm:$0xff] %vm1538_vm1, %v4303_v49  ;;  %v4313_v56 = vadd.f32 %v1305_v4, %v3960_v18 }
 0x254   : > { %v1307_v21 = vpop.f32.mrf.mxu1 }
 0x255   : > { %1564 = vst.msk [vmem:[%s3967_s11 + $0xc8] sm:$0xff] %vm1538_vm1, %v4313_v56  ;;  %v4319_v2 = vadd.f32 %v1307_v21, %v3962_v29  ;;  %1807 = vrot.lane.b32.xlu1 %v4116_v31, %s3157_s21  ;;  %2036 = vrot.lane.b32.xlu0 %v3981_v23, %s3158_s22 }
 0x256   : > { %v1311_v45 = vpop.f32.mrf.mxu1 }
 0x257   : > { %1600 = vst.msk [vmem:[%s3975_s19 + $0xc8] sm:$0xff] %vm1538_vm1, %v4319_v2  ;;  %v4329_v1 = vadd.f32 %v1311_v45, %v3960_v18 }
 0x258   : > { %v1313_v59 = vpop.f32.mrf.mxu1 }
 0x259   : > { %1565 = vst.msk [vmem:[%s3967_s11 + $0xd0] sm:$0xff] %vm1538_vm1, %v4329_v1  ;;  %v4335_v36 = vadd.f32 %v1313_v59, %v3962_v29  ;;  %2038 = vrot.lane.b32.xlu1 %v3995_v14, %s3158_s22  ;;  %2068 = vrot.lane.b32.xlu0 %v4090_v10, %s3158_s22 }
 0x25a   : > { %v1317_v3 = vpop.f32.mrf.mxu1 }
 0x25b   : > { %1601 = vst.msk [vmem:[%s3975_s19 + $0xd0] sm:$0xff] %vm1538_vm1, %v4335_v36  ;;  %v4345_v26 = vadd.f32 %v1317_v3, %v3960_v18 }
 0x25c   : > { %v1319_v12 = vpop.f32.mrf.mxu1 }
 0x25d   : > { %1566 = vst.msk [vmem:[%s3967_s11 + $0xd8] sm:$0xff] %vm1538_vm1, %v4345_v26  ;;  %v4351_v17 = vadd.f32 %v1319_v12, %v3962_v29  ;;  %2070 = vrot.lane.b32.xlu1 %v4116_v31, %s3158_s22  ;;  %2299 = vrot.lane.b32.xlu0 %v3981_v23, %s3159_s20 }
 0x25e   : > { %v1323_v11 = vpop.f32.mrf.mxu1 }
 0x25f   : > { %1602 = vst.msk [vmem:[%s3975_s19 + $0xd8] sm:$0xff] %vm1538_vm1, %v4351_v17  ;;  %v4361_v20 = vadd.f32 %v1323_v11, %v3960_v18 }
 0x260   : > { %v1325_v28 = vpop.f32.mrf.mxu1 }
 0x261   : > { %1567 = vst.msk [vmem:[%s3967_s11 + $0xe0] sm:$0xff] %vm1538_vm1, %v4361_v20  ;;  %v4367_v16 = vadd.f32 %v1325_v28, %v3962_v29  ;;  %2301 = vrot.lane.b32.xlu1 %v3995_v14, %s3159_s20  ;;  %1414 = vrot.lane.b32.xlu0 %v4132_v53, %s3156_s16 }
 0x262   : > { %v1329_v23 = vpop.f32.mrf.mxu1 }
 0x263   : > { %1603 = vst.msk [vmem:[%s3975_s19 + $0xe0] sm:$0xff] %vm1538_vm1, %v4367_v16  ;;  %v4377_v4 = vadd.f32 %v1329_v23, %v3960_v18 }
 0x264   : > { %v1331_v21 = vpop.f32.mrf.mxu1 }
 0x265   : > { %1568 = vst.msk [vmem:[%s3967_s11 + $0xe8] sm:$0xff] %vm1538_vm1, %v4377_v4  ;;  %v4383_v45 = vadd.f32 %v1331_v21, %v3962_v29  ;;  %1382 = vrot.lane.b32.xlu1 %v4003_v9, %s3156_s16  ;;  %1611 = vrot.lane.b32.xlu0 %v4003_v9, %s3157_s21 }
 0x266   : > { %v1335_v14 = vpop.f32.mrf.mxu1 }
 0x267   : > { %1604 = vst.msk [vmem:[%s3975_s19 + $0xe8] sm:$0xff] %vm1538_vm1, %v4383_v45  ;;  %v4393_v59 = vadd.f32 %v1335_v14, %v3960_v18 }
 0x268   : > { %v1337_v3 = vpop.f32.mrf.mxu1 }
 0x269   : > { %1569 = vst.msk [vmem:[%s3967_s11 + $0xf0] sm:$0xff] %vm1538_vm1, %v4393_v59  ;;  %v4399_v12 = vadd.f32 %v1337_v3, %v3962_v29  ;;  %1384 = vrot.lane.b32.xlu1 %v4015_v7, %s3156_s16  ;;  %1643 = vrot.lane.b32.xlu0 %v4132_v53, %s3157_s21 }
 0x26a   : > { %v1341_v11 = vpop.f32.mrf.mxu1 }
 0x26b   : > { %1605 = vst.msk [vmem:[%s3975_s19 + $0xf0] sm:$0xff] %vm1538_vm1, %v4399_v12  ;;  %v4409_v28 = vadd.f32 %v1341_v11, %v3960_v18 }
 0x26c   : > { %v1343_v23 = vpop.f32.mrf.mxu1 }
 0x26d   : > { %1570 = vst.msk [vmem:[%s3967_s11 + $0xf8] sm:$0xff] %vm1538_vm1, %v4409_v28  ;;  %v4415_v21 = vadd.f32 %v1343_v23, %v3962_v29  ;;  %1416 = vrot.lane.b32.xlu1 %v4160_v8, %s3156_s16  ;;  %1906 = vrot.lane.b32.xlu0 %v4003_v9, %s3158_s22 }
 0x26f   : > { %1606 = vst.msk [vmem:[%s3975_s19 + $0xf8] sm:$0xff] %vm1538_vm1, %v4415_v21 }
 0x271   : > { %1613 = vrot.lane.b32.xlu1 %v4015_v7, %s3157_s21  ;;  %1938 = vrot.lane.b32.xlu0 %v4132_v53, %s3158_s22 }
 0x275   : > { %1645 = vrot.lane.b32.xlu1 %v4160_v8, %s3157_s21  ;;  %2169 = vrot.lane.b32.xlu0 %v4003_v9, %s3159_s20 }
 0x279   : > { %1908 = vrot.lane.b32.xlu1 %v4015_v7, %s3158_s22  ;;  %2201 = vrot.lane.b32.xlu0 %v4132_v53, %s3159_s20 }
 0x27d   : > { %1940 = vrot.lane.b32.xlu1 %v4160_v8, %s3158_s22  ;;  %1777 = vrot.lane.b32.xlu0 %v4009_v46, %s3157_s21 }
 0x281   : > { %2171 = vrot.lane.b32.xlu1 %v4015_v7, %s3159_s20  ;;  %1809 = vrot.lane.b32.xlu0 %v4144_v47, %s3157_s21 }
 0x282   : > { %v4472_v18 = vpop.permute.xlu0 %1378 }
 0x285   : > { %2203 = vrot.lane.b32.xlu1 %v4160_v8, %s3159_s20  ;;  %2040 = vrot.lane.b32.xlu0 %v4009_v46, %s3158_s22 }
 0x286   : > { %v4478_v29 = vpop.permute.xlu1 %1380 }
 0x289   : > { %1779 = vrot.lane.b32.xlu1 %v4021_v39, %s3157_s21  ;;  %2072 = vrot.lane.b32.xlu0 %v4144_v47, %s3158_s22 }
 0x28d   : > { %1811 = vrot.lane.b32.xlu1 %v4172_v52, %s3157_s21  ;;  %2303 = vrot.lane.b32.xlu0 %v4009_v46, %s3159_s20 }
 0x291   : > { %2042 = vrot.lane.b32.xlu1 %v4021_v39, %s3158_s22  ;;  %1386 = vrot.lane.b32.xlu0 %v4027_v33, %s3156_s16 }
 0x295   : > { %2074 = vrot.lane.b32.xlu1 %v4172_v52, %s3158_s22  ;;  %1418 = vrot.lane.b32.xlu0 %v4188_v58, %s3156_s16 }
 0x299   : > { %2305 = vrot.lane.b32.xlu1 %v4021_v39, %s3159_s20  ;;  %1615 = vrot.lane.b32.xlu0 %v4027_v33, %s3157_s21 }
 0x29d   : > { %1388 = vrot.lane.b32.xlu1 %v4039_v37, %s3156_s16  ;;  %1647 = vrot.lane.b32.xlu0 %v4188_v58, %s3157_s21 }
 0x2a1   : > { %1420 = vrot.lane.b32.xlu1 %v4216_v6, %s3156_s16  ;;  %1910 = vrot.lane.b32.xlu0 %v4027_v33, %s3158_s22 }
 0x2a3   : > { %v4480_v9 = vpop.permute.xlu0 %1410 }
 0x2a5   : > { %1617 = vrot.lane.b32.xlu1 %v4039_v37, %s3157_s21  ;;  %1942 = vrot.lane.b32.xlu0 %v4188_v58, %s3158_s22 }
 0x2a7   : > { %v4486_v46 = vpop.permute.xlu1 %1412  ;;  %v1608_v7 = vpop.permute.xlu0 %1607 }
 0x2a8   : > { %2721 = vst.msk [vmem:[%s3967_s11 + $0x100] sm:$0xff] %vm1538_vm1, %v1608_v7 }
 0x2a9   : > { %1649 = vrot.lane.b32.xlu1 %v4216_v6, %s3157_s21  ;;  %2173 = vrot.lane.b32.xlu0 %v4027_v33, %s3159_s20 }
 0x2ab   : > { %v1610_v39 = vpop.permute.xlu1 %1609  ;;  %v1640_v53 = vpop.permute.xlu0 %1639 }
 0x2ac   : > { %2722 = vst.msk [vmem:[%s3967_s11 + $0x108] sm:$0xff] %vm1538_vm1, %v1610_v39  ;;  %2737 = vst.msk [vmem:[%s3967_s11 + $0x180] sm:$0xff] %vm1538_vm1, %v1640_v53 }
 0x2ad   : > { %1912 = vrot.lane.b32.xlu1 %v4039_v37, %s3158_s22  ;;  %2205 = vrot.lane.b32.xlu0 %v4188_v58, %s3159_s20 }
 0x2af   : > { %v1642_v8 = vpop.permute.xlu1 %1641  ;;  %v1903_v14 = vpop.permute.xlu0 %1902 }
 0x2b0   : > { %2738 = vst.msk [vmem:[%s3967_s11 + $0x188] sm:$0xff] %vm1538_vm1, %v1642_v8  ;;  %2789 = vst.msk [vmem:[%s3967_s11 + $0x200] sm:$0xff] %vm1538_vm1, %v1903_v14 }
 0x2b1   : > { %1944 = vrot.lane.b32.xlu1 %v4216_v6, %s3158_s22  ;;  %1781 = vrot.lane.b32.xlu0 %v4033_v35, %s3157_s21 }
 0x2b3   : > { %v1905_v33 = vpop.permute.xlu1 %1904  ;;  %v1935_v3 = vpop.permute.xlu0 %1934 }
 0x2b4   : > { %2790 = vst.msk [vmem:[%s3967_s11 + $0x208] sm:$0xff] %vm1538_vm1, %v1905_v33  ;;  %2805 = vst.msk [vmem:[%s3967_s11 + $0x280] sm:$0xff] %vm1538_vm1, %v1935_v3 }
 0x2b5   : > { %2175 = vrot.lane.b32.xlu1 %v4039_v37, %s3159_s20  ;;  %1813 = vrot.lane.b32.xlu0 %v4200_v15, %s3157_s21 }
 0x2b7   : > { %v1937_v58 = vpop.permute.xlu1 %1936  ;;  %v2166_v11 = vpop.permute.xlu0 %2165 }
 0x2b8   : > { %2806 = vst.msk [vmem:[%s3967_s11 + $0x288] sm:$0xff] %vm1538_vm1, %v1937_v58  ;;  %2857 = vst.msk [vmem:[%s3967_s11 + $0x300] sm:$0xff] %vm1538_vm1, %v2166_v11 }
 0x2b9   : > { %2207 = vrot.lane.b32.xlu1 %v4216_v6, %s3159_s20  ;;  %2044 = vrot.lane.b32.xlu0 %v4033_v35, %s3158_s22 }
 0x2bb   : > { %v2168_v37 = vpop.permute.xlu1 %2167  ;;  %v2198_v23 = vpop.permute.xlu0 %2197 }
 0x2bc   : > { %2858 = vst.msk [vmem:[%s3967_s11 + $0x308] sm:$0xff] %vm1538_vm1, %v2168_v37  ;;  %2873 = vst.msk [vmem:[%s3967_s11 + $0x380] sm:$0xff] %vm1538_vm1, %v2198_v23 }
 0x2bd   : > { %1783 = vrot.lane.b32.xlu1 %v4045_v60, %s3157_s21  ;;  %2076 = vrot.lane.b32.xlu0 %v4200_v15, %s3158_s22 }
 0x2bf   : > { %v2200_v6 = vpop.permute.xlu1 %2199  ;;  %v1774_v7 = vpop.permute.xlu0 %1773 }
 0x2c0   : > { %2874 = vst.msk [vmem:[%s3967_s11 + $0x388] sm:$0xff] %vm1538_vm1, %v2200_v6  ;;  %2757 = vst.msk [vmem:[%s3975_s19 + $0x100] sm:$0xff] %vm1538_vm1, %v1774_v7 }
 0x2c1   : > { %1815 = vrot.lane.b32.xlu1 %v4228_v25, %s3157_s21  ;;  %1390 = vrot.lane.b32.xlu0 %v4051_v61, %s3156_s16 }
 0x2c3   : > { %v1776_v39 = vpop.permute.xlu1 %1775  ;;  %v1806_v53 = vpop.permute.xlu0 %1805 }
 0x2c4   : > { %2758 = vst.msk [vmem:[%s3975_s19 + $0x108] sm:$0xff] %vm1538_vm1, %v1776_v39  ;;  %2773 = vst.msk [vmem:[%s3975_s19 + $0x180] sm:$0xff] %vm1538_vm1, %v1806_v53 }
 0x2c5   : > { %2046 = vrot.lane.b32.xlu1 %v4045_v60, %s3158_s22  ;;  %1422 = vrot.lane.b32.xlu0 %v4244_v63, %s3156_s16 }
 0x2c7   : > { %v1808_v8 = vpop.permute.xlu1 %1807  ;;  %v2037_v14 = vpop.permute.xlu0 %2036 }
 0x2c8   : > { %2774 = vst.msk [vmem:[%s3975_s19 + $0x188] sm:$0xff] %vm1538_vm1, %v1808_v8  ;;  %2825 = vst.msk [vmem:[%s3975_s19 + $0x200] sm:$0xff] %vm1538_vm1, %v2037_v14 }
 0x2c9   : > { %2078 = vrot.lane.b32.xlu1 %v4228_v25, %s3158_s22  ;;  %1619 = vrot.lane.b32.xlu0 %v4051_v61, %s3157_s21 }
 0x2cb   : > { %v2039_v33 = vpop.permute.xlu1 %2038  ;;  %v2069_v3 = vpop.permute.xlu0 %2068 }
 0x2cc   : > { %2826 = vst.msk [vmem:[%s3975_s19 + $0x208] sm:$0xff] %vm1538_vm1, %v2039_v33  ;;  %2841 = vst.msk [vmem:[%s3975_s19 + $0x280] sm:$0xff] %vm1538_vm1, %v2069_v3 }
 0x2cd   : > { %1392 = vrot.lane.b32.xlu1 %v4063_v30, %s3156_s16  ;;  %1651 = vrot.lane.b32.xlu0 %v4244_v63, %s3157_s21 }
 0x2cf   : > { %v2071_v58 = vpop.permute.xlu1 %2070  ;;  %v2300_v11 = vpop.permute.xlu0 %2299 }
 0x2d0   : > { %2842 = vst.msk [vmem:[%s3975_s19 + $0x288] sm:$0xff] %vm1538_vm1, %v2071_v58  ;;  %2893 = vst.msk [vmem:[%s3975_s19 + $0x300] sm:$0xff] %vm1538_vm1, %v2300_v11 }
 0x2d1   : > { %1424 = vrot.lane.b32.xlu1 %v4272_v43, %s3156_s16  ;;  %1914 = vrot.lane.b32.xlu0 %v4051_v61, %s3158_s22 }
 0x2d3   : > { %v2302_v37 = vpop.permute.xlu1 %2301  ;;  %v4574_v23 = vpop.permute.xlu0 %1414 }
 0x2d4   : > { %2894 = vst.msk [vmem:[%s3975_s19 + $0x308] sm:$0xff] %vm1538_vm1, %v2302_v37 }
 0x2d5   : > { %1621 = vrot.lane.b32.xlu1 %v4063_v30, %s3157_s21  ;;  %1946 = vrot.lane.b32.xlu0 %v4244_v63, %s3158_s22 }
 0x2d7   : > { %v4582_v6 = vpop.permute.xlu1 %1382  ;;  %v1612_v7 = vpop.permute.xlu0 %1611 }
 0x2d8   : > { %2723 = vst.msk [vmem:[%s3967_s11 + $0x110] sm:$0xff] %vm1538_vm1, %v1612_v7 }
 0x2d9   : > { %1653 = vrot.lane.b32.xlu1 %v4272_v43, %s3157_s21  ;;  %2177 = vrot.lane.b32.xlu0 %v4051_v61, %s3159_s20 }
 0x2db   : > { %v4590_v39 = vpop.permute.xlu1 %1384  ;;  %v1644_v53 = vpop.permute.xlu0 %1643 }
 0x2dc   : > { %2739 = vst.msk [vmem:[%s3967_s11 + $0x190] sm:$0xff] %vm1538_vm1, %v1644_v53 }
 0x2dd   : > { %1916 = vrot.lane.b32.xlu1 %v4063_v30, %s3158_s22  ;;  %2209 = vrot.lane.b32.xlu0 %v4244_v63, %s3159_s20 }
 0x2df   : > { %v4598_v8 = vpop.permute.xlu1 %1416  ;;  %v1907_v14 = vpop.permute.xlu0 %1906 }
 0x2e0   : > { %2791 = vst.msk [vmem:[%s3967_s11 + $0x210] sm:$0xff] %vm1538_vm1, %v1907_v14 }
 0x2e1   : > { %1948 = vrot.lane.b32.xlu1 %v4272_v43, %s3158_s22  ;;  %1785 = vrot.lane.b32.xlu0 %v4057_v38, %s3157_s21 }
 0x2e3   : > { %v1614_v61 = vpop.permute.xlu1 %1613  ;;  %v1939_v33 = vpop.permute.xlu0 %1938 }
 0x2e4   : > { %2724 = vst.msk [vmem:[%s3967_s11 + $0x118] sm:$0xff] %vm1538_vm1, %v1614_v61  ;;  %2807 = vst.msk [vmem:[%s3967_s11 + $0x290] sm:$0xff] %vm1538_vm1, %v1939_v33 }
 0x2e5   : > { %2179 = vrot.lane.b32.xlu1 %v4063_v30, %s3159_s20  ;;  %1817 = vrot.lane.b32.xlu0 %v4256_v51, %s3157_s21 }
 0x2e7   : > { %v1646_v63 = vpop.permute.xlu1 %1645  ;;  %v2170_v3 = vpop.permute.xlu0 %2169 }
 0x2e8   : > { %2740 = vst.msk [vmem:[%s3967_s11 + $0x198] sm:$0xff] %vm1538_vm1, %v1646_v63  ;;  %2859 = vst.msk [vmem:[%s3967_s11 + $0x310] sm:$0xff] %vm1538_vm1, %v2170_v3 }
 0x2e9   : > { %2211 = vrot.lane.b32.xlu1 %v4272_v43, %s3159_s20  ;;  %2048 = vrot.lane.b32.xlu0 %v4057_v38, %s3158_s22 }
 0x2eb   : > { %v1909_v30 = vpop.permute.xlu1 %1908  ;;  %v2202_v58 = vpop.permute.xlu0 %2201 }
 0x2ec   : > { %2792 = vst.msk [vmem:[%s3967_s11 + $0x218] sm:$0xff] %vm1538_vm1, %v1909_v30  ;;  %2875 = vst.msk [vmem:[%s3967_s11 + $0x390] sm:$0xff] %vm1538_vm1, %v2202_v58 }
 0x2ed   : > { %1787 = vrot.lane.b32.xlu1 %v4069_v13, %s3157_s21  ;;  %2080 = vrot.lane.b32.xlu0 %v4256_v51, %s3158_s22 }
 0x2ef   : > { %v1941_v43 = vpop.permute.xlu1 %1940  ;;  %v1778_v11 = vpop.permute.xlu0 %1777 }
 0x2f0   : > { %2808 = vst.msk [vmem:[%s3967_s11 + $0x298] sm:$0xff] %vm1538_vm1, %v1941_v43  ;;  %2759 = vst.msk [vmem:[%s3975_s19 + $0x110] sm:$0xff] %vm1538_vm1, %v1778_v11 }
 0x2f1   : > { %1819 = vrot.lane.b32.xlu1 %v4284_v24, %s3157_s21  ;;  %1394 = vrot.lane.b32.xlu0 %v4075_v42, %s3156_s16 }
 0x2f3   : > { %v2172_v37 = vpop.permute.xlu1 %2171  ;;  %v1810_v7 = vpop.permute.xlu0 %1809 }
 0x2f4   : > { %2860 = vst.msk [vmem:[%s3967_s11 + $0x318] sm:$0xff] %vm1538_vm1, %v2172_v37  ;;  %2775 = vst.msk [vmem:[%s3975_s19 + $0x190] sm:$0xff] %vm1538_vm1, %v1810_v7 }
 0x2f5   : > { %2050 = vrot.lane.b32.xlu1 %v4069_v13, %s3158_s22  ;;  %1426 = vrot.lane.b32.xlu0 %v4297_v0, %s3156_s16 }
 0x2f7   : > { %v2204_v53 = vpop.permute.xlu1 %2203  ;;  %v2041_v14 = vpop.permute.xlu0 %2040 }
 0x2f8   : > { %2876 = vst.msk [vmem:[%s3967_s11 + $0x398] sm:$0xff] %vm1538_vm1, %v2204_v53  ;;  %2827 = vst.msk [vmem:[%s3975_s19 + $0x210] sm:$0xff] %vm1538_vm1, %v2041_v14 }
 0x2f9   : > { %2082 = vrot.lane.b32.xlu1 %v4284_v24, %s3158_s22  ;;  %1623 = vrot.lane.b32.xlu0 %v4075_v42, %s3157_s21 }
 0x2fb   : > { %v1780_v61 = vpop.permute.xlu1 %1779  ;;  %v2073_v33 = vpop.permute.xlu0 %2072 }
 0x2fc   : > { %2760 = vst.msk [vmem:[%s3975_s19 + $0x118] sm:$0xff] %vm1538_vm1, %v1780_v61  ;;  %2843 = vst.msk [vmem:[%s3975_s19 + $0x290] sm:$0xff] %vm1538_vm1, %v2073_v33 }
 0x2fd   : > { %1396 = vrot.lane.b32.xlu1 %v4098_v48, %s3156_s16  ;;  %1655 = vrot.lane.b32.xlu0 %v4297_v0, %s3157_s21 }
 0x2ff   : > { %v1812_v63 = vpop.permute.xlu1 %1811  ;;  %v2304_v3 = vpop.permute.xlu0 %2303 }
 0x300   : > { %2776 = vst.msk [vmem:[%s3975_s19 + $0x198] sm:$0xff] %vm1538_vm1, %v1812_v63  ;;  %2895 = vst.msk [vmem:[%s3975_s19 + $0x310] sm:$0xff] %vm1538_vm1, %v2304_v3 }
 0x301   : > { %1428 = vrot.lane.b32.xlu1 %v4313_v56, %s3156_s16  ;;  %1918 = vrot.lane.b32.xlu0 %v4075_v42, %s3158_s22 }
 0x303   : > { %v2043_v30 = vpop.permute.xlu1 %2042  ;;  %v4670_v58 = vpop.permute.xlu0 %1386 }
 0x304   : > { %2828 = vst.msk [vmem:[%s3975_s19 + $0x218] sm:$0xff] %vm1538_vm1, %v2043_v30 }
 0x305   : > { %1625 = vrot.lane.b32.xlu1 %v4098_v48, %s3157_s21  ;;  %1950 = vrot.lane.b32.xlu0 %v4297_v0, %s3158_s22 }
 0x307   : > { %v2075_v43 = vpop.permute.xlu1 %2074  ;;  %v4678_v11 = vpop.permute.xlu0 %1418 }
 0x308   : > { %2844 = vst.msk [vmem:[%s3975_s19 + $0x298] sm:$0xff] %vm1538_vm1, %v2075_v43 }
 0x309   : > { %1657 = vrot.lane.b32.xlu1 %v4313_v56, %s3157_s21  ;;  %2181 = vrot.lane.b32.xlu0 %v4075_v42, %s3159_s20 }
 0x30b   : > { %v2306_v37 = vpop.permute.xlu1 %2305  ;;  %v1616_v7 = vpop.permute.xlu0 %1615 }
 0x30c   : > { %2896 = vst.msk [vmem:[%s3975_s19 + $0x318] sm:$0xff] %vm1538_vm1, %v2306_v37  ;;  %2725 = vst.msk [vmem:[%s3967_s11 + $0x120] sm:$0xff] %vm1538_vm1, %v1616_v7 }
 0x30d   : > { %1920 = vrot.lane.b32.xlu1 %v4098_v48, %s3158_s22  ;;  %2213 = vrot.lane.b32.xlu0 %v4297_v0, %s3159_s20 }
 0x30f   : > { %v4694_v53 = vpop.permute.xlu1 %1388  ;;  %v1648_v14 = vpop.permute.xlu0 %1647 }
 0x310   : > { %2741 = vst.msk [vmem:[%s3967_s11 + $0x1a0] sm:$0xff] %vm1538_vm1, %v1648_v14 }
 0x311   : > { %1952 = vrot.lane.b32.xlu1 %v4313_v56, %s3158_s22  ;;  %1789 = vrot.lane.b32.xlu0 %v4084_v62, %s3157_s21 }
 0x313   : > { %v4702_v42 = vpop.permute.xlu1 %1420  ;;  %v1911_v61 = vpop.permute.xlu0 %1910 }
 0x314   : > { %2793 = vst.msk [vmem:[%s3967_s11 + $0x220] sm:$0xff] %vm1538_vm1, %v1911_v61 }
 0x315   : > { %2183 = vrot.lane.b32.xlu1 %v4098_v48, %s3159_s20  ;;  %1821 = vrot.lane.b32.xlu0 %v4303_v49, %s3157_s21 }
 0x317   : > { %v1618_v0 = vpop.permute.xlu1 %1617  ;;  %v1943_v33 = vpop.permute.xlu0 %1942 }
 0x318   : > { %2726 = vst.msk [vmem:[%s3967_s11 + $0x128] sm:$0xff] %vm1538_vm1, %v1618_v0  ;;  %2809 = vst.msk [vmem:[%s3967_s11 + $0x2a0] sm:$0xff] %vm1538_vm1, %v1943_v33 }
 0x319   : > { %2215 = vrot.lane.b32.xlu1 %v4313_v56, %s3159_s20  ;;  %2052 = vrot.lane.b32.xlu0 %v4084_v62, %s3158_s22 }
 0x31b   : > { %v1650_v48 = vpop.permute.xlu1 %1649  ;;  %v2174_v63 = vpop.permute.xlu0 %2173 }
 0x31c   : > { %2742 = vst.msk [vmem:[%s3967_s11 + $0x1a8] sm:$0xff] %vm1538_vm1, %v1650_v48  ;;  %2861 = vst.msk [vmem:[%s3967_s11 + $0x320] sm:$0xff] %vm1538_vm1, %v2174_v63 }
 0x31d   : > { %1791 = vrot.lane.b32.xlu1 %v4110_v40, %s3157_s21  ;;  %2084 = vrot.lane.b32.xlu0 %v4303_v49, %s3158_s22 }
 0x31f   : > { %v1913_v56 = vpop.permute.xlu1 %1912  ;;  %v2206_v3 = vpop.permute.xlu0 %2205 }
 0x320   : > { %2794 = vst.msk [vmem:[%s3967_s11 + $0x228] sm:$0xff] %vm1538_vm1, %v1913_v56  ;;  %2877 = vst.msk [vmem:[%s3967_s11 + $0x3a0] sm:$0xff] %vm1538_vm1, %v2206_v3 }
 0x321   : > { %1823 = vrot.lane.b32.xlu1 %v4319_v2, %s3157_s21  ;;  %1398 = vrot.lane.b32.xlu0 %v4126_v5, %s3156_s16 }
 0x323   : > { %v1945_v30 = vpop.permute.xlu1 %1944  ;;  %v1782_v43 = vpop.permute.xlu0 %1781 }
 0x324   : > { %2810 = vst.msk [vmem:[%s3967_s11 + $0x2a8] sm:$0xff] %vm1538_vm1, %v1945_v30  ;;  %2761 = vst.msk [vmem:[%s3975_s19 + $0x120] sm:$0xff] %vm1538_vm1, %v1782_v43 }
 0x325   : > { %2054 = vrot.lane.b32.xlu1 %v4110_v40, %s3158_s22  ;;  %1430 = vrot.lane.b32.xlu0 %v4329_v1, %s3156_s16 }
 0x327   : > { %v2176_v37 = vpop.permute.xlu1 %2175  ;;  %v1814_v7 = vpop.permute.xlu0 %1813 }
 0x328   : > { %2862 = vst.msk [vmem:[%s3967_s11 + $0x328] sm:$0xff] %vm1538_vm1, %v2176_v37  ;;  %2777 = vst.msk [vmem:[%s3975_s19 + $0x1a0] sm:$0xff] %vm1538_vm1, %v1814_v7 }
 0x329   : > { %2086 = vrot.lane.b32.xlu1 %v4319_v2, %s3158_s22  ;;  %1627 = vrot.lane.b32.xlu0 %v4126_v5, %s3157_s21 }
 0x32b   : > { %v2208_v14 = vpop.permute.xlu1 %2207  ;;  %v2045_v61 = vpop.permute.xlu0 %2044 }
 0x32c   : > { %2878 = vst.msk [vmem:[%s3967_s11 + $0x3a8] sm:$0xff] %vm1538_vm1, %v2208_v14  ;;  %2829 = vst.msk [vmem:[%s3975_s19 + $0x220] sm:$0xff] %vm1538_vm1, %v2045_v61 }
 0x32d   : > { %1400 = vrot.lane.b32.xlu1 %v4154_v57, %s3156_s16  ;;  %1659 = vrot.lane.b32.xlu0 %v4329_v1, %s3157_s21 }
 0x32f   : > { %v1784_v0 = vpop.permute.xlu1 %1783  ;;  %v2077_v33 = vpop.permute.xlu0 %2076 }
 0x330   : > { %2762 = vst.msk [vmem:[%s3975_s19 + $0x128] sm:$0xff] %vm1538_vm1, %v1784_v0  ;;  %2845 = vst.msk [vmem:[%s3975_s19 + $0x2a0] sm:$0xff] %vm1538_vm1, %v2077_v33 }
 0x331   : > { %1432 = vrot.lane.b32.xlu1 %v4345_v26, %s3156_s16  ;;  %1922 = vrot.lane.b32.xlu0 %v4126_v5, %s3158_s22 }
 0x333   : > { %v1816_v48 = vpop.permute.xlu1 %1815  ;;  %v4766_v63 = vpop.permute.xlu0 %1390 }
 0x334   : > { %2778 = vst.msk [vmem:[%s3975_s19 + $0x1a8] sm:$0xff] %vm1538_vm1, %v1816_v48 }
 0x335   : > { %1629 = vrot.lane.b32.xlu1 %v4154_v57, %s3157_s21  ;;  %1954 = vrot.lane.b32.xlu0 %v4329_v1, %s3158_s22 }
 0x337   : > { %v2047_v56 = vpop.permute.xlu1 %2046  ;;  %v4774_v3 = vpop.permute.xlu0 %1422 }
 0x338   : > { %2830 = vst.msk [vmem:[%s3975_s19 + $0x228] sm:$0xff] %vm1538_vm1, %v2047_v56 }
 0x339   : > { %1661 = vrot.lane.b32.xlu1 %v4345_v26, %s3157_s21  ;;  %2185 = vrot.lane.b32.xlu0 %v4126_v5, %s3159_s20 }
 0x33b   : > { %v2079_v30 = vpop.permute.xlu1 %2078  ;;  %v1620_v43 = vpop.permute.xlu0 %1619 }
 0x33c   : > { %2846 = vst.msk [vmem:[%s3975_s19 + $0x2a8] sm:$0xff] %vm1538_vm1, %v2079_v30  ;;  %2727 = vst.msk [vmem:[%s3967_s11 + $0x130] sm:$0xff] %vm1538_vm1, %v1620_v43 }
 0x33d   : > { %1924 = vrot.lane.b32.xlu1 %v4154_v57, %s3158_s22  ;;  %2217 = vrot.lane.b32.xlu0 %v4329_v1, %s3159_s20 }
 0x33f   : > { %v4790_v37 = vpop.permute.xlu1 %1392  ;;  %v1652_v7 = vpop.permute.xlu0 %1651 }
 0x340   : > { %2743 = vst.msk [vmem:[%s3967_s11 + $0x1b0] sm:$0xff] %vm1538_vm1, %v1652_v7 }
 0x341   : > { %1956 = vrot.lane.b32.xlu1 %v4345_v26, %s3158_s22  ;;  %1793 = vrot.lane.b32.xlu0 %v4138_v44, %s3157_s21 }
 0x343   : > { %v4798_v5 = vpop.permute.xlu1 %1424  ;;  %v1915_v14 = vpop.permute.xlu0 %1914 }
 0x344   : > { %2795 = vst.msk [vmem:[%s3967_s11 + $0x230] sm:$0xff] %vm1538_vm1, %v1915_v14 }
 0x345   : > { %2187 = vrot.lane.b32.xlu1 %v4154_v57, %s3159_s20  ;;  %1825 = vrot.lane.b32.xlu0 %v4335_v36, %s3157_s21 }
 0x347   : > { %v1622_v1 = vpop.permute.xlu1 %1621  ;;  %v1947_v61 = vpop.permute.xlu0 %1946 }
 0x348   : > { %2728 = vst.msk [vmem:[%s3967_s11 + $0x138] sm:$0xff] %vm1538_vm1, %v1622_v1  ;;  %2811 = vst.msk [vmem:[%s3967_s11 + $0x2b0] sm:$0xff] %vm1538_vm1, %v1947_v61 }
 0x349   : > { %2219 = vrot.lane.b32.xlu1 %v4345_v26, %s3159_s20  ;;  %2056 = vrot.lane.b32.xlu0 %v4138_v44, %s3158_s22 }
 0x34b   : > { %v1654_v57 = vpop.permute.xlu1 %1653  ;;  %v2178_v0 = vpop.permute.xlu0 %2177 }
 0x34c   : > { %2744 = vst.msk [vmem:[%s3967_s11 + $0x1b8] sm:$0xff] %vm1538_vm1, %v1654_v57  ;;  %2863 = vst.msk [vmem:[%s3967_s11 + $0x330] sm:$0xff] %vm1538_vm1, %v2178_v0 }
 0x34d   : > { %1795 = vrot.lane.b32.xlu1 %v4166_v55, %s3157_s21  ;;  %2088 = vrot.lane.b32.xlu0 %v4335_v36, %s3158_s22 }
 0x34f   : > { %v1917_v26 = vpop.permute.xlu1 %1916  ;;  %v2210_v33 = vpop.permute.xlu0 %2209 }
 0x350   : > { %2796 = vst.msk [vmem:[%s3967_s11 + $0x238] sm:$0xff] %vm1538_vm1, %v1917_v26  ;;  %2879 = vst.msk [vmem:[%s3967_s11 + $0x3b0] sm:$0xff] %vm1538_vm1, %v2210_v33 }
 0x351   : > { %1827 = vrot.lane.b32.xlu1 %v4351_v17, %s3157_s21  ;;  %1402 = vrot.lane.b32.xlu0 %v4182_v54, %s3156_s16 }
 0x353   : > { %v1949_v48 = vpop.permute.xlu1 %1948  ;;  %v1786_v56 = vpop.permute.xlu0 %1785 }
 0x354   : > { %2812 = vst.msk [vmem:[%s3967_s11 + $0x2b8] sm:$0xff] %vm1538_vm1, %v1949_v48  ;;  %2763 = vst.msk [vmem:[%s3975_s19 + $0x130] sm:$0xff] %vm1538_vm1, %v1786_v56 }
 0x355   : > { %2058 = vrot.lane.b32.xlu1 %v4166_v55, %s3158_s22  ;;  %1434 = vrot.lane.b32.xlu0 %v4361_v20, %s3156_s16 }
 0x357   : > { %v2180_v30 = vpop.permute.xlu1 %2179  ;;  %v1818_v43 = vpop.permute.xlu0 %1817 }
 0x358   : > { %2864 = vst.msk [vmem:[%s3967_s11 + $0x338] sm:$0xff] %vm1538_vm1, %v2180_v30  ;;  %2779 = vst.msk [vmem:[%s3975_s19 + $0x1b0] sm:$0xff] %vm1538_vm1, %v1818_v43 }
 0x359   : > { %2090 = vrot.lane.b32.xlu1 %v4351_v17, %s3158_s22  ;;  %1631 = vrot.lane.b32.xlu0 %v4182_v54, %s3157_s21 }
 0x35b   : > { %v2212_v7 = vpop.permute.xlu1 %2211  ;;  %v2049_v14 = vpop.permute.xlu0 %2048 }
 0x35c   : > { %2880 = vst.msk [vmem:[%s3967_s11 + $0x3b8] sm:$0xff] %vm1538_vm1, %v2212_v7  ;;  %2831 = vst.msk [vmem:[%s3975_s19 + $0x230] sm:$0xff] %vm1538_vm1, %v2049_v14 }
 0x35d   : > { %1404 = vrot.lane.b32.xlu1 %v4210_v27, %s3156_s16  ;;  %1663 = vrot.lane.b32.xlu0 %v4361_v20, %s3157_s21 }
 0x35f   : > { %v1788_v1 = vpop.permute.xlu1 %1787  ;;  %v2081_v61 = vpop.permute.xlu0 %2080 }
 0x360   : > { %2764 = vst.msk [vmem:[%s3975_s19 + $0x138] sm:$0xff] %vm1538_vm1, %v1788_v1  ;;  %2847 = vst.msk [vmem:[%s3975_s19 + $0x2b0] sm:$0xff] %vm1538_vm1, %v2081_v61 }
 0x361   : > { %1436 = vrot.lane.b32.xlu1 %v4377_v4, %s3156_s16  ;;  %1926 = vrot.lane.b32.xlu0 %v4182_v54, %s3158_s22 }
 0x363   : > { %v1820_v57 = vpop.permute.xlu1 %1819  ;;  %v4862_v0 = vpop.permute.xlu0 %1394 }
 0x364   : > { %2780 = vst.msk [vmem:[%s3975_s19 + $0x1b8] sm:$0xff] %vm1538_vm1, %v1820_v57 }
 0x365   : > { %1633 = vrot.lane.b32.xlu1 %v4210_v27, %s3157_s21  ;;  %1958 = vrot.lane.b32.xlu0 %v4361_v20, %s3158_s22 }
 0x367   : > { %v2051_v26 = vpop.permute.xlu1 %2050  ;;  %v4870_v33 = vpop.permute.xlu0 %1426 }
 0x368   : > { %2832 = vst.msk [vmem:[%s3975_s19 + $0x238] sm:$0xff] %vm1538_vm1, %v2051_v26 }
 0x369   : > { %1665 = vrot.lane.b32.xlu1 %v4377_v4, %s3157_s21  ;;  %2189 = vrot.lane.b32.xlu0 %v4182_v54, %s3159_s20 }
 0x36b   : > { %v2083_v48 = vpop.permute.xlu1 %2082  ;;  %v1624_v56 = vpop.permute.xlu0 %1623 }
 0x36c   : > { %2848 = vst.msk [vmem:[%s3975_s19 + $0x2b8] sm:$0xff] %vm1538_vm1, %v2083_v48  ;;  %2729 = vst.msk [vmem:[%s3967_s11 + $0x140] sm:$0xff] %vm1538_vm1, %v1624_v56 }
 0x36d   : > { %1928 = vrot.lane.b32.xlu1 %v4210_v27, %s3158_s22  ;;  %2221 = vrot.lane.b32.xlu0 %v4361_v20, %s3159_s20 }
 0x36f   : > { %v4886_v30 = vpop.permute.xlu1 %1396  ;;  %v1656_v43 = vpop.permute.xlu0 %1655 }
 0x370   : > { %2745 = vst.msk [vmem:[%s3967_s11 + $0x1c0] sm:$0xff] %vm1538_vm1, %v1656_v43 }
 0x371   : > { %1960 = vrot.lane.b32.xlu1 %v4377_v4, %s3158_s22  ;;  %1797 = vrot.lane.b32.xlu0 %v4194_v34, %s3157_s21 }
 0x373   : > { %v4894_v54 = vpop.permute.xlu1 %1428  ;;  %v1919_v7 = vpop.permute.xlu0 %1918 }
 0x374   : > { %2797 = vst.msk [vmem:[%s3967_s11 + $0x240] sm:$0xff] %vm1538_vm1, %v1919_v7 }
 0x375   : > { %2191 = vrot.lane.b32.xlu1 %v4210_v27, %s3159_s20  ;;  %1829 = vrot.lane.b32.xlu0 %v4367_v16, %s3157_s21 }
 0x377   : > { %v1626_v20 = vpop.permute.xlu1 %1625  ;;  %v1951_v14 = vpop.permute.xlu0 %1950 }
 0x378   : > { %2730 = vst.msk [vmem:[%s3967_s11 + $0x148] sm:$0xff] %vm1538_vm1, %v1626_v20  ;;  %2813 = vst.msk [vmem:[%s3967_s11 + $0x2c0] sm:$0xff] %vm1538_vm1, %v1951_v14 }
 0x379   : > { %2223 = vrot.lane.b32.xlu1 %v4377_v4, %s3159_s20  ;;  %2060 = vrot.lane.b32.xlu0 %v4194_v34, %s3158_s22 }
 0x37b   : > { %v1658_v27 = vpop.permute.xlu1 %1657  ;;  %v2182_v1 = vpop.permute.xlu0 %2181 }
 0x37c   : > { %2746 = vst.msk [vmem:[%s3967_s11 + $0x1c8] sm:$0xff] %vm1538_vm1, %v1658_v27  ;;  %2865 = vst.msk [vmem:[%s3967_s11 + $0x340] sm:$0xff] %vm1538_vm1, %v2182_v1 }
 0x37d   : > { %1799 = vrot.lane.b32.xlu1 %v4222_v19, %s3157_s21  ;;  %2092 = vrot.lane.b32.xlu0 %v4367_v16, %s3158_s22 }
 0x37f   : > { %v1921_v4 = vpop.permute.xlu1 %1920  ;;  %v2214_v61 = vpop.permute.xlu0 %2213 }
 0x380   : > { %2798 = vst.msk [vmem:[%s3967_s11 + $0x248] sm:$0xff] %vm1538_vm1, %v1921_v4  ;;  %2881 = vst.msk [vmem:[%s3967_s11 + $0x3c0] sm:$0xff] %vm1538_vm1, %v2214_v61 }
 0x381   : > { %1831 = vrot.lane.b32.xlu1 %v4383_v45, %s3157_s21  ;;  %1406 = vrot.lane.b32.xlu0 %v4238_v41, %s3156_s16 }
 0x383   : > { %v1953_v57 = vpop.permute.xlu1 %1952  ;;  %v1790_v26 = vpop.permute.xlu0 %1789 }
 0x384   : > { %2814 = vst.msk [vmem:[%s3967_s11 + $0x2c8] sm:$0xff] %vm1538_vm1, %v1953_v57  ;;  %2765 = vst.msk [vmem:[%s3975_s19 + $0x140] sm:$0xff] %vm1538_vm1, %v1790_v26 }
 0x385   : > { %2062 = vrot.lane.b32.xlu1 %v4222_v19, %s3158_s22  ;;  %1438 = vrot.lane.b32.xlu0 %v4393_v59, %s3156_s16 }
 0x387   : > { %v2184_v48 = vpop.permute.xlu1 %2183  ;;  %v1822_v56 = vpop.permute.xlu0 %1821 }
 0x388   : > { %2866 = vst.msk [vmem:[%s3967_s11 + $0x348] sm:$0xff] %vm1538_vm1, %v2184_v48  ;;  %2781 = vst.msk [vmem:[%s3975_s19 + $0x1c0] sm:$0xff] %vm1538_vm1, %v1822_v56 }
 0x389   : > { %2094 = vrot.lane.b32.xlu1 %v4383_v45, %s3158_s22  ;;  %1635 = vrot.lane.b32.xlu0 %v4238_v41, %s3157_s21 }
 0x38b   : > { %v2216_v43 = vpop.permute.xlu1 %2215  ;;  %v2053_v7 = vpop.permute.xlu0 %2052 }
 0x38c   : > { %2882 = vst.msk [vmem:[%s3967_s11 + $0x3c8] sm:$0xff] %vm1538_vm1, %v2216_v43  ;;  %2833 = vst.msk [vmem:[%s3975_s19 + $0x240] sm:$0xff] %vm1538_vm1, %v2053_v7 }
 0x38d   : > { %2309 = vrot.lane.b32.xlu1 %v4045_v60, %s3159_s20  ;;  %1667 = vrot.lane.b32.xlu0 %v4393_v59, %s3157_s21 }
 0x38f   : > { %v1792_v20 = vpop.permute.xlu1 %1791  ;;  %v2085_v14 = vpop.permute.xlu0 %2084 }
 0x390   : > { %2766 = vst.msk [vmem:[%s3975_s19 + $0x148] sm:$0xff] %vm1538_vm1, %v1792_v20  ;;  %2849 = vst.msk [vmem:[%s3975_s19 + $0x2c0] sm:$0xff] %vm1538_vm1, %v2085_v14 }
 0x391   : > { %2313 = vrot.lane.b32.xlu1 %v4069_v13, %s3159_s20  ;;  %1930 = vrot.lane.b32.xlu0 %v4238_v41, %s3158_s22 }
 0x393   : > { %v1824_v27 = vpop.permute.xlu1 %1823  ;;  %v4958_v1 = vpop.permute.xlu0 %1398 }
 0x394   : > { %2782 = vst.msk [vmem:[%s3975_s19 + $0x1c8] sm:$0xff] %vm1538_vm1, %v1824_v27 }
 0x395   : > { %2317 = vrot.lane.b32.xlu1 %v4110_v40, %s3159_s20  ;;  %1962 = vrot.lane.b32.xlu0 %v4393_v59, %s3158_s22 }
 0x397   : > { %v2055_v60 = vpop.permute.xlu1 %2054  ;;  %v4966_v4 = vpop.permute.xlu0 %1430 }
 0x398   : > { %2834 = vst.msk [vmem:[%s3975_s19 + $0x248] sm:$0xff] %vm1538_vm1, %v2055_v60 }
 0x399   : > { %1408 = vrot.lane.b32.xlu1 %v4266_v32, %s3156_s16  ;;  %2193 = vrot.lane.b32.xlu0 %v4238_v41, %s3159_s20 }
 0x39b   : > { %v2087_v13 = vpop.permute.xlu1 %2086  ;;  %v1628_v61 = vpop.permute.xlu0 %1627 }
 0x39c   : > { %2850 = vst.msk [vmem:[%s3975_s19 + $0x2c8] sm:$0xff] %vm1538_vm1, %v2087_v13  ;;  %2731 = vst.msk [vmem:[%s3967_s11 + $0x150] sm:$0xff] %vm1538_vm1, %v1628_v61 }
 0x39d   : > { %1440 = vrot.lane.b32.xlu1 %v4409_v28, %s3156_s16  ;;  %2225 = vrot.lane.b32.xlu0 %v4393_v59, %s3159_s20  ;;  %s5272_s16 = scalar_lea.hbm %s5361_s7, %s2934_s26 }
 0x39f   : > { %v4982_v40 = vpop.permute.xlu1 %1400  ;;  %v1660_v57 = vpop.permute.xlu0 %1659 }
 0x3a0   : > { %2747 = vst.msk [vmem:[%s3967_s11 + $0x1d0] sm:$0xff] %vm1538_vm1, %v1660_v57 }
 0x3a1   : > { %1637 = vrot.lane.b32.xlu1 %v4266_v32, %s3157_s21  ;;  %1801 = vrot.lane.b32.xlu0 %v4250_v22, %s3157_s21 }
 0x3a3   : > { %v4990_v41 = vpop.permute.xlu1 %1432  ;;  %v1923_v26 = vpop.permute.xlu0 %1922 }
 0x3a4   : > { %2799 = vst.msk [vmem:[%s3967_s11 + $0x250] sm:$0xff] %vm1538_vm1, %v1923_v26 }
 0x3a5   : > { %1669 = vrot.lane.b32.xlu1 %v4409_v28, %s3157_s21  ;;  %1833 = vrot.lane.b32.xlu0 %v4399_v12, %s3157_s21 }
 0x3a7   : > { %v1630_v59 = vpop.permute.xlu1 %1629  ;;  %v1955_v48 = vpop.permute.xlu0 %1954 }
 0x3a8   : > { %2732 = vst.msk [vmem:[%s3967_s11 + $0x158] sm:$0xff] %vm1538_vm1, %v1630_v59  ;;  %2815 = vst.msk [vmem:[%s3967_s11 + $0x2d0] sm:$0xff] %vm1538_vm1, %v1955_v48 }
 0x3a9   : > { %1932 = vrot.lane.b32.xlu1 %v4266_v32, %s3158_s22  ;;  %2064 = vrot.lane.b32.xlu0 %v4250_v22, %s3158_s22 }
 0x3ab   : > { %v1662_v56 = vpop.permute.xlu1 %1661  ;;  %v2186_v43 = vpop.permute.xlu0 %2185 }
 0x3ac   : > { %2748 = vst.msk [vmem:[%s3967_s11 + $0x1d8] sm:$0xff] %vm1538_vm1, %v1662_v56  ;;  %2867 = vst.msk [vmem:[%s3967_s11 + $0x350] sm:$0xff] %vm1538_vm1, %v2186_v43 }
 0x3ad   : > { %1964 = vrot.lane.b32.xlu1 %v4409_v28, %s3158_s22  ;;  %2096 = vrot.lane.b32.xlu0 %v4399_v12, %s3158_s22 }
 0x3af   : > { %v1925_v7 = vpop.permute.xlu1 %1924  ;;  %v2218_v20 = vpop.permute.xlu0 %2217 }
 0x3b0   : > { %2800 = vst.msk [vmem:[%s3967_s11 + $0x258] sm:$0xff] %vm1538_vm1, %v1925_v7  ;;  %2883 = vst.msk [vmem:[%s3967_s11 + $0x3d0] sm:$0xff] %vm1538_vm1, %v2218_v20 }
 0x3b1   : > { %2195 = vrot.lane.b32.xlu1 %v4266_v32, %s3159_s20  ;;  %2307 = vrot.lane.b32.xlu0 %v4033_v35, %s3159_s20 }
 0x3b3   : > { %v1957_v14 = vpop.permute.xlu1 %1956  ;;  %v1794_v27 = vpop.permute.xlu0 %1793 }
 0x3b4   : > { %2816 = vst.msk [vmem:[%s3967_s11 + $0x2d8] sm:$0xff] %vm1538_vm1, %v1957_v14  ;;  %2767 = vst.msk [vmem:[%s3975_s19 + $0x150] sm:$0xff] %vm1538_vm1, %v1794_v27 }
 0x3b5   : > { %2227 = vrot.lane.b32.xlu1 %v4409_v28, %s3159_s20  ;;  %2311 = vrot.lane.b32.xlu0 %v4057_v38, %s3159_s20 }
 0x3b7   : > { %v2188_v32 = vpop.permute.xlu1 %2187  ;;  %v1826_v60 = vpop.permute.xlu0 %1825 }
 0x3b8   : > { %2868 = vst.msk [vmem:[%s3967_s11 + $0x358] sm:$0xff] %vm1538_vm1, %v2188_v32  ;;  %2783 = vst.msk [vmem:[%s3975_s19 + $0x1d0] sm:$0xff] %vm1538_vm1, %v1826_v60 }
 0x3b9   : > { %1803 = vrot.lane.b32.xlu1 %v4278_v50, %s3157_s21  ;;  %2315 = vrot.lane.b32.xlu0 %v4084_v62, %s3159_s20 }
 0x3bb   : > { %v2220_v35 = vpop.permute.xlu1 %2219  ;;  %v2057_v28 = vpop.permute.xlu0 %2056 }
 0x3bc   : > { %2884 = vst.msk [vmem:[%s3967_s11 + $0x3d8] sm:$0xff] %vm1538_vm1, %v2220_v35  ;;  %2835 = vst.msk [vmem:[%s3975_s19 + $0x250] sm:$0xff] %vm1538_vm1, %v2057_v28 }
 0x3bd   : > { %1835 = vrot.lane.b32.xlu1 %v4415_v21, %s3157_s21  ;;  %2319 = vrot.lane.b32.xlu0 %v4138_v44, %s3159_s20  ;;  %s5279_s21 = scalar_lea.sflag [#allocation3], %s350_s23 }
 0x3bf   : > { %v1796_v38 = vpop.permute.xlu1 %1795  ;;  %v2089_v13 = vpop.permute.xlu0 %2088 }
 0x3c0   : > { %2768 = vst.msk [vmem:[%s3975_s19 + $0x158] sm:$0xff] %vm1538_vm1, %v1796_v38  ;;  %2851 = vst.msk [vmem:[%s3975_s19 + $0x2d0] sm:$0xff] %vm1538_vm1, %v2089_v13 }
 0x3c1   : > { %2066 = vrot.lane.b32.xlu1 %v4278_v50, %s3158_s22  ;;  %2323 = vrot.lane.b32.xlu0 %v4194_v34, %s3159_s20 }
 0x3c3   : > { %v1828_v62 = vpop.permute.xlu1 %1827  ;;  %v5054_v61 = vpop.permute.xlu0 %1402 }
 0x3c4   : > { %2784 = vst.msk [vmem:[%s3975_s19 + $0x1d8] sm:$0xff] %vm1538_vm1, %v1828_v62 }
 0x3c5   : > { %2098 = vrot.lane.b32.xlu1 %v4415_v21, %s3158_s22  ;;  %2327 = vrot.lane.b32.xlu0 %v4250_v22, %s3159_s20 }
 0x3c7   : > { %v2059_v44 = vpop.permute.xlu1 %2058  ;;  %v5062_v57 = vpop.permute.xlu0 %1434 }
 0x3c8   : > { %2836 = vst.msk [vmem:[%s3975_s19 + $0x258] sm:$0xff] %vm1538_vm1, %v2059_v44 }
 0x3c9   : > { %2321 = vrot.lane.b32.xlu1 %v4166_v55, %s3159_s20  ;;  %2331 = vrot.lane.b32.xlu0 %v4090_v10, %s3159_s20 }
 0x3cb   : > { %v2091_v34 = vpop.permute.xlu1 %2090  ;;  %v1632_v26 = vpop.permute.xlu0 %1631 }
 0x3cc   : > { %2852 = vst.msk [vmem:[%s3975_s19 + $0x2d8] sm:$0xff] %vm1538_vm1, %v2091_v34  ;;  %2733 = vst.msk [vmem:[%s3967_s11 + $0x160] sm:$0xff] %vm1538_vm1, %v1632_v26 }
 0x3cd   : > { %2325 = vrot.lane.b32.xlu1 %v4222_v19, %s3159_s20 }
 0x3cf   : > { %v5076_v22 = vpop.permute.xlu1 %1404  ;;  %v1664_v59 = vpop.permute.xlu0 %1663 }
 0x3d0   : > { %2749 = vst.msk [vmem:[%s3967_s11 + $0x1e0] sm:$0xff] %vm1538_vm1, %v1664_v59 }
 0x3d1   : > { %2329 = vrot.lane.b32.xlu1 %v4278_v50, %s3159_s20 }
 0x3d3   : > { %v5082_v10 = vpop.permute.xlu1 %1436  ;;  %v1927_v55 = vpop.permute.xlu0 %1926 }
 0x3d4   : > { %2801 = vst.msk [vmem:[%s3967_s11 + $0x260] sm:$0xff] %vm1538_vm1, %v1927_v55 }
 0x3d7   : > { %v1634_v48 = vpop.permute.xlu1 %1633  ;;  %v1959_v56 = vpop.permute.xlu0 %1958 }
 0x3d8   : > { %2734 = vst.msk [vmem:[%s3967_s11 + $0x168] sm:$0xff] %vm1538_vm1, %v1634_v48  ;;  %2817 = vst.msk [vmem:[%s3967_s11 + $0x2e0] sm:$0xff] %vm1538_vm1, %v1959_v56 }
 0x3db   : > { %v1666_v19 = vpop.permute.xlu1 %1665  ;;  %v2190_v43 = vpop.permute.xlu0 %2189 }
 0x3dc   : > { %2750 = vst.msk [vmem:[%s3967_s11 + $0x1e8] sm:$0xff] %vm1538_vm1, %v1666_v19  ;;  %2869 = vst.msk [vmem:[%s3967_s11 + $0x360] sm:$0xff] %vm1538_vm1, %v2190_v43 }
 0x3df   : > { %v1929_v50 = vpop.permute.xlu1 %1928  ;;  %v2222_v7 = vpop.permute.xlu0 %2221 }
 0x3e0   : > { %2802 = vst.msk [vmem:[%s3967_s11 + $0x268] sm:$0xff] %vm1538_vm1, %v1929_v50  ;;  %2885 = vst.msk [vmem:[%s3967_s11 + $0x3e0] sm:$0xff] %vm1538_vm1, %v2222_v7 }
 0x3e3   : > { %v1961_v20 = vpop.permute.xlu1 %1960  ;;  %v1798_v14 = vpop.permute.xlu0 %1797 }
 0x3e4   : > { %2818 = vst.msk [vmem:[%s3967_s11 + $0x2e8] sm:$0xff] %vm1538_vm1, %v1961_v20  ;;  %2769 = vst.msk [vmem:[%s3975_s19 + $0x160] sm:$0xff] %vm1538_vm1, %v1798_v14 }
 0x3e7   : > { %v2192_v27 = vpop.permute.xlu1 %2191  ;;  %1474 = vxpose.xlu0.b32.start [1/16] (narrow) %v4472_v18, 64  ;;  %v1830_v32 = vpop.permute.xlu0 %1829 }
 0x3e8   : > { %2870 = vst.msk [vmem:[%s3967_s11 + $0x368] sm:$0xff] %vm1538_vm1, %v2192_v27  ;;  %2785 = vst.msk [vmem:[%s3975_s19 + $0x1e0] sm:$0xff] %vm1538_vm1, %v1830_v32 }
 0x3eb   : > { %v2224_v60 = vpop.permute.xlu1 %2223  ;;  %1475 = vxpose.xlu0.b32.cont [2/16] (narrow) %v4478_v29, 64  ;;  %v2061_v35 = vpop.permute.xlu0 %2060 }
 0x3ec   : > { %2886 = vst.msk [vmem:[%s3967_s11 + $0x3e8] sm:$0xff] %vm1538_vm1, %v2224_v60  ;;  %2837 = vst.msk [vmem:[%s3975_s19 + $0x260] sm:$0xff] %vm1538_vm1, %v2061_v35 }
 0x3ef   : > { %v1800_v28 = vpop.permute.xlu1 %1799  ;;  %1476 = vxpose.xlu0.b32.cont [3/16] (narrow) %v4582_v6, 64  ;;  %v2093_v18 = vpop.permute.xlu0 %2092 }
 0x3f0   : > { %2770 = vst.msk [vmem:[%s3975_s19 + $0x168] sm:$0xff] %vm1538_vm1, %v1800_v28  ;;  %2853 = vst.msk [vmem:[%s3975_s19 + $0x2e0] sm:$0xff] %vm1538_vm1, %v2093_v18 }
 0x3f3   : > { %v1832_v38 = vpop.permute.xlu1 %1831  ;;  %1477 = vxpose.xlu0.b32.cont [4/16] (narrow) %v4590_v39, 64  ;;  %v1407_v29 = vpop.permute.xlu0 %1406 }
 0x3f4   : > { %2786 = vst.msk [vmem:[%s3975_s19 + $0x1e8] sm:$0xff] %vm1538_vm1, %v1832_v38 }
 0x3f7   : > { %v2063_v13 = vpop.permute.xlu1 %2062  ;;  %1478 = vxpose.xlu0.b32.cont [5/16] (narrow) %v4670_v58, 64  ;;  %v5121_v62 = vpop.permute.xlu0 %1438 }
 0x3f8   : > { %2838 = vst.msk [vmem:[%s3975_s19 + $0x268] sm:$0xff] %vm1538_vm1, %v2063_v13 }
 0x3fa   : > { %1506 = vxpose.xlu1.b32.start [1/16] (narrow) %v4480_v9, 64 }
 0x3fb   : > { %v2095_v6 = vpop.permute.xlu1 %2094  ;;  %1479 = vxpose.xlu0.b32.cont [6/16] (narrow) %v4694_v53, 64  ;;  %v1636_v39 = vpop.permute.xlu0 %1635 }
 0x3fc   : > { %2854 = vst.msk [vmem:[%s3975_s19 + $0x2e8] sm:$0xff] %vm1538_vm1, %v2095_v6  ;;  %2735 = vst.msk [vmem:[%s3967_s11 + $0x170] sm:$0xff] %vm1538_vm1, %v1636_v39 }
 0x3fe   : > { %1507 = vxpose.xlu1.b32.cont [2/16] (narrow) %v4486_v46, 64 }
 0x3ff   : > { %v2310_v58 = vpop.permute.xlu1 %2309  ;;  %1480 = vxpose.xlu0.b32.cont [7/16] (narrow) %v4766_v63, 64  ;;  %v1668_v44 = vpop.permute.xlu0 %1667 }
 0x400   : > { %2898 = vst.msk [vmem:[%s3975_s19 + $0x328] sm:$0xff] %vm1538_vm1, %v2310_v58  ;;  %2751 = vst.msk [vmem:[%s3967_s11 + $0x1f0] sm:$0xff] %vm1538_vm1, %v1668_v44 }
 0x402   : > { %1508 = vxpose.xlu1.b32.cont [3/16] (narrow) %v4574_v23, 64 }
 0x403   : > { %v2314_v9 = vpop.permute.xlu1 %2313  ;;  %1481 = vxpose.xlu0.b32.cont [8/16] (narrow) %v4790_v37, 64  ;;  %v1931_v53 = vpop.permute.xlu0 %1930 }
 0x404   : > { %2900 = vst.msk [vmem:[%s3975_s19 + $0x338] sm:$0xff] %vm1538_vm1, %v2314_v9  ;;  %2803 = vst.msk [vmem:[%s3967_s11 + $0x270] sm:$0xff] %vm1538_vm1, %v1931_v53 }
 0x406   : > { %1509 = vxpose.xlu1.b32.cont [4/16] (narrow) %v4598_v8, 64 }
 0x407   : > { %v2318_v46 = vpop.permute.xlu1 %2317  ;;  %1482 = vxpose.xlu0.b32.cont [9/16] (narrow) %v4862_v0, 64  ;;  %v1963_v63 = vpop.permute.xlu0 %1962 }
 0x408   : > { %2902 = vst.msk [vmem:[%s3975_s19 + $0x348] sm:$0xff] %vm1538_vm1, %v2318_v46  ;;  %2819 = vst.msk [vmem:[%s3967_s11 + $0x2f0] sm:$0xff] %vm1538_vm1, %v1963_v63 }
 0x40a   : > { %1510 = vxpose.xlu1.b32.cont [5/16] (narrow) %v4678_v11, 64 }
 0x40b   : > { %v1409_v23 = vpop.permute.xlu1 %1408  ;;  %1483 = vxpose.xlu0.b32.cont [10/16] (narrow) %v4886_v30, 64  ;;  %v2194_v37 = vpop.permute.xlu0 %2193 }
 0x40c   : > { %2871 = vst.msk [vmem:[%s3967_s11 + $0x370] sm:$0xff] %vm1538_vm1, %v2194_v37 }
 0x40e   : > { %1511 = vxpose.xlu1.b32.cont [6/16] (narrow) %v4702_v42, 64 }
 0x40f   : > { %v1441_v8 = vpop.permute.xlu1 %1440  ;;  %1484 = vxpose.xlu0.b32.cont [11/16] (narrow) %v4958_v1, 64  ;;  %v2226_v0 = vpop.permute.xlu0 %2225 }
 0x410   : > { %2887 = vst.msk [vmem:[%s3967_s11 + $0x3f0] sm:$0xff] %vm1538_vm1, %v2226_v0 }
 0x412   : > { %1512 = vxpose.xlu1.b32.cont [7/16] (narrow) %v4774_v3, 64 }
 0x413   : > { %v1638_v11 = vpop.permute.xlu1 %1637  ;;  %1485 = vxpose.xlu0.b32.cont [12/16] (narrow) %v4982_v40, 64  ;;  %v1802_v30 = vpop.permute.xlu0 %1801 }
 0x414   : > { %2736 = vst.msk [vmem:[%s3967_s11 + $0x178] sm:$0xff] %vm1538_vm1, %v1638_v11  ;;  %2771 = vst.msk [vmem:[%s3975_s19 + $0x170] sm:$0xff] %vm1538_vm1, %v1802_v30 }
 0x416   : > { %1513 = vxpose.xlu1.b32.cont [8/16] (narrow) %v4798_v5, 64 }
 0x417   : > { %v1670_v42 = vpop.permute.xlu1 %1669  ;;  %1486 = vxpose.xlu0.b32.cont [13/16] (narrow) %v5054_v61, 64  ;;  %v1834_v1 = vpop.permute.xlu0 %1833 }
 0x418   : > { %2752 = vst.msk [vmem:[%s3967_s11 + $0x1f8] sm:$0xff] %vm1538_vm1, %v1670_v42  ;;  %2787 = vst.msk [vmem:[%s3975_s19 + $0x1f0] sm:$0xff] %vm1538_vm1, %v1834_v1 }
 0x41a   : > { %1514 = vxpose.xlu1.b32.cont [9/16] (narrow) %v4870_v33, 64 }
 0x41b   : > { %v1933_v3 = vpop.permute.xlu1 %1932  ;;  %1487 = vxpose.xlu0.b32.cont [14/16] (narrow) %v5076_v22, 64  ;;  %v2065_v40 = vpop.permute.xlu0 %2064 }
 0x41c   : > { %2804 = vst.msk [vmem:[%s3967_s11 + $0x278] sm:$0xff] %vm1538_vm1, %v1933_v3  ;;  %2839 = vst.msk [vmem:[%s3975_s19 + $0x270] sm:$0xff] %vm1538_vm1, %v2065_v40 }
 0x41e   : > { %1515 = vxpose.xlu1.b32.cont [10/16] (narrow) %v4894_v54, 64 }
 0x41f   : > { %v1965_v5 = vpop.permute.xlu1 %1964  ;;  %1488 = vxpose.xlu0.b32.cont [15/16] (narrow) %v1407_v29, 64  ;;  %v2097_v61 = vpop.permute.xlu0 %2096 }
 0x420   : > { %2820 = vst.msk [vmem:[%s3967_s11 + $0x2f8] sm:$0xff] %vm1538_vm1, %v1965_v5  ;;  %2855 = vst.msk [vmem:[%s3975_s19 + $0x2f0] sm:$0xff] %vm1538_vm1, %v2097_v61 }
 0x422   : > { %1516 = vxpose.xlu1.b32.cont [11/16] (narrow) %v4966_v4, 64 }
 0x423   : > { %v2196_v33 = vpop.permute.xlu1 %2195  ;;  %1489 = vxpose.xlu0.b32.end [16/16] (narrow) %v1409_v23, 64  ;;  %v2308_v34 = vpop.permute.xlu0 %2307 }
 0x424   : > { %2872 = vst.msk [vmem:[%s3967_s11 + $0x378] sm:$0xff] %vm1538_vm1, %v2196_v33  ;;  %2897 = vst.msk [vmem:[%s3975_s19 + $0x320] sm:$0xff] %vm1538_vm1, %v2308_v34 }
 0x426   : > { %1517 = vxpose.xlu1.b32.cont [12/16] (narrow) %v4990_v41, 64 }
 0x427   : > { %v2228_v54 = vpop.permute.xlu1 %2227  ;;  %v2312_v26 = vpop.permute.xlu0 %2311 }
 0x428   : > { %2888 = vst.msk [vmem:[%s3967_s11 + $0x3f8] sm:$0xff] %vm1538_vm1, %v2228_v54  ;;  %2899 = vst.msk [vmem:[%s3975_s19 + $0x330] sm:$0xff] %vm1538_vm1, %v2312_v26  ;;  %s2479_s11 = sshll.u32 %s5244_s25, 4  ;;  %s5274_s11 = int_to_ptr.vmem [resolvable:$true] %s2479_s11 }
 0x429   : > { %s3077_s22 = scalar_lea.vmem %s5274_s11, 2048 }
 0x42a   : > { %1518 = vxpose.xlu1.b32.cont [13/16] (narrow) %v5062_v57, 64  ;;  %p3078_p12 = scmp.ne.s32.totalorder %s5274_s11, %s3077_s22 }
 0x42b   : > { %v1804_v4 = vpop.permute.xlu1 %1803  ;;  %v2316_v22 = vpop.permute.xlu0 %2315 }
 0x42c   : > { %2772 = vst.msk [vmem:[%s3975_s19 + $0x178] sm:$0xff] %vm1538_vm1, %v1804_v4  ;;  %2901 = vst.msk [vmem:[%s3975_s19 + $0x340] sm:$0xff] %vm1538_vm1, %v2316_v22  ;;  %p3079_p13 = pnand %p3078_p12, %p3248_p4 }
 0x42e   : > { %1519 = vxpose.xlu1.b32.cont [14/16] (narrow) %v5082_v10, 64  ;;  %p3080_p0 = pneg %p3079_p13 }
 0x42f   : > { %v1836_v41 = vpop.permute.xlu1 %1835  ;;  %v2320_v59 = vpop.permute.xlu0 %2319 }
 0x430   : > { %2788 = vst.msk [vmem:[%s3975_s19 + $0x1f8] sm:$0xff] %vm1538_vm1, %v1836_v41  ;;  %2903 = vst.msk [vmem:[%s3975_s19 + $0x350] sm:$0xff] %vm1538_vm1, %v2320_v59 }
 0x432   : > { %1520 = vxpose.xlu1.b32.cont [15/16] (narrow) %v5121_v62, 64 }
 0x433   : > { %v2067_v57 = vpop.permute.xlu1 %2066  ;;  %v2324_v55 = vpop.permute.xlu0 %2323 }
 0x434   : > { %2840 = vst.msk [vmem:[%s3975_s19 + $0x278] sm:$0xff] %vm1538_vm1, %v2067_v57  ;;  %2905 = vst.msk [vmem:[%s3975_s19 + $0x360] sm:$0xff] %vm1538_vm1, %v2324_v55 }
 0x436   : > { %1521 = vxpose.xlu1.b32.end [16/16] (narrow) %v1441_v8, 64 }
 0x437   : > { %v2099_v10 = vpop.permute.xlu1 %2098  ;;  %v2328_v48 = vpop.permute.xlu0 %2327 }
 0x438   : > { %2856 = vst.msk [vmem:[%s3975_s19 + $0x2f8] sm:$0xff] %vm1538_vm1, %v2099_v10  ;;  %2907 = vst.msk [vmem:[%s3975_s19 + $0x370] sm:$0xff] %vm1538_vm1, %v2328_v48 }
 0x43b   : > { %v2322_v56 = vpop.permute.xlu1 %2321  ;;  %v2332_v19 = vpop.permute.xlu0 %2331 }
 0x43c   : > { %2904 = vst.msk [vmem:[%s3975_s19 + $0x358] sm:$0xff] %vm1538_vm1, %v2322_v56  ;;  %2909 = vst.msk [vmem:[%s3975_s19 + $0x380] sm:$0xff] %vm1538_vm1, %v2332_v19 }
 0x43f   : > { %v2326_v43 = vpop.permute.xlu1 %2325 }
 0x440   : > { %2906 = vst.msk [vmem:[%s3975_s19 + $0x368] sm:$0xff] %vm1538_vm1, %v2326_v43 }
 0x443   : > { %v2330_v50 = vpop.permute.xlu1 %2329 }
 0x444   : > { %2908 = vst.msk [vmem:[%s3975_s19 + $0x378] sm:$0xff] %vm1538_vm1, %v2330_v50 }
 0x44c   : > { %2335 = vrot.lane.b32.xlu0 %v4144_v47, %s3159_s20 }
 0x450   : > { %2339 = vrot.lane.b32.xlu0 %v4200_v15, %s3159_s20 }
 0x454   : > { %2343 = vrot.lane.b32.xlu0 %v4256_v51, %s3159_s20  ;;  %2333 = vrot.lane.b32.xlu1 %v4116_v31, %s3159_s20 }
 0x458   : > { %2347 = vrot.lane.b32.xlu0 %v4303_v49, %s3159_s20  ;;  %2337 = vrot.lane.b32.xlu1 %v4172_v52, %s3159_s20 }
 0x45c   : > { %2351 = vrot.lane.b32.xlu0 %v4335_v36, %s3159_s20  ;;  %2341 = vrot.lane.b32.xlu1 %v4228_v25, %s3159_s20 }
 0x460   : > { %2355 = vrot.lane.b32.xlu0 %v4367_v16, %s3159_s20  ;;  %2345 = vrot.lane.b32.xlu1 %v4284_v24, %s3159_s20 }
 0x463   : > { %v1490_v31 = vpop.trf.xlu0 }
 0x464   : > { %2359 = vrot.lane.b32.xlu0 %v4399_v12, %s3159_s20  ;;  %2349 = vrot.lane.b32.xlu1 %v4319_v2, %s3159_s20  ;;  %1571 = vst [vmem:[%s5244_s25] sm:$0xff] %v1490_v31 }
 0x467   : > { %v1491_v47 = vpop.trf.xlu0 }
 0x468   : > { %2353 = vrot.lane.b32.xlu1 %v4351_v17, %s3159_s20  ;;  %1573 = vst [vmem:[%s5244_s25 + $0x10] sm:$0xff] %v1491_v47 }
 0x46b   : > { %v1492_v52 = vpop.trf.xlu0 }
 0x46c   : > { %2357 = vrot.lane.b32.xlu1 %v4383_v45, %s3159_s20  ;;  %2753 = vst [vmem:[%s5244_s25 + $0x20] sm:$0xff] %v1492_v52 }
 0x46f   : > { %v1493_v15 = vpop.trf.xlu0 }
 0x470   : > { %2361 = vrot.lane.b32.xlu1 %v4415_v21, %s3159_s20  ;;  %2755 = vst [vmem:[%s5244_s25 + $0x30] sm:$0xff] %v1493_v15  ;;  %s3081_s20 = sshll.u32 %s3160_s30, 4  ;;  %s3082_s20 = int_to_ptr.vmem [resolvable:$false] %s3081_s20 }
 0x471   : > { %s3083_s24 = scalar_lea.vmem %s3082_s20, 4096  ;;  %p3084_p1 = scmp.lt.s32.totalorder %s5274_s11, %s3082_s20 }
 0x472   : > { %p3085_p2 = scmp.lt.s32.totalorder %s3083_s24, %s3077_s22 }
 0x473   : > { %v1494_v25 = vpop.trf.xlu0 }
 0x474   : > { %2821 = vst [vmem:[%s5244_s25 + $0x40] sm:$0xff] %v1494_v25  ;;  %p3086_p3 = por %p3085_p2, %p3084_p1 }
 0x476   : > { %v1522_v51 = vpop.trf.xlu1  ;;  %p3087_p5 = pnand %p3086_p3, %p3080_p0 }
 0x477   : > { %1572 = vst [vmem:[%s5244_s25 + $0x8] sm:$0xff] %v1522_v51  ;;  %v1495_v24 = vpop.trf.xlu0 }
 0x478   : > { %2823 = vst [vmem:[%s5244_s25 + $0x50] sm:$0xff] %v1495_v24 }
 0x47a   : > { %v1523_v49 = vpop.trf.xlu1 }
 0x47b   : > { %1574 = vst [vmem:[%s5244_s25 + $0x18] sm:$0xff] %v1523_v49  ;;  %v1496_v2 = vpop.trf.xlu0 }
 0x47c   : > { %2889 = vst [vmem:[%s5244_s25 + $0x60] sm:$0xff] %v1496_v2 }
 0x47e   : > { %v1524_v36 = vpop.trf.xlu1 }
 0x47f   : > { %2754 = vst [vmem:[%s5244_s25 + $0x28] sm:$0xff] %v1524_v36  ;;  %v1497_v17 = vpop.trf.xlu0 }
 0x480   : > { %2891 = vst [vmem:[%s5244_s25 + $0x70] sm:$0xff] %v1497_v17 }
 0x482   : > { %v1525_v16 = vpop.trf.xlu1 }
 0x483   : > { %2756 = vst [vmem:[%s5244_s25 + $0x38] sm:$0xff] %v1525_v16 }
 0x486   : > { %v1526_v45 = vpop.trf.xlu1 }
 0x487   : > { %2822 = vst [vmem:[%s5244_s25 + $0x48] sm:$0xff] %v1526_v45 }
 0x48a   : > { %v1527_v12 = vpop.trf.xlu1 }
 0x48b   : > { %2824 = vst [vmem:[%s5244_s25 + $0x58] sm:$0xff] %v1527_v12 }
 0x48e   : > { %v1528_v21 = vpop.trf.xlu1 }
 0x48f   : > { %2890 = vst [vmem:[%s5244_s25 + $0x68] sm:$0xff] %v1528_v21 }
 0x492   : > { %v1529_v7 = vpop.trf.xlu1 }
 0x493   : > { %2892 = vst [vmem:[%s5244_s25 + $0x78] sm:$0xff] %v1529_v7 }
 0x494   : > { %3090 = shalt.err (!%p3087_p5)
}
 0x495   : > { %s3091_s23 = scalar_lea.hbm %s5272_s16, 2048  ;;  %s3095_s12 = scalar_lea.hbm %s5361_s7, 4096 }
 0x496   : > { %p3092_p6 = scmp.ne.s32.totalorder %s5272_s16, %s3091_s23  ;;  %p3096_p10 = scmp.lt.s32.totalorder %s5272_s16, %s5361_s7 }
 0x497   : > { %p3097_p11 = scmp.lt.s32.totalorder %s3095_s12, %s3091_s23 }
 0x498   : > { %p3093_p7 = pnand %p3092_p6, %p3248_p4 }
 0x499   : > { %p3098_p12 = por %p3097_p11, %p3096_p10 }
 0x49a   : > { %p3094_p9 = pneg %p3093_p7 }
 0x49c   : > { %p3099_p13 = pnand %p3098_p12, %p3094_p9 }
 0x49e   : > { %3102 = shalt.err (!%p3099_p13)
}
 0x49f   : > { %s3161_s22 = smov 256   ;;  %s3162_s20 = smov 16  }
 0x4a0   : > { %2951 = dma.vmem_to_hbm [thread:$0]  (%p3248_p4), %s5274_s11, 2048, %s5272_s16, %s5279_s21, %s3161_s22, %s3161_s22, %s3162_s20  }
 0x4be   : > { %v2336_v20 = vpop.permute.xlu0 %2335 }
 0x4bf   : > { %2911 = vst.msk [vmem:[%s3975_s19 + $0x390] sm:$0xff] %vm1538_vm1, %v2336_v20 }
 0x4c2   : > { %v2340_v14 = vpop.permute.xlu0 %2339 }
 0x4c3   : > { %2913 = vst.msk [vmem:[%s3975_s19 + $0x3a0] sm:$0xff] %vm1538_vm1, %v2340_v14 }
 0x4c6   : > { %v2334_v27 = vpop.permute.xlu1 %2333  ;;  %v2344_v32 = vpop.permute.xlu0 %2343 }
 0x4c7   : > { %2910 = vst.msk [vmem:[%s3975_s19 + $0x388] sm:$0xff] %vm1538_vm1, %v2334_v27  ;;  %2915 = vst.msk [vmem:[%s3975_s19 + $0x3b0] sm:$0xff] %vm1538_vm1, %v2344_v32 }
 0x4ca   : > { %v2338_v60 = vpop.permute.xlu1 %2337  ;;  %v2348_v35 = vpop.permute.xlu0 %2347 }
 0x4cb   : > { %2912 = vst.msk [vmem:[%s3975_s19 + $0x398] sm:$0xff] %vm1538_vm1, %v2338_v60  ;;  %2917 = vst.msk [vmem:[%s3975_s19 + $0x3c0] sm:$0xff] %vm1538_vm1, %v2348_v35 }
 0x4ce   : > { %v2342_v28 = vpop.permute.xlu1 %2341  ;;  %v2352_v18 = vpop.permute.xlu0 %2351 }
 0x4cf   : > { %2914 = vst.msk [vmem:[%s3975_s19 + $0x3a8] sm:$0xff] %vm1538_vm1, %v2342_v28  ;;  %2919 = vst.msk [vmem:[%s3975_s19 + $0x3d0] sm:$0xff] %vm1538_vm1, %v2352_v18 }
 0x4d2   : > { %v2346_v38 = vpop.permute.xlu1 %2345  ;;  %v2356_v29 = vpop.permute.xlu0 %2355 }
 0x4d3   : > { %2916 = vst.msk [vmem:[%s3975_s19 + $0x3b8] sm:$0xff] %vm1538_vm1, %v2346_v38  ;;  %2921 = vst.msk [vmem:[%s3975_s19 + $0x3e0] sm:$0xff] %vm1538_vm1, %v2356_v29 }
 0x4d6   : > { %v2350_v13 = vpop.permute.xlu1 %2349  ;;  %v2360_v62 = vpop.permute.xlu0 %2359 }
 0x4d7   : > { %2918 = vst.msk [vmem:[%s3975_s19 + $0x3c8] sm:$0xff] %vm1538_vm1, %v2350_v13  ;;  %2923 = vst.msk [vmem:[%s3975_s19 + $0x3f0] sm:$0xff] %vm1538_vm1, %v2360_v62 }
 0x4da   : > { %v2354_v6 = vpop.permute.xlu1 %2353 }
 0x4db   : > { %2920 = vst.msk [vmem:[%s3975_s19 + $0x3d8] sm:$0xff] %vm1538_vm1, %v2354_v6 }
 0x4de   : > { %v2358_v39 = vpop.permute.xlu1 %2357 }
 0x4df   : > { %2922 = vst.msk [vmem:[%s3975_s19 + $0x3e8] sm:$0xff] %vm1538_vm1, %v2358_v39 }
 0x4e2   : > { %v2362_v58 = vpop.permute.xlu1 %2361 }
 0x4e3   : > { %2924 = vst.msk [vmem:[%s3975_s19 + $0x3f8] sm:$0xff] %vm1538_vm1, %v2362_v58 }
 0x4e4 PF: > { %p2957_p4 = scmp.ge.s32.totalorder %s3153_s10, 2  ;;  %s2522_s15 = sand.u32 1, %s3133_s27  }
 0x4e5   : > { %s2523_s11 = scalar_lea.sflag [#allocation3], %s2522_s15 }
 0x4e6   : > { %p2954_p0 = pnand %p2957_p4, %p3255_p8 }
 0x4e8   : > { %p2955_p1 = pneg %p2954_p0 }
 0x4ea   : > { %3128 = dma.done.wait (%p2955_p1), %s2523_s11, 2048  }
 0x4eb   : > { %3130 = vsyncadd (%p2955_p1), %s2523_s11, 4294965248  ;;  %s22_s10 = sadd.s32 1, %s3153_s10   ;;  %s5365_s27 = smov %s3137_s28 }
 0x4ec   : > { %p19_p2 = scmp.ge.s32.totalorder %s22_s10, 4   ;;  %s5366_s28 = smov %s3141_s29 }
 0x4ed   : > { %s5367_s29 = smov %s3261_s18  ;;  %s5368_s30 = smov %s3149_s9 }
 0x4ee   : > { %s5369_s9 = smov %s5371_s13  ;;  %21 = sbr.rel (!%p19_p2) target bundleno = 4 (0x4), region = 120 }
 0x4f3   :  { %2540 = vsyncpa [#allocation3], 1 }
 0x4f4   :  { %2542 = vsyncpa [#allocation3 + $0x1], 1 }

</bundles_post_ra>
